<compile_context>
chip_gen: v7x
topology: tpu7x:2x2x1
jax: 0.10.0
libtpu: 0.0.40
codegen_flags: <defaults>
</compile_context>

<pallas_src>
import functools

import numpy as np
import jax
import jax.numpy as jnp
from jax import lax
from jax.experimental import pallas as pl
from jax.experimental.pallas import tpu as pltpu

EPS = 1e-5           # PyTorch BatchNorm1d default eps
LANES = 128          # vreg lane width: channel axis is zero-padded to this
MXU_DTYPE = jnp.float32   # see TODO above: bfloat16 candidate for v6e/v7x


# ----------------------------- Pallas kernel --------------------------------
def _fused_dae_kernel(x_ref, w_ref, prm_ref, o_ref, scr_ref, *,
                      layer_cfg, seq_len, pad):
    """Whole autoencoder forward in one kernel invocation.

    x_ref   : (M, 128)             input rows (b*L + l, channels-last, lane padded)
    w_ref   : (n_layers, 384, 128) per-layer fused tap weights [W_a; W_mid; W_b]
    prm_ref : (n_layers, 8, 128)   rows 0/1/2 = bias / gamma / beta (lane padded)
    o_ref   : (M, 128)             output rows (lane-dense)
    scr_ref : (M + 2*pad, 128)     zero-bordered staging buffer for shifted taps

    layer_cfg: static tuple of (shift, out_stride, a_lo, b_hi, bn, count):
      shift      row offset of the +/- taps for this layer
      out_stride valid output rows are those with (row % out_stride) == 0
      a_lo       zero tap(r - shift) where (row % seq_len) <  a_lo   (conv pad)
      b_hi       zero tap(r + shift) where (row % seq_len) >= L-b_hi (x[L] := 0)
      bn         apply training-mode BatchNorm1d + ReLU
      count      number of valid rows (N * L_out) for exact BN statistics
    """
    m = x_ref.shape[0]

    # Zero the scratch once; only rows [pad, pad+m) are ever rewritten, so the
    # borders stay zero and shifted reads naturally see the global padding.
    scr_ref[...] = jnp.zeros(scr_ref.shape, scr_ref.dtype)

    row = lax.broadcasted_iota(jnp.int32, (m, 1), 0)
    rmod = row & (seq_len - 1)                     # row index within its sequence

    h = x_ref[...]                                 # (M, 128) f32
    for i, (shift, so, a_lo, b_hi, bn, count) in enumerate(layer_cfg):
        # Stage the current activation so the two shifted taps are plain
        # (cheap, vld-slot) static VMEM slice reads instead of matmul gathers.
        scr_ref[pad:pad + m, :] = h
        t_dn = scr_ref[pad - shift:pad - shift + m, :]     # x[r - shift]
        t_up = scr_ref[pad + shift:pad + shift + m, :]     # x[r + shift]
        if a_lo:   # encoder: conv pad=1 -> input index -1 contributes zero
            t_dn = jnp.where(rmod >= a_lo, t_dn, 0.0)
        if b_hi:   # decoder: input index L_in (one past the end) is zero
            t_up = jnp.where(rmod < seq_len - b_hi, t_up, 0.0)

        # Single fused MXU op per layer: (M, 384) @ (384, 128).
        taps = jnp.concatenate([t_dn, h, t_up], axis=1).astype(MXU_DTYPE)
        y = jnp.dot(taps, w_ref[i], preferred_element_type=jnp.float32)

        prm = prm_ref[i]                                   # (8, 128)
        out_mask = (row & (so - 1)) == 0                   # valid rows this layer
        y = jnp.where(out_mask, y + prm[0:1, :], 0.0)      # + bias, keep rows sparse

        if bn:
            # BatchNorm1d, training mode: exact per-channel batch stats — masked
            # rows are exactly zero, so sums over all rows / true count are exact.
            inv_n = 1.0 / count
            mean = jnp.sum(y, axis=0, keepdims=True) * inv_n
            var = jnp.sum(y * y, axis=0, keepdims=True) * inv_n - mean * mean
            yn = (y - mean) * lax.rsqrt(var + EPS)
            y = jnp.where(out_mask,
                          jnp.maximum(yn * prm[1:2, :] + prm[2:3, :], 0.0),
                          0.0)                             # gamma, beta, ReLU, re-mask
        h = y
    o_ref[...] = h


# --------------------------- one-time host packing ---------------------------
def _pack_layers(params, n, l_in):
    """Repack weights into fused (384,128) per-layer slabs + static layer configs."""
    n_enc, n_dec = len(params["enc"]), len(params["dec"])
    w_blocks, prm_blocks, cfg = [], [], []

    def pad_taps(w_tap, order):
        # w_tap: (3, C_in, C_out) per-tap matrices -> fused (3*128, 128), row-padded
        blk = np.zeros((3, LANES, LANES), np.float32)
        c_in, c_out = w_tap.shape[1], w_tap.shape[2]
        blk[:, :c_in, :c_out] = w_tap
        return np.concatenate([blk[k] for k in order], axis=0)

    def pad_prm(bias, gamma, beta):
        c_out = np.asarray(bias).shape[0]
        p = np.zeros((8, LANES), np.float32)
        p[0, :c_out] = np.asarray(bias)
        p[1, :c_out] = np.asarray(gamma)
        p[2, :c_out] = np.asarray(beta)
        return p

    si = 1
    for i, (w, b, g, bt) in enumerate(params["enc"]):
        so = 2 * si
        # Conv1d weight (C_out, C_in, 3) -> per-tap (C_in, C_out); output row r
        # (r % so == 0) reads taps x[r-si], x[r], x[r+si]  ->  [W0; W1; W2].
        w_tap = np.transpose(np.asarray(w), (2, 1, 0))
        w_blocks.append(pad_taps(w_tap, order=(0, 1, 2)))
        prm_blocks.append(pad_prm(b, g, bt))
        cfg.append((si, so, si, 0, i < n_enc - 1, n * (l_in // so)))
        si = so

    for i, (w, b, g, bt) in enumerate(params["dec"]):
        so = si // 2
        # ConvTranspose1d weight (C_in, C_out, 3) -> per-tap (C_in, C_out); the
        # scatter j = 2*i + k - 1 means row r reads x[r+so] (k=0), x[r] (k=1),
        # x[r-so] (k=2); with kernel taps ordered [x[r-so], x[r], x[r+so]] the
        # fused weight slab is [W2; W1; W0].  No kernel flipping needed.
        w_tap = np.transpose(np.asarray(w), (2, 0, 1))
        w_blocks.append(pad_taps(w_tap, order=(2, 1, 0)))
        prm_blocks.append(pad_prm(b, g, bt))
        cfg.append((so, so, 0, so, i < n_dec - 1, n * (l_in // so)))
        si = so
    assert si == 1, si

    w_all = jnp.asarray(np.stack(w_blocks)).astype(MXU_DTYPE)   # (n_layers, 384, 128)
    prm_all = jnp.asarray(np.stack(prm_blocks))                 # (n_layers, 8, 128)
    return w_all, prm_all, tuple(cfg)


def make_forward(params, n, input_dim, l_in):
    n_enc = len(params["enc"])
    assert l_in % (1 << n_enc) == 0, (l_in, n_enc)
    assert l_in & (l_in - 1) == 0, l_in          # power of two (bitmask row % L)
    m = n * l_in
    assert m % 8 == 0, m

    w_all, prm_all, layer_cfg = _pack_layers(params, n, l_in)
    max_shift = max(c[0] for c in layer_cfg)
    pad = ((max_shift + 7) // 8) * 8             # aligned zero border for the scratch

    vmem = pl.BlockSpec(memory_space=pltpu.MemorySpace.VMEM)
    fused = pl.pallas_call(
        functools.partial(_fused_dae_kernel,
                          layer_cfg=layer_cfg, seq_len=l_in, pad=pad),
        out_shape=jax.ShapeDtypeStruct((m, LANES), jnp.float32),
        in_specs=[vmem, vmem, vmem],
        out_specs=vmem,
        scratch_shapes=[pltpu.VMEM((m + 2 * pad, LANES), jnp.float32)],
    )

    @jax.jit
    def _forward(x, w_all, prm_all):
        # NCL -> channels-last rows (b*L + l, C), lane-padded to 128 in one pad op.
        x_rows = jnp.transpose(x, (0, 2, 1)).reshape(m, input_dim).astype(jnp.float32)
        x_rows = jnp.pad(x_rows, ((0, 0), (0, LANES - input_dim)))
        y = fused(x_rows, w_all, prm_all)
        out = y[:, :input_dim].reshape(n, l_in, input_dim)
        return jnp.transpose(out, (0, 2, 1))                 # back to NCL

    return lambda x: _forward(x, w_all, prm_all)


# ---------------------------- parameters (PyTorch layouts) -------------------
def init_params(key, input_dim=1, hidden_dims=(64, 32, 16), latent_dim=8):
    keys = iter(jax.random.split(key, 4 * (len(hidden_dims) + 1)))

    def conv_p(c_out, c_in):    # nn.Conv1d weight layout (C_out, C_in, 3)
        w = jax.random.normal(next(keys), (c_out, c_in, 3), jnp.float32) * 0.1
        b = jax.random.normal(next(keys), (c_out,), jnp.float32) * 0.1
        return w, b, jnp.ones((c_out,), jnp.float32), jnp.zeros((c_out,), jnp.float32)

    def convt_p(c_in, c_out):   # nn.ConvTranspose1d weight layout (C_in, C_out, 3)
        w = jax.random.normal(next(keys), (c_in, c_out, 3), jnp.float32) * 0.1
        b = jax.random.normal(next(keys), (c_out,), jnp.float32) * 0.1
        return w, b, jnp.ones((c_out,), jnp.float32), jnp.zeros((c_out,), jnp.float32)

    enc, in_dim = [], input_dim
    for hd in hidden_dims:
        enc.append(conv_p(hd, in_dim))
        in_dim = hd
    enc.append(conv_p(latent_dim, in_dim))            # final encoder conv (no BN/ReLU)

    dec, in_dim = [], latent_dim
    for hd in reversed(hidden_dims):
        dec.append(convt_p(in_dim, hd))
        in_dim = hd
    dec.append(convt_p(in_dim, input_dim))            # final decoder convT (no BN/ReLU)
    return {"enc": enc, "dec": dec}


# ---------------------------- pure-JAX reference ------------------------------
def _bn_relu_ref(h, g, bt):
    mean = jnp.mean(h, axis=(0, 2), keepdims=True)
    var = jnp.mean(jnp.square(h - mean), axis=(0, 2), keepdims=True)
    h = (h - mean) * lax.rsqrt(var + EPS)
    h = h * g[None, :, None] + bt[None, :, None]
    return jnp.maximum(h, 0.0)


def reference_forward(params, x):
    """Plain-JAX reference with PyTorch semantics (training-mode BatchNorm)."""
    h = x
    n_enc = len(params["enc"])
    for i, (w, b, g, bt) in enumerate(params["enc"]):
        h = lax.conv_general_dilated(h, w, (2,), [(1, 1)],
                                     dimension_numbers=("NCH", "OIH", "NCH"),
                                     precision=lax.Precision.HIGHEST)
        h = h + b[None, :, None]
        if i < n_enc - 1:
            h = _bn_relu_ref(h, g, bt)
    n_dec = len(params["dec"])
    for i, (w, b, g, bt) in enumerate(params["dec"]):
        # ConvTranspose1d == lhs-dilated conv with flipped, in/out-swapped kernel.
        w_eq = jnp.flip(w, axis=2).transpose(1, 0, 2)
        h = lax.conv_general_dilated(h, w_eq, (1,), [(1, 2)], lhs_dilation=(2,),
                                     dimension_numbers=("NCH", "OIH", "NCH"),
                                     precision=lax.Precision.HIGHEST)
        h = h + b[None, :, None]
        if i < n_dec - 1:
            h = _bn_relu_ref(h, g, bt)
    return h


if __name__ == "__main__":
    key = jax.random.PRNGKey(0)
    k_param, k_x = jax.random.split(key)

    N, C_IN, L = 2, 1, 32   # encoder: 32 -> 16 -> 8 -> 4 -> 2; decoder back to 32
    params = init_params(k_param, input_dim=C_IN, hidden_dims=(64, 32, 16), latent_dim=8)
    x = jax.random.normal(k_x, (N, C_IN, L), jnp.float32)

    forward = make_forward(params, N, C_IN, L)
    out = jax.block_until_ready(forward(x))

    assert out.shape == x.shape, out.shape
    assert bool(jnp.all(jnp.isfinite(out)))

    ref = reference_forward(params, x)
    max_err = float(jnp.max(jnp.abs(out - ref)))
    assert bool(jnp.allclose(out, ref, rtol=2e-3, atol=2e-3)), max_err

    print("KERNEL_OK")
</pallas_src>

<mosaic_0001>
module attributes {stable_mosaic.version = 11 : i64} {
  func.func @_fused_dae_kernel(%arg0: memref<64x128xf32, #tpu.memory_space<vmem>>, %arg1: memref<8x384x128xf32, #tpu.memory_space<vmem>>, %arg2: memref<8x8x128xf32, #tpu.memory_space<vmem>>, %arg3: memref<64x128xf32, #tpu.memory_space<vmem>>, %arg4: memref<80x128xf32, #tpu.memory_space<vmem>>) attributes {dimension_semantics = [], scalar_prefetch = 0 : i64, scratch_operands = 1 : i64, tpu.core_type = #tpu.core_type<tc>} {
    %cst = arith.constant 0.000000e+00 : f32
    %0 = vector.broadcast %cst : f32 to vector<80x128xf32>
    %c0 = arith.constant 0 : index
    %c0_0 = arith.constant 0 : index
    %1 = vector.load %arg4[%c0, %c0_0] : memref<80x128xf32, #tpu.memory_space<vmem>>, vector<80x128xf32>
    tpu.vector_store %arg4[%c0, %c0_0], %0 {strides = array<i32>} : memref<80x128xf32, #tpu.memory_space<vmem>>, vector<80x128xf32>,
    %2 = tpu.iota {dimensions = array<i32: 0>} : vector<64x1xi32>
    %c31_i32 = arith.constant 31 : i32
    %3 = vector.broadcast %c31_i32 : i32 to vector<64x1xi32>
    %4 = arith.andi %2, %3 : vector<64x1xi32>
    %c0_1 = arith.constant 0 : index
    %c0_2 = arith.constant 0 : index
    %5 = vector.load %arg0[%c0_1, %c0_2] : memref<64x128xf32, #tpu.memory_space<vmem>>, vector<64x128xf32>
    %c8 = arith.constant 8 : index
    %c0_3 = arith.constant 0 : index
    %6 = vector.load %arg4[%c8, %c0_3] : memref<80x128xf32, #tpu.memory_space<vmem>>, vector<64x128xf32>
    tpu.vector_store %arg4[%c8, %c0_3], %5 {strides = array<i32>} : memref<80x128xf32, #tpu.memory_space<vmem>>, vector<64x128xf32>,
    %c7 = arith.constant 7 : index
    %c0_4 = arith.constant 0 : index
    %7 = vector.load %arg4[%c7, %c0_4] : memref<80x128xf32, #tpu.memory_space<vmem>>, vector<64x128xf32>
    %c9 = arith.constant 9 : index
    %c0_5 = arith.constant 0 : index
    %8 = vector.load %arg4[%c9, %c0_5] : memref<80x128xf32, #tpu.memory_space<vmem>>, vector<64x128xf32>
    %c1_i32 = arith.constant 1 : i32
    %9 = vector.broadcast %c1_i32 : i32 to vector<64x1xi32>
    %10 = arith.cmpi sge, %4, %9 : vector<64x1xi32>
    %cst_6 = arith.constant 0.000000e+00 : f32
    %11 = vector.shape_cast %10 : vector<64x1xi1> to vector<64x1xi1>
    %12 = vector.broadcast %11 : vector<64x1xi1> to vector<64x128xi1>
    %13 = vector.broadcast %cst_6 : f32 to vector<64x128xf32>
    %14 = arith.select %12, %7, %13 : vector<64x128xi1>, vector<64x128xf32>
    %15 = tpu.concatenate %14, %5, %8 in 1 : vector<64x128xf32>, vector<64x128xf32>, vector<64x128xf32> -> vector<64x384xf32>
    %c0_7 = arith.constant 0 : index
    %c0_8 = arith.constant 0 : index
    %c0_9 = arith.constant 0 : index
    %16 = vector.load %arg1[%c0_7, %c0_8, %c0_9] : memref<8x384x128xf32, #tpu.memory_space<vmem>>, vector<1x384x128xf32>
    %17 = vector.shape_cast %16 : vector<1x384x128xf32> to vector<384x128xf32>
    %cst_10 = arith.constant dense<0.000000e+00> : vector<64x128xf32>
    %18 = tpu.matmul %15, %17, %cst_10 {dimension_numbers = #tpu.dot_dimension_numbers<[1], [0], [0], [1], [0, 0, 1, 1], [], []>} : vector<64x384xf32>, vector<384x128xf32>, vector<64x128xf32> -> vector<64x128xf32>
    %c0_11 = arith.constant 0 : index
    %c0_12 = arith.constant 0 : index
    %c0_13 = arith.constant 0 : index
    %19 = vector.load %arg2[%c0_11, %c0_12, %c0_13] : memref<8x8x128xf32, #tpu.memory_space<vmem>>, vector<1x8x128xf32>
    %20 = vector.shape_cast %19 : vector<1x8x128xf32> to vector<8x128xf32>
    %c1_i32_14 = arith.constant 1 : i32
    %21 = vector.broadcast %c1_i32_14 : i32 to vector<64x1xi32>
    %22 = arith.andi %2, %21 : vector<64x1xi32>
    %c0_i32 = arith.constant 0 : i32
    %23 = vector.broadcast %c0_i32 : i32 to vector<64x1xi32>
    %24 = arith.cmpi eq, %22, %23 : vector<64x1xi32>
    %25 = vector.extract_strided_slice %20 {offsets = [0, 0], sizes = [1, 128], strides = [1, 1]} : vector<8x128xf32> to vector<1x128xf32>
    %26 = vector.broadcast %25 : vector<1x128xf32> to vector<64x128xf32>
    %27 = arith.addf %18, %26 : vector<64x128xf32>
    %cst_15 = arith.constant 0.000000e+00 : f32
    %28 = vector.shape_cast %24 : vector<64x1xi1> to vector<64x1xi1>
    %29 = vector.broadcast %28 : vector<64x1xi1> to vector<64x128xi1>
    %30 = vector.broadcast %cst_15 : f32 to vector<64x128xf32>
    %31 = arith.select %29, %27, %30 : vector<64x128xi1>, vector<64x128xf32>
    %cst_16 = arith.constant dense<0.000000e+00> : vector<128xf32>
    %32 = vector.multi_reduction <add>, %31, %cst_16 [0] : vector<64x128xf32> to vector<128xf32>
    %33 = vector.shape_cast %32 : vector<128xf32> to vector<1x128xf32>
    %cst_17 = arith.constant 3.125000e-02 : f32
    %34 = vector.broadcast %cst_17 : f32 to vector<1x128xf32>
    %35 = arith.mulf %33, %34 : vector<1x128xf32>
    %36 = arith.mulf %31, %31 : vector<64x128xf32>
    %cst_18 = arith.constant dense<0.000000e+00> : vector<128xf32>
    %37 = vector.multi_reduction <add>, %36, %cst_18 [0] : vector<64x128xf32> to vector<128xf32>
    %38 = vector.shape_cast %37 : vector<128xf32> to vector<1x128xf32>
    %cst_19 = arith.constant 3.125000e-02 : f32
    %39 = vector.broadcast %cst_19 : f32 to vector<1x128xf32>
    %40 = arith.mulf %38, %39 : vector<1x128xf32>
    %41 = arith.mulf %35, %35 : vector<1x128xf32>
    %42 = arith.subf %40, %41 : vector<1x128xf32>
    %43 = vector.broadcast %35 : vector<1x128xf32> to vector<64x128xf32>
    %44 = arith.subf %31, %43 : vector<64x128xf32>
    %cst_20 = arith.constant 9.99999974E-6 : f32
    %45 = vector.broadcast %cst_20 : f32 to vector<1x128xf32>
    %46 = arith.addf %42, %45 : vector<1x128xf32>
    %47 = math.rsqrt %46 : vector<1x128xf32>
    %48 = vector.broadcast %47 : vector<1x128xf32> to vector<64x128xf32>
    %49 = arith.mulf %44, %48 : vector<64x128xf32>
    %50 = vector.extract_strided_slice %20 {offsets = [1, 0], sizes = [1, 128], strides = [1, 1]} : vector<8x128xf32> to vector<1x128xf32>
    %51 = vector.broadcast %50 : vector<1x128xf32> to vector<64x128xf32>
    %52 = arith.mulf %49, %51 : vector<64x128xf32>
    %53 = vector.extract_strided_slice %20 {offsets = [2, 0], sizes = [1, 128], strides = [1, 1]} : vector<8x128xf32> to vector<1x128xf32>
    %54 = vector.broadcast %53 : vector<1x128xf32> to vector<64x128xf32>
    %55 = arith.addf %52, %54 : vector<64x128xf32>
    %cst_21 = arith.constant 0.000000e+00 : f32
    %56 = vector.broadcast %cst_21 : f32 to vector<64x128xf32>
    %57 = arith.maximumf %55, %56 : vector<64x128xf32>
    %cst_22 = arith.constant 0.000000e+00 : f32
    %58 = vector.shape_cast %24 : vector<64x1xi1> to vector<64x1xi1>
    %59 = vector.broadcast %58 : vector<64x1xi1> to vector<64x128xi1>
    %60 = vector.broadcast %cst_22 : f32 to vector<64x128xf32>
    %61 = arith.select %59, %57, %60 : vector<64x128xi1>, vector<64x128xf32>
    %c8_23 = arith.constant 8 : index
    %c0_24 = arith.constant 0 : index
    %62 = vector.load %arg4[%c8_23, %c0_24] : memref<80x128xf32, #tpu.memory_space<vmem>>, vector<64x128xf32>
    tpu.vector_store %arg4[%c8_23, %c0_24], %61 {strides = array<i32>} : memref<80x128xf32, #tpu.memory_space<vmem>>, vector<64x128xf32>,
    %c6 = arith.constant 6 : index
    %c0_25 = arith.constant 0 : index
    %63 = vector.load %arg4[%c6, %c0_25] : memref<80x128xf32, #tpu.memory_space<vmem>>, vector<64x128xf32>
    %c10 = arith.constant 10 : index
    %c0_26 = arith.constant 0 : index
    %64 = vector.load %arg4[%c10, %c0_26] : memref<80x128xf32, #tpu.memory_space<vmem>>, vector<64x128xf32>
    %c2_i32 = arith.constant 2 : i32
    %65 = vector.broadcast %c2_i32 : i32 to vector<64x1xi32>
    %66 = arith.cmpi sge, %4, %65 : vector<64x1xi32>
    %cst_27 = arith.constant 0.000000e+00 : f32
    %67 = vector.shape_cast %66 : vector<64x1xi1> to vector<64x1xi1>
    %68 = vector.broadcast %67 : vector<64x1xi1> to vector<64x128xi1>
    %69 = vector.broadcast %cst_27 : f32 to vector<64x128xf32>
    %70 = arith.select %68, %63, %69 : vector<64x128xi1>, vector<64x128xf32>
    %71 = tpu.concatenate %70, %61, %64 in 1 : vector<64x128xf32>, vector<64x128xf32>, vector<64x128xf32> -> vector<64x384xf32>
    %c1 = arith.constant 1 : index
    %c0_28 = arith.constant 0 : index
    %c0_29 = arith.constant 0 : index
    %72 = vector.load %arg1[%c1, %c0_28, %c0_29] : memref<8x384x128xf32, #tpu.memory_space<vmem>>, vector<1x384x128xf32>
    %73 = vector.shape_cast %72 : vector<1x384x128xf32> to vector<384x128xf32>
    %cst_30 = arith.constant dense<0.000000e+00> : vector<64x128xf32>
    %74 = tpu.matmul %71, %73, %cst_30 {dimension_numbers = #tpu.dot_dimension_numbers<[1], [0], [0], [1], [0, 0, 1, 1], [], []>} : vector<64x384xf32>, vector<384x128xf32>, vector<64x128xf32> -> vector<64x128xf32>
    %c1_31 = arith.constant 1 : index
    %c0_32 = arith.constant 0 : index
    %c0_33 = arith.constant 0 : index
    %75 = vector.load %arg2[%c1_31, %c0_32, %c0_33] : memref<8x8x128xf32, #tpu.memory_space<vmem>>, vector<1x8x128xf32>
    %76 = vector.shape_cast %75 : vector<1x8x128xf32> to vector<8x128xf32>
    %c3_i32 = arith.constant 3 : i32
    %77 = vector.broadcast %c3_i32 : i32 to vector<64x1xi32>
    %78 = arith.andi %2, %77 : vector<64x1xi32>
    %c0_i32_34 = arith.constant 0 : i32
    %79 = vector.broadcast %c0_i32_34 : i32 to vector<64x1xi32>
    %80 = arith.cmpi eq, %78, %79 : vector<64x1xi32>
    %81 = vector.extract_strided_slice %76 {offsets = [0, 0], sizes = [1, 128], strides = [1, 1]} : vector<8x128xf32> to vector<1x128xf32>
    %82 = vector.broadcast %81 : vector<1x128xf32> to vector<64x128xf32>
    %83 = arith.addf %74, %82 : vector<64x128xf32>
    %cst_35 = arith.constant 0.000000e+00 : f32
    %84 = vector.shape_cast %80 : vector<64x1xi1> to vector<64x1xi1>
    %85 = vector.broadcast %84 : vector<64x1xi1> to vector<64x128xi1>
    %86 = vector.broadcast %cst_35 : f32 to vector<64x128xf32>
    %87 = arith.select %85, %83, %86 : vector<64x128xi1>, vector<64x128xf32>
    %cst_36 = arith.constant dense<0.000000e+00> : vector<128xf32>
    %88 = vector.multi_reduction <add>, %87, %cst_36 [0] : vector<64x128xf32> to vector<128xf32>
    %89 = vector.shape_cast %88 : vector<128xf32> to vector<1x128xf32>
    %cst_37 = arith.constant 6.250000e-02 : f32
    %90 = vector.broadcast %cst_37 : f32 to vector<1x128xf32>
    %91 = arith.mulf %89, %90 : vector<1x128xf32>
    %92 = arith.mulf %87, %87 : vector<64x128xf32>
    %cst_38 = arith.constant dense<0.000000e+00> : vector<128xf32>
    %93 = vector.multi_reduction <add>, %92, %cst_38 [0] : vector<64x128xf32> to vector<128xf32>
    %94 = vector.shape_cast %93 : vector<128xf32> to vector<1x128xf32>
    %cst_39 = arith.constant 6.250000e-02 : f32
    %95 = vector.broadcast %cst_39 : f32 to vector<1x128xf32>
    %96 = arith.mulf %94, %95 : vector<1x128xf32>
    %97 = arith.mulf %91, %91 : vector<1x128xf32>
    %98 = arith.subf %96, %97 : vector<1x128xf32>
    %99 = vector.broadcast %91 : vector<1x128xf32> to vector<64x128xf32>
    %100 = arith.subf %87, %99 : vector<64x128xf32>
    %cst_40 = arith.constant 9.99999974E-6 : f32
    %101 = vector.broadcast %cst_40 : f32 to vector<1x128xf32>
    %102 = arith.addf %98, %101 : vector<1x128xf32>
    %103 = math.rsqrt %102 : vector<1x128xf32>
    %104 = vector.broadcast %103 : vector<1x128xf32> to vector<64x128xf32>
    %105 = arith.mulf %100, %104 : vector<64x128xf32>
    %106 = vector.extract_strided_slice %76 {offsets = [1, 0], sizes = [1, 128], strides = [1, 1]} : vector<8x128xf32> to vector<1x128xf32>
    %107 = vector.broadcast %106 : vector<1x128xf32> to vector<64x128xf32>
    %108 = arith.mulf %105, %107 : vector<64x128xf32>
    %109 = vector.extract_strided_slice %76 {offsets = [2, 0], sizes = [1, 128], strides = [1, 1]} : vector<8x128xf32> to vector<1x128xf32>
    %110 = vector.broadcast %109 : vector<1x128xf32> to vector<64x128xf32>
    %111 = arith.addf %108, %110 : vector<64x128xf32>
    %cst_41 = arith.constant 0.000000e+00 : f32
    %112 = vector.broadcast %cst_41 : f32 to vector<64x128xf32>
    %113 = arith.maximumf %111, %112 : vector<64x128xf32>
    %cst_42 = arith.constant 0.000000e+00 : f32
    %114 = vector.shape_cast %80 : vector<64x1xi1> to vector<64x1xi1>
    %115 = vector.broadcast %114 : vector<64x1xi1> to vector<64x128xi1>
    %116 = vector.broadcast %cst_42 : f32 to vector<64x128xf32>
    %117 = arith.select %115, %113, %116 : vector<64x128xi1>, vector<64x128xf32>
    %c8_43 = arith.constant 8 : index
    %c0_44 = arith.constant 0 : index
    %118 = vector.load %arg4[%c8_43, %c0_44] : memref<80x128xf32, #tpu.memory_space<vmem>>, vector<64x128xf32>
    tpu.vector_store %arg4[%c8_43, %c0_44], %117 {strides = array<i32>} : memref<80x128xf32, #tpu.memory_space<vmem>>, vector<64x128xf32>,
    %c4 = arith.constant 4 : index
    %c0_45 = arith.constant 0 : index
    %119 = vector.load %arg4[%c4, %c0_45] : memref<80x128xf32, #tpu.memory_space<vmem>>, vector<64x128xf32>
    %c12 = arith.constant 12 : index
    %c0_46 = arith.constant 0 : index
    %120 = vector.load %arg4[%c12, %c0_46] : memref<80x128xf32, #tpu.memory_space<vmem>>, vector<64x128xf32>
    %c4_i32 = arith.constant 4 : i32
    %121 = vector.broadcast %c4_i32 : i32 to vector<64x1xi32>
    %122 = arith.cmpi sge, %4, %121 : vector<64x1xi32>
    %cst_47 = arith.constant 0.000000e+00 : f32
    %123 = vector.shape_cast %122 : vector<64x1xi1> to vector<64x1xi1>
    %124 = vector.broadcast %123 : vector<64x1xi1> to vector<64x128xi1>
    %125 = vector.broadcast %cst_47 : f32 to vector<64x128xf32>
    %126 = arith.select %124, %119, %125 : vector<64x128xi1>, vector<64x128xf32>
    %127 = tpu.concatenate %126, %117, %120 in 1 : vector<64x128xf32>, vector<64x128xf32>, vector<64x128xf32> -> vector<64x384xf32>
    %c2 = arith.constant 2 : index
    %c0_48 = arith.constant 0 : index
    %c0_49 = arith.constant 0 : index
    %128 = vector.load %arg1[%c2, %c0_48, %c0_49] : memref<8x384x128xf32, #tpu.memory_space<vmem>>, vector<1x384x128xf32>
    %129 = vector.shape_cast %128 : vector<1x384x128xf32> to vector<384x128xf32>
    %cst_50 = arith.constant dense<0.000000e+00> : vector<64x128xf32>
    %130 = tpu.matmul %127, %129, %cst_50 {dimension_numbers = #tpu.dot_dimension_numbers<[1], [0], [0], [1], [0, 0, 1, 1], [], []>} : vector<64x384xf32>, vector<384x128xf32>, vector<64x128xf32> -> vector<64x128xf32>
    %c2_51 = arith.constant 2 : index
    %c0_52 = arith.constant 0 : index
    %c0_53 = arith.constant 0 : index
    %131 = vector.load %arg2[%c2_51, %c0_52, %c0_53] : memref<8x8x128xf32, #tpu.memory_space<vmem>>, vector<1x8x128xf32>
    %132 = vector.shape_cast %131 : vector<1x8x128xf32> to vector<8x128xf32>
    %c7_i32 = arith.constant 7 : i32
    %133 = vector.broadcast %c7_i32 : i32 to vector<64x1xi32>
    %134 = arith.andi %2, %133 : vector<64x1xi32>
    %c0_i32_54 = arith.constant 0 : i32
    %135 = vector.broadcast %c0_i32_54 : i32 to vector<64x1xi32>
    %136 = arith.cmpi eq, %134, %135 : vector<64x1xi32>
    %137 = vector.extract_strided_slice %132 {offsets = [0, 0], sizes = [1, 128], strides = [1, 1]} : vector<8x128xf32> to vector<1x128xf32>
    %138 = vector.broadcast %137 : vector<1x128xf32> to vector<64x128xf32>
    %139 = arith.addf %130, %138 : vector<64x128xf32>
    %cst_55 = arith.constant 0.000000e+00 : f32
    %140 = vector.shape_cast %136 : vector<64x1xi1> to vector<64x1xi1>
    %141 = vector.broadcast %140 : vector<64x1xi1> to vector<64x128xi1>
    %142 = vector.broadcast %cst_55 : f32 to vector<64x128xf32>
    %143 = arith.select %141, %139, %142 : vector<64x128xi1>, vector<64x128xf32>
    %cst_56 = arith.constant dense<0.000000e+00> : vector<128xf32>
    %144 = vector.multi_reduction <add>, %143, %cst_56 [0] : vector<64x128xf32> to vector<128xf32>
    %145 = vector.shape_cast %144 : vector<128xf32> to vector<1x128xf32>
    %cst_57 = arith.constant 1.250000e-01 : f32
    %146 = vector.broadcast %cst_57 : f32 to vector<1x128xf32>
    %147 = arith.mulf %145, %146 : vector<1x128xf32>
    %148 = arith.mulf %143, %143 : vector<64x128xf32>
    %cst_58 = arith.constant dense<0.000000e+00> : vector<128xf32>
    %149 = vector.multi_reduction <add>, %148, %cst_58 [0] : vector<64x128xf32> to vector<128xf32>
    %150 = vector.shape_cast %149 : vector<128xf32> to vector<1x128xf32>
    %cst_59 = arith.constant 1.250000e-01 : f32
    %151 = vector.broadcast %cst_59 : f32 to vector<1x128xf32>
    %152 = arith.mulf %150, %151 : vector<1x128xf32>
    %153 = arith.mulf %147, %147 : vector<1x128xf32>
    %154 = arith.subf %152, %153 : vector<1x128xf32>
    %155 = vector.broadcast %147 : vector<1x128xf32> to vector<64x128xf32>
    %156 = arith.subf %143, %155 : vector<64x128xf32>
    %cst_60 = arith.constant 9.99999974E-6 : f32
    %157 = vector.broadcast %cst_60 : f32 to vector<1x128xf32>
    %158 = arith.addf %154, %157 : vector<1x128xf32>
    %159 = math.rsqrt %158 : vector<1x128xf32>
    %160 = vector.broadcast %159 : vector<1x128xf32> to vector<64x128xf32>
    %161 = arith.mulf %156, %160 : vector<64x128xf32>
    %162 = vector.extract_strided_slice %132 {offsets = [1, 0], sizes = [1, 128], strides = [1, 1]} : vector<8x128xf32> to vector<1x128xf32>
    %163 = vector.broadcast %162 : vector<1x128xf32> to vector<64x128xf32>
    %164 = arith.mulf %161, %163 : vector<64x128xf32>
    %165 = vector.extract_strided_slice %132 {offsets = [2, 0], sizes = [1, 128], strides = [1, 1]} : vector<8x128xf32> to vector<1x128xf32>
    %166 = vector.broadcast %165 : vector<1x128xf32> to vector<64x128xf32>
    %167 = arith.addf %164, %166 : vector<64x128xf32>
    %cst_61 = arith.constant 0.000000e+00 : f32
    %168 = vector.broadcast %cst_61 : f32 to vector<64x128xf32>
    %169 = arith.maximumf %167, %168 : vector<64x128xf32>
    %cst_62 = arith.constant 0.000000e+00 : f32
    %170 = vector.shape_cast %136 : vector<64x1xi1> to vector<64x1xi1>
    %171 = vector.broadcast %170 : vector<64x1xi1> to vector<64x128xi1>
    %172 = vector.broadcast %cst_62 : f32 to vector<64x128xf32>
    %173 = arith.select %171, %169, %172 : vector<64x128xi1>, vector<64x128xf32>
    %c8_63 = arith.constant 8 : index
    %c0_64 = arith.constant 0 : index
    %174 = vector.load %arg4[%c8_63, %c0_64] : memref<80x128xf32, #tpu.memory_space<vmem>>, vector<64x128xf32>
    tpu.vector_store %arg4[%c8_63, %c0_64], %173 {strides = array<i32>} : memref<80x128xf32, #tpu.memory_space<vmem>>, vector<64x128xf32>,
    %c0_65 = arith.constant 0 : index
    %c0_66 = arith.constant 0 : index
    %175 = vector.load %arg4[%c0_65, %c0_66] : memref<80x128xf32, #tpu.memory_space<vmem>>, vector<64x128xf32>
    %c16 = arith.constant 16 : index
    %c0_67 = arith.constant 0 : index
    %176 = vector.load %arg4[%c16, %c0_67] : memref<80x128xf32, #tpu.memory_space<vmem>>, vector<64x128xf32>
    %c8_i32 = arith.constant 8 : i32
    %177 = vector.broadcast %c8_i32 : i32 to vector<64x1xi32>
    %178 = arith.cmpi sge, %4, %177 : vector<64x1xi32>
    %cst_68 = arith.constant 0.000000e+00 : f32
    %179 = vector.shape_cast %178 : vector<64x1xi1> to vector<64x1xi1>
    %180 = vector.broadcast %179 : vector<64x1xi1> to vector<64x128xi1>
    %181 = vector.broadcast %cst_68 : f32 to vector<64x128xf32>
    %182 = arith.select %180, %175, %181 : vector<64x128xi1>, vector<64x128xf32>
    %183 = tpu.concatenate %182, %173, %176 in 1 : vector<64x128xf32>, vector<64x128xf32>, vector<64x128xf32> -> vector<64x384xf32>
    %c3 = arith.constant 3 : index
    %c0_69 = arith.constant 0 : index
    %c0_70 = arith.constant 0 : index
    %184 = vector.load %arg1[%c3, %c0_69, %c0_70] : memref<8x384x128xf32, #tpu.memory_space<vmem>>, vector<1x384x128xf32>
    %185 = vector.shape_cast %184 : vector<1x384x128xf32> to vector<384x128xf32>
    %cst_71 = arith.constant dense<0.000000e+00> : vector<64x128xf32>
    %186 = tpu.matmul %183, %185, %cst_71 {dimension_numbers = #tpu.dot_dimension_numbers<[1], [0], [0], [1], [0, 0, 1, 1], [], []>} : vector<64x384xf32>, vector<384x128xf32>, vector<64x128xf32> -> vector<64x128xf32>
    %c3_72 = arith.constant 3 : index
    %c0_73 = arith.constant 0 : index
    %c0_74 = arith.constant 0 : index
    %187 = vector.load %arg2[%c3_72, %c0_73, %c0_74] : memref<8x8x128xf32, #tpu.memory_space<vmem>>, vector<1x8x128xf32>
    %188 = vector.shape_cast %187 : vector<1x8x128xf32> to vector<8x128xf32>
    %c15_i32 = arith.constant 15 : i32
    %189 = vector.broadcast %c15_i32 : i32 to vector<64x1xi32>
    %190 = arith.andi %2, %189 : vector<64x1xi32>
    %c0_i32_75 = arith.constant 0 : i32
    %191 = vector.broadcast %c0_i32_75 : i32 to vector<64x1xi32>
    %192 = arith.cmpi eq, %190, %191 : vector<64x1xi32>
    %193 = vector.extract_strided_slice %188 {offsets = [0, 0], sizes = [1, 128], strides = [1, 1]} : vector<8x128xf32> to vector<1x128xf32>
    %194 = vector.broadcast %193 : vector<1x128xf32> to vector<64x128xf32>
    %195 = arith.addf %186, %194 : vector<64x128xf32>
    %cst_76 = arith.constant 0.000000e+00 : f32
    %196 = vector.shape_cast %192 : vector<64x1xi1> to vector<64x1xi1>
    %197 = vector.broadcast %196 : vector<64x1xi1> to vector<64x128xi1>
    %198 = vector.broadcast %cst_76 : f32 to vector<64x128xf32>
    %199 = arith.select %197, %195, %198 : vector<64x128xi1>, vector<64x128xf32>
    %c8_77 = arith.constant 8 : index
    %c0_78 = arith.constant 0 : index
    %200 = vector.load %arg4[%c8_77, %c0_78] : memref<80x128xf32, #tpu.memory_space<vmem>>, vector<64x128xf32>
    tpu.vector_store %arg4[%c8_77, %c0_78], %199 {strides = array<i32>} : memref<80x128xf32, #tpu.memory_space<vmem>>, vector<64x128xf32>,
    %c0_79 = arith.constant 0 : index
    %c0_80 = arith.constant 0 : index
    %201 = vector.load %arg4[%c0_79, %c0_80] : memref<80x128xf32, #tpu.memory_space<vmem>>, vector<64x128xf32>
    %c16_81 = arith.constant 16 : index
    %c0_82 = arith.constant 0 : index
    %202 = vector.load %arg4[%c16_81, %c0_82] : memref<80x128xf32, #tpu.memory_space<vmem>>, vector<64x128xf32>
    %c24_i32 = arith.constant 24 : i32
    %203 = vector.broadcast %c24_i32 : i32 to vector<64x1xi32>
    %204 = arith.cmpi slt, %4, %203 : vector<64x1xi32>
    %cst_83 = arith.constant 0.000000e+00 : f32
    %205 = vector.shape_cast %204 : vector<64x1xi1> to vector<64x1xi1>
    %206 = vector.broadcast %205 : vector<64x1xi1> to vector<64x128xi1>
    %207 = vector.broadcast %cst_83 : f32 to vector<64x128xf32>
    %208 = arith.select %206, %202, %207 : vector<64x128xi1>, vector<64x128xf32>
    %209 = tpu.concatenate %201, %199, %208 in 1 : vector<64x128xf32>, vector<64x128xf32>, vector<64x128xf32> -> vector<64x384xf32>
    %c4_84 = arith.constant 4 : index
    %c0_85 = arith.constant 0 : index
    %c0_86 = arith.constant 0 : index
    %210 = vector.load %arg1[%c4_84, %c0_85, %c0_86] : memref<8x384x128xf32, #tpu.memory_space<vmem>>, vector<1x384x128xf32>
    %211 = vector.shape_cast %210 : vector<1x384x128xf32> to vector<384x128xf32>
    %cst_87 = arith.constant dense<0.000000e+00> : vector<64x128xf32>
    %212 = tpu.matmul %209, %211, %cst_87 {dimension_numbers = #tpu.dot_dimension_numbers<[1], [0], [0], [1], [0, 0, 1, 1], [], []>} : vector<64x384xf32>, vector<384x128xf32>, vector<64x128xf32> -> vector<64x128xf32>
    %c4_88 = arith.constant 4 : index
    %c0_89 = arith.constant 0 : index
    %c0_90 = arith.constant 0 : index
    %213 = vector.load %arg2[%c4_88, %c0_89, %c0_90] : memref<8x8x128xf32, #tpu.memory_space<vmem>>, vector<1x8x128xf32>
    %214 = vector.shape_cast %213 : vector<1x8x128xf32> to vector<8x128xf32>
    %c7_i32_91 = arith.constant 7 : i32
    %215 = vector.broadcast %c7_i32_91 : i32 to vector<64x1xi32>
    %216 = arith.andi %2, %215 : vector<64x1xi32>
    %c0_i32_92 = arith.constant 0 : i32
    %217 = vector.broadcast %c0_i32_92 : i32 to vector<64x1xi32>
    %218 = arith.cmpi eq, %216, %217 : vector<64x1xi32>
    %219 = vector.extract_strided_slice %214 {offsets = [0, 0], sizes = [1, 128], strides = [1, 1]} : vector<8x128xf32> to vector<1x128xf32>
    %220 = vector.broadcast %219 : vector<1x128xf32> to vector<64x128xf32>
    %221 = arith.addf %212, %220 : vector<64x128xf32>
    %cst_93 = arith.constant 0.000000e+00 : f32
    %222 = vector.shape_cast %218 : vector<64x1xi1> to vector<64x1xi1>
    %223 = vector.broadcast %222 : vector<64x1xi1> to vector<64x128xi1>
    %224 = vector.broadcast %cst_93 : f32 to vector<64x128xf32>
    %225 = arith.select %223, %221, %224 : vector<64x128xi1>, vector<64x128xf32>
    %cst_94 = arith.constant dense<0.000000e+00> : vector<128xf32>
    %226 = vector.multi_reduction <add>, %225, %cst_94 [0] : vector<64x128xf32> to vector<128xf32>
    %227 = vector.shape_cast %226 : vector<128xf32> to vector<1x128xf32>
    %cst_95 = arith.constant 1.250000e-01 : f32
    %228 = vector.broadcast %cst_95 : f32 to vector<1x128xf32>
    %229 = arith.mulf %227, %228 : vector<1x128xf32>
    %230 = arith.mulf %225, %225 : vector<64x128xf32>
    %cst_96 = arith.constant dense<0.000000e+00> : vector<128xf32>
    %231 = vector.multi_reduction <add>, %230, %cst_96 [0] : vector<64x128xf32> to vector<128xf32>
    %232 = vector.shape_cast %231 : vector<128xf32> to vector<1x128xf32>
    %cst_97 = arith.constant 1.250000e-01 : f32
    %233 = vector.broadcast %cst_97 : f32 to vector<1x128xf32>
    %234 = arith.mulf %232, %233 : vector<1x128xf32>
    %235 = arith.mulf %229, %229 : vector<1x128xf32>
    %236 = arith.subf %234, %235 : vector<1x128xf32>
    %237 = vector.broadcast %229 : vector<1x128xf32> to vector<64x128xf32>
    %238 = arith.subf %225, %237 : vector<64x128xf32>
    %cst_98 = arith.constant 9.99999974E-6 : f32
    %239 = vector.broadcast %cst_98 : f32 to vector<1x128xf32>
    %240 = arith.addf %236, %239 : vector<1x128xf32>
    %241 = math.rsqrt %240 : vector<1x128xf32>
    %242 = vector.broadcast %241 : vector<1x128xf32> to vector<64x128xf32>
    %243 = arith.mulf %238, %242 : vector<64x128xf32>
    %244 = vector.extract_strided_slice %214 {offsets = [1, 0], sizes = [1, 128], strides = [1, 1]} : vector<8x128xf32> to vector<1x128xf32>
    %245 = vector.broadcast %244 : vector<1x128xf32> to vector<64x128xf32>
    %246 = arith.mulf %243, %245 : vector<64x128xf32>
    %247 = vector.extract_strided_slice %214 {offsets = [2, 0], sizes = [1, 128], strides = [1, 1]} : vector<8x128xf32> to vector<1x128xf32>
    %248 = vector.broadcast %247 : vector<1x128xf32> to vector<64x128xf32>
    %249 = arith.addf %246, %248 : vector<64x128xf32>
    %cst_99 = arith.constant 0.000000e+00 : f32
    %250 = vector.broadcast %cst_99 : f32 to vector<64x128xf32>
    %251 = arith.maximumf %249, %250 : vector<64x128xf32>
    %cst_100 = arith.constant 0.000000e+00 : f32
    %252 = vector.shape_cast %218 : vector<64x1xi1> to vector<64x1xi1>
    %253 = vector.broadcast %252 : vector<64x1xi1> to vector<64x128xi1>
    %254 = vector.broadcast %cst_100 : f32 to vector<64x128xf32>
    %255 = arith.select %253, %251, %254 : vector<64x128xi1>, vector<64x128xf32>
    %c8_101 = arith.constant 8 : index
    %c0_102 = arith.constant 0 : index
    %256 = vector.load %arg4[%c8_101, %c0_102] : memref<80x128xf32, #tpu.memory_space<vmem>>, vector<64x128xf32>
    tpu.vector_store %arg4[%c8_101, %c0_102], %255 {strides = array<i32>} : memref<80x128xf32, #tpu.memory_space<vmem>>, vector<64x128xf32>,
    %c4_103 = arith.constant 4 : index
    %c0_104 = arith.constant 0 : index
    %257 = vector.load %arg4[%c4_103, %c0_104] : memref<80x128xf32, #tpu.memory_space<vmem>>, vector<64x128xf32>
    %c12_105 = arith.constant 12 : index
    %c0_106 = arith.constant 0 : index
    %258 = vector.load %arg4[%c12_105, %c0_106] : memref<80x128xf32, #tpu.memory_space<vmem>>, vector<64x128xf32>
    %c28_i32 = arith.constant 28 : i32
    %259 = vector.broadcast %c28_i32 : i32 to vector<64x1xi32>
    %260 = arith.cmpi slt, %4, %259 : vector<64x1xi32>
    %cst_107 = arith.constant 0.000000e+00 : f32
    %261 = vector.shape_cast %260 : vector<64x1xi1> to vector<64x1xi1>
    %262 = vector.broadcast %261 : vector<64x1xi1> to vector<64x128xi1>
    %263 = vector.broadcast %cst_107 : f32 to vector<64x128xf32>
    %264 = arith.select %262, %258, %263 : vector<64x128xi1>, vector<64x128xf32>
    %265 = tpu.concatenate %257, %255, %264 in 1 : vector<64x128xf32>, vector<64x128xf32>, vector<64x128xf32> -> vector<64x384xf32>
    %c5 = arith.constant 5 : index
    %c0_108 = arith.constant 0 : index
    %c0_109 = arith.constant 0 : index
    %266 = vector.load %arg1[%c5, %c0_108, %c0_109] : memref<8x384x128xf32, #tpu.memory_space<vmem>>, vector<1x384x128xf32>
    %267 = vector.shape_cast %266 : vector<1x384x128xf32> to vector<384x128xf32>
    %cst_110 = arith.constant dense<0.000000e+00> : vector<64x128xf32>
    %268 = tpu.matmul %265, %267, %cst_110 {dimension_numbers = #tpu.dot_dimension_numbers<[1], [0], [0], [1], [0, 0, 1, 1], [], []>} : vector<64x384xf32>, vector<384x128xf32>, vector<64x128xf32> -> vector<64x128xf32>
    %c5_111 = arith.constant 5 : index
    %c0_112 = arith.constant 0 : index
    %c0_113 = arith.constant 0 : index
    %269 = vector.load %arg2[%c5_111, %c0_112, %c0_113] : memref<8x8x128xf32, #tpu.memory_space<vmem>>, vector<1x8x128xf32>
    %270 = vector.shape_cast %269 : vector<1x8x128xf32> to vector<8x128xf32>
    %c3_i32_114 = arith.constant 3 : i32
    %271 = vector.broadcast %c3_i32_114 : i32 to vector<64x1xi32>
    %272 = arith.andi %2, %271 : vector<64x1xi32>
    %c0_i32_115 = arith.constant 0 : i32
    %273 = vector.broadcast %c0_i32_115 : i32 to vector<64x1xi32>
    %274 = arith.cmpi eq, %272, %273 : vector<64x1xi32>
    %275 = vector.extract_strided_slice %270 {offsets = [0, 0], sizes = [1, 128], strides = [1, 1]} : vector<8x128xf32> to vector<1x128xf32>
    %276 = vector.broadcast %275 : vector<1x128xf32> to vector<64x128xf32>
    %277 = arith.addf %268, %276 : vector<64x128xf32>
    %cst_116 = arith.constant 0.000000e+00 : f32
    %278 = vector.shape_cast %274 : vector<64x1xi1> to vector<64x1xi1>
    %279 = vector.broadcast %278 : vector<64x1xi1> to vector<64x128xi1>
    %280 = vector.broadcast %cst_116 : f32 to vector<64x128xf32>
    %281 = arith.select %279, %277, %280 : vector<64x128xi1>, vector<64x128xf32>
    %cst_117 = arith.constant dense<0.000000e+00> : vector<128xf32>
    %282 = vector.multi_reduction <add>, %281, %cst_117 [0] : vector<64x128xf32> to vector<128xf32>
    %283 = vector.shape_cast %282 : vector<128xf32> to vector<1x128xf32>
    %cst_118 = arith.constant 6.250000e-02 : f32
    %284 = vector.broadcast %cst_118 : f32 to vector<1x128xf32>
    %285 = arith.mulf %283, %284 : vector<1x128xf32>
    %286 = arith.mulf %281, %281 : vector<64x128xf32>
    %cst_119 = arith.constant dense<0.000000e+00> : vector<128xf32>
    %287 = vector.multi_reduction <add>, %286, %cst_119 [0] : vector<64x128xf32> to vector<128xf32>
    %288 = vector.shape_cast %287 : vector<128xf32> to vector<1x128xf32>
    %cst_120 = arith.constant 6.250000e-02 : f32
    %289 = vector.broadcast %cst_120 : f32 to vector<1x128xf32>
    %290 = arith.mulf %288, %289 : vector<1x128xf32>
    %291 = arith.mulf %285, %285 : vector<1x128xf32>
    %292 = arith.subf %290, %291 : vector<1x128xf32>
    %293 = vector.broadcast %285 : vector<1x128xf32> to vector<64x128xf32>
    %294 = arith.subf %281, %293 : vector<64x128xf32>
    %cst_121 = arith.constant 9.99999974E-6 : f32
    %295 = vector.broadcast %cst_121 : f32 to vector<1x128xf32>
    %296 = arith.addf %292, %295 : vector<1x128xf32>
    %297 = math.rsqrt %296 : vector<1x128xf32>
    %298 = vector.broadcast %297 : vector<1x128xf32> to vector<64x128xf32>
    %299 = arith.mulf %294, %298 : vector<64x128xf32>
    %300 = vector.extract_strided_slice %270 {offsets = [1, 0], sizes = [1, 128], strides = [1, 1]} : vector<8x128xf32> to vector<1x128xf32>
    %301 = vector.broadcast %300 : vector<1x128xf32> to vector<64x128xf32>
    %302 = arith.mulf %299, %301 : vector<64x128xf32>
    %303 = vector.extract_strided_slice %270 {offsets = [2, 0], sizes = [1, 128], strides = [1, 1]} : vector<8x128xf32> to vector<1x128xf32>
    %304 = vector.broadcast %303 : vector<1x128xf32> to vector<64x128xf32>
    %305 = arith.addf %302, %304 : vector<64x128xf32>
    %cst_122 = arith.constant 0.000000e+00 : f32
    %306 = vector.broadcast %cst_122 : f32 to vector<64x128xf32>
    %307 = arith.maximumf %305, %306 : vector<64x128xf32>
    %cst_123 = arith.constant 0.000000e+00 : f32
    %308 = vector.shape_cast %274 : vector<64x1xi1> to vector<64x1xi1>
    %309 = vector.broadcast %308 : vector<64x1xi1> to vector<64x128xi1>
    %310 = vector.broadcast %cst_123 : f32 to vector<64x128xf32>
    %311 = arith.select %309, %307, %310 : vector<64x128xi1>, vector<64x128xf32>
    %c8_124 = arith.constant 8 : index
    %c0_125 = arith.constant 0 : index
    %312 = vector.load %arg4[%c8_124, %c0_125] : memref<80x128xf32, #tpu.memory_space<vmem>>, vector<64x128xf32>
    tpu.vector_store %arg4[%c8_124, %c0_125], %311 {strides = array<i32>} : memref<80x128xf32, #tpu.memory_space<vmem>>, vector<64x128xf32>,
    %c6_126 = arith.constant 6 : index
    %c0_127 = arith.constant 0 : index
    %313 = vector.load %arg4[%c6_126, %c0_127] : memref<80x128xf32, #tpu.memory_space<vmem>>, vector<64x128xf32>
    %c10_128 = arith.constant 10 : index
    %c0_129 = arith.constant 0 : index
    %314 = vector.load %arg4[%c10_128, %c0_129] : memref<80x128xf32, #tpu.memory_space<vmem>>, vector<64x128xf32>
    %c30_i32 = arith.constant 30 : i32
    %315 = vector.broadcast %c30_i32 : i32 to vector<64x1xi32>
    %316 = arith.cmpi slt, %4, %315 : vector<64x1xi32>
    %cst_130 = arith.constant 0.000000e+00 : f32
    %317 = vector.shape_cast %316 : vector<64x1xi1> to vector<64x1xi1>
    %318 = vector.broadcast %317 : vector<64x1xi1> to vector<64x128xi1>
    %319 = vector.broadcast %cst_130 : f32 to vector<64x128xf32>
    %320 = arith.select %318, %314, %319 : vector<64x128xi1>, vector<64x128xf32>
    %321 = tpu.concatenate %313, %311, %320 in 1 : vector<64x128xf32>, vector<64x128xf32>, vector<64x128xf32> -> vector<64x384xf32>
    %c6_131 = arith.constant 6 : index
    %c0_132 = arith.constant 0 : index
    %c0_133 = arith.constant 0 : index
    %322 = vector.load %arg1[%c6_131, %c0_132, %c0_133] : memref<8x384x128xf32, #tpu.memory_space<vmem>>, vector<1x384x128xf32>
    %323 = vector.shape_cast %322 : vector<1x384x128xf32> to vector<384x128xf32>
    %cst_134 = arith.constant dense<0.000000e+00> : vector<64x128xf32>
    %324 = tpu.matmul %321, %323, %cst_134 {dimension_numbers = #tpu.dot_dimension_numbers<[1], [0], [0], [1], [0, 0, 1, 1], [], []>} : vector<64x384xf32>, vector<384x128xf32>, vector<64x128xf32> -> vector<64x128xf32>
    %c6_135 = arith.constant 6 : index
    %c0_136 = arith.constant 0 : index
    %c0_137 = arith.constant 0 : index
    %325 = vector.load %arg2[%c6_135, %c0_136, %c0_137] : memref<8x8x128xf32, #tpu.memory_space<vmem>>, vector<1x8x128xf32>
    %326 = vector.shape_cast %325 : vector<1x8x128xf32> to vector<8x128xf32>
    %c1_i32_138 = arith.constant 1 : i32
    %327 = vector.broadcast %c1_i32_138 : i32 to vector<64x1xi32>
    %328 = arith.andi %2, %327 : vector<64x1xi32>
    %c0_i32_139 = arith.constant 0 : i32
    %329 = vector.broadcast %c0_i32_139 : i32 to vector<64x1xi32>
    %330 = arith.cmpi eq, %328, %329 : vector<64x1xi32>
    %331 = vector.extract_strided_slice %326 {offsets = [0, 0], sizes = [1, 128], strides = [1, 1]} : vector<8x128xf32> to vector<1x128xf32>
    %332 = vector.broadcast %331 : vector<1x128xf32> to vector<64x128xf32>
    %333 = arith.addf %324, %332 : vector<64x128xf32>
    %cst_140 = arith.constant 0.000000e+00 : f32
    %334 = vector.shape_cast %330 : vector<64x1xi1> to vector<64x1xi1>
    %335 = vector.broadcast %334 : vector<64x1xi1> to vector<64x128xi1>
    %336 = vector.broadcast %cst_140 : f32 to vector<64x128xf32>
    %337 = arith.select %335, %333, %336 : vector<64x128xi1>, vector<64x128xf32>
    %cst_141 = arith.constant dense<0.000000e+00> : vector<128xf32>
    %338 = vector.multi_reduction <add>, %337, %cst_141 [0] : vector<64x128xf32> to vector<128xf32>
    %339 = vector.shape_cast %338 : vector<128xf32> to vector<1x128xf32>
    %cst_142 = arith.constant 3.125000e-02 : f32
    %340 = vector.broadcast %cst_142 : f32 to vector<1x128xf32>
    %341 = arith.mulf %339, %340 : vector<1x128xf32>
    %342 = arith.mulf %337, %337 : vector<64x128xf32>
    %cst_143 = arith.constant dense<0.000000e+00> : vector<128xf32>
    %343 = vector.multi_reduction <add>, %342, %cst_143 [0] : vector<64x128xf32> to vector<128xf32>
    %344 = vector.shape_cast %343 : vector<128xf32> to vector<1x128xf32>
    %cst_144 = arith.constant 3.125000e-02 : f32
    %345 = vector.broadcast %cst_144 : f32 to vector<1x128xf32>
    %346 = arith.mulf %344, %345 : vector<1x128xf32>
    %347 = arith.mulf %341, %341 : vector<1x128xf32>
    %348 = arith.subf %346, %347 : vector<1x128xf32>
    %349 = vector.broadcast %341 : vector<1x128xf32> to vector<64x128xf32>
    %350 = arith.subf %337, %349 : vector<64x128xf32>
    %cst_145 = arith.constant 9.99999974E-6 : f32
    %351 = vector.broadcast %cst_145 : f32 to vector<1x128xf32>
    %352 = arith.addf %348, %351 : vector<1x128xf32>
    %353 = math.rsqrt %352 : vector<1x128xf32>
    %354 = vector.broadcast %353 : vector<1x128xf32> to vector<64x128xf32>
    %355 = arith.mulf %350, %354 : vector<64x128xf32>
    %356 = vector.extract_strided_slice %326 {offsets = [1, 0], sizes = [1, 128], strides = [1, 1]} : vector<8x128xf32> to vector<1x128xf32>
    %357 = vector.broadcast %356 : vector<1x128xf32> to vector<64x128xf32>
    %358 = arith.mulf %355, %357 : vector<64x128xf32>
    %359 = vector.extract_strided_slice %326 {offsets = [2, 0], sizes = [1, 128], strides = [1, 1]} : vector<8x128xf32> to vector<1x128xf32>
    %360 = vector.broadcast %359 : vector<1x128xf32> to vector<64x128xf32>
    %361 = arith.addf %358, %360 : vector<64x128xf32>
    %cst_146 = arith.constant 0.000000e+00 : f32
    %362 = vector.broadcast %cst_146 : f32 to vector<64x128xf32>
    %363 = arith.maximumf %361, %362 : vector<64x128xf32>
    %cst_147 = arith.constant 0.000000e+00 : f32
    %364 = vector.shape_cast %330 : vector<64x1xi1> to vector<64x1xi1>
    %365 = vector.broadcast %364 : vector<64x1xi1> to vector<64x128xi1>
    %366 = vector.broadcast %cst_147 : f32 to vector<64x128xf32>
    %367 = arith.select %365, %363, %366 : vector<64x128xi1>, vector<64x128xf32>
    %c8_148 = arith.constant 8 : index
    %c0_149 = arith.constant 0 : index
    %368 = vector.load %arg4[%c8_148, %c0_149] : memref<80x128xf32, #tpu.memory_space<vmem>>, vector<64x128xf32>
    tpu.vector_store %arg4[%c8_148, %c0_149], %367 {strides = array<i32>} : memref<80x128xf32, #tpu.memory_space<vmem>>, vector<64x128xf32>,
    %c7_150 = arith.constant 7 : index
    %c0_151 = arith.constant 0 : index
    %369 = vector.load %arg4[%c7_150, %c0_151] : memref<80x128xf32, #tpu.memory_space<vmem>>, vector<64x128xf32>
    %c9_152 = arith.constant 9 : index
    %c0_153 = arith.constant 0 : index
    %370 = vector.load %arg4[%c9_152, %c0_153] : memref<80x128xf32, #tpu.memory_space<vmem>>, vector<64x128xf32>
    %c31_i32_154 = arith.constant 31 : i32
    %371 = vector.broadcast %c31_i32_154 : i32 to vector<64x1xi32>
    %372 = arith.cmpi slt, %4, %371 : vector<64x1xi32>
    %cst_155 = arith.constant 0.000000e+00 : f32
    %373 = vector.shape_cast %372 : vector<64x1xi1> to vector<64x1xi1>
    %374 = vector.broadcast %373 : vector<64x1xi1> to vector<64x128xi1>
    %375 = vector.broadcast %cst_155 : f32 to vector<64x128xf32>
    %376 = arith.select %374, %370, %375 : vector<64x128xi1>, vector<64x128xf32>
    %377 = tpu.concatenate %369, %367, %376 in 1 : vector<64x128xf32>, vector<64x128xf32>, vector<64x128xf32> -> vector<64x384xf32>
    %c7_156 = arith.constant 7 : index
    %c0_157 = arith.constant 0 : index
    %c0_158 = arith.constant 0 : index
    %378 = vector.load %arg1[%c7_156, %c0_157, %c0_158] : memref<8x384x128xf32, #tpu.memory_space<vmem>>, vector<1x384x128xf32>
    %379 = vector.shape_cast %378 : vector<1x384x128xf32> to vector<384x128xf32>
    %cst_159 = arith.constant dense<0.000000e+00> : vector<64x128xf32>
    %380 = tpu.matmul %377, %379, %cst_159 {dimension_numbers = #tpu.dot_dimension_numbers<[1], [0], [0], [1], [0, 0, 1, 1], [], []>} : vector<64x384xf32>, vector<384x128xf32>, vector<64x128xf32> -> vector<64x128xf32>
    %c7_160 = arith.constant 7 : index
    %c0_161 = arith.constant 0 : index
    %c0_162 = arith.constant 0 : index
    %381 = vector.load %arg2[%c7_160, %c0_161, %c0_162] : memref<8x8x128xf32, #tpu.memory_space<vmem>>, vector<1x8x128xf32>
    %382 = vector.shape_cast %381 : vector<1x8x128xf32> to vector<8x128xf32>
    %c0_i32_163 = arith.constant 0 : i32
    %383 = vector.broadcast %c0_i32_163 : i32 to vector<64x1xi32>
    %384 = arith.andi %2, %383 : vector<64x1xi32>
    %c0_i32_164 = arith.constant 0 : i32
    %385 = vector.broadcast %c0_i32_164 : i32 to vector<64x1xi32>
    %386 = arith.cmpi eq, %384, %385 : vector<64x1xi32>
    %387 = vector.extract_strided_slice %382 {offsets = [0, 0], sizes = [1, 128], strides = [1, 1]} : vector<8x128xf32> to vector<1x128xf32>
    %388 = vector.broadcast %387 : vector<1x128xf32> to vector<64x128xf32>
    %389 = arith.addf %380, %388 : vector<64x128xf32>
    %cst_165 = arith.constant 0.000000e+00 : f32
    %390 = vector.shape_cast %386 : vector<64x1xi1> to vector<64x1xi1>
    %391 = vector.broadcast %390 : vector<64x1xi1> to vector<64x128xi1>
    %392 = vector.broadcast %cst_165 : f32 to vector<64x128xf32>
    %393 = arith.select %391, %389, %392 : vector<64x128xi1>, vector<64x128xf32>
    %c0_166 = arith.constant 0 : index
    %c0_167 = arith.constant 0 : index
    %394 = vector.load %arg3[%c0_166, %c0_167] : memref<64x128xf32, #tpu.memory_space<vmem>>, vector<64x128xf32>
    tpu.vector_store %arg3[%c0_166, %c0_167], %393 {strides = array<i32>} : memref<64x128xf32, #tpu.memory_space<vmem>>, vector<64x128xf32>,
    return
  }
}

</mosaic_0001>

<bundles_post_ra>
// kernel: _forward.1
= control target key start
LH: loop header
LB: loop body
LE: loop exit
PB: predicated region body
PF: predicated region fallthrough
CT: control target
= control target key end

     0   :  { %8 = vsyncpa [#allocation4], 0  ;;  %s5989_s0 = inlined_call_operand.vmem [shape: f32[64,128], index: 0, kind: input, shape index: {}]   ;;  %s5990_s1 = inlined_call_operand.hbm [shape: f32[8,384,128], index: 1, kind: input, shape index: {}]   ;;  %s5991_s2 = inlined_call_operand.hbm [shape: f32[8,8,128], index: 2, kind: input, shape index: {}]   ;;  %s5992_s3 = inlined_call_operand.vmem [shape: f32[64,128], index: 3, kind: output, shape index: {}]  }
   0x1   :  { %9 = vsyncpa [#allocation6], 0  ;;  %s5056_s12 = smov [#allocation3]   ;;  %s5008_s16 = scalar_lea.hbm %s5990_s1, 49152 }
   0x2   :  { %s17_s13 = sshll.u32 %s5056_s12, 4  ;;  %p5009_p0 = scmp.ne.s32.totalorder %s5990_s1, %s5008_s16  ;;  %s18_s13 = int_to_ptr.vmem [resolvable:$true] %s17_s13 }
   0x3   :  { %p5012_p1 = scmp.lt.u32.totalorder %s5008_s16, %s5990_s1 }
   0x5   :  { %p5014_p2 = pnand %p5012_p1, %p5009_p0 }
   0x7   :  { %5017 = shalt.err (!%p5014_p2)
}
   0x8   :  { %s5018_s21 = scalar_lea.vmem %s18_s13, 49152  ;;  %p5023_p4 = scmp.lt.s32.totalorder %s18_s13, %s18_s13 }
   0x9   :  { %p5019_p3 = scmp.ne.s32.totalorder %s18_s13, %s5018_s21  ;;  %p5024_p5 = scmp.lt.s32.totalorder %s5018_s21, %s5018_s21 }
   0xb   :  { %p5025_p6 = por %p5024_p5, %p5023_p4 }
   0xd   :  { %p5026_p7 = pnand %p5025_p6, %p5019_p3 }
   0xf   :  { %5029 = shalt.err (!%p5026_p7)
}
  0x10   :  { %s5057_s22 = smov 128   ;;  %s5058_s23 = smov 8  }
  0x11   :  { %23 = dma.hbm_to_vmem [thread:$0]  %s5990_s1, 49152, %s18_s13, [#allocation4], %s5057_s22, %s5057_s22, %s5058_s23  }
  0x12   :  { %s5059_s26 = smov [#allocation5]   ;;  %s5030_s30 = scalar_lea.hbm %s5991_s2, 1024 }
  0x13   :  { %s29_s27 = sshll.u32 %s5059_s26, 4  ;;  %p5031_p8 = scmp.ne.s32.totalorder %s5991_s2, %s5030_s30  ;;  %s30_s27 = int_to_ptr.vmem [resolvable:$true] %s29_s27 }
  0x14   :  { %p5034_p9 = scmp.lt.u32.totalorder %s5030_s30, %s5991_s2 }
  0x16   :  { %p5036_p10 = pnand %p5034_p9, %p5031_p8 }
  0x18   :  { %5039 = shalt.err (!%p5036_p10)
}
  0x19   :  { %s5040_s8 = scalar_lea.vmem %s30_s27, 1024  ;;  %p5045_p12 = scmp.lt.s32.totalorder %s30_s27, %s30_s27 }
  0x1a   :  { %p5041_p11 = scmp.ne.s32.totalorder %s30_s27, %s5040_s8  ;;  %p5046_p13 = scmp.lt.s32.totalorder %s5040_s8, %s5040_s8 }
  0x1c   :  { %p5047_p0 = por %p5046_p13, %p5045_p12 }
  0x1e   :  { %p5048_p1 = pnand %p5047_p0, %p5041_p11 }
  0x20   :  { %5051 = shalt.err (!%p5048_p1)
}
  0x21   :  { %35 = dma.hbm_to_vmem [thread:$0]  %s5991_s2, 1024, %s30_s27, [#allocation6], %s5057_s22, %s5057_s22, %s5058_s23  }
  0x22   :  { %5052 = dma.done.wait [#allocation4], 49152  }
  0x23   :  { %5053 = vsyncadd [#allocation4], 4294918144 }
  0x24   :  { %5054 = dma.done.wait [#allocation6], 1024  }
  0x25   :  { %5055 = vsyncadd [#allocation6], 4294966272  ;;  %v5060_v0 = vmov 0.0   ;;  %v149_v1 = vld [vmem:[#allocation3 + $0x80] sm:$0xff]  ;;  %v150_v2 = vld [vmem:[#allocation3 + $0x88] sm:$0xff] }
  0x26   :  { %42 = vst [vmem:[#allocation2] sm:$0xff] %v5060_v0  ;;  %51 = vst [vmem:[#allocation2 + $0x48] sm:$0xff] %v5060_v0  ;;  %v133_v3 = vld [vmem:[#allocation3] sm:$0xff]  ;;  %v4459_v4 = vpack.c.bf16 %v150_v2, %v149_v1  ;;  %v134_v5 = vld [vmem:[#allocation3 + $0x8] sm:$0xff] }
  0x27   :  { %v151_v6 = vld [vmem:[#allocation3 + $0x90] sm:$0xff]  ;;  %v152_v7 = vld [vmem:[#allocation3 + $0x98] sm:$0xff]  ;;  %v4461_v8 = vpack.c.bf16 %v134_v5, %v133_v3  ;;  %v165_v10 = vld [vmem:[#allocation3 + $0x100] sm:$0xff]  ;;  %v52_v3 = vlaneseq }
  0x28   :  { %v4463_v9 = vpack.c.bf16 %v152_v7, %v151_v6  ;;  %v166_v11 = vld [vmem:[#allocation3 + $0x108] sm:$0xff]  ;;  %v135_v12 = vld [vmem:[#allocation3 + $0x10] sm:$0xff]  ;;  %4460 = vmatprep.subr.bf16.mxu0 %v4459_v4  ;;  %v136_v14 = vld [vmem:[#allocation3 + $0x18] sm:$0xff] }
  0x29   :  { %v4491_v13 = vpack.c.bf16 %v166_v11, %v165_v10  ;;  %v153_v15 = vld [vmem:[#allocation3 + $0xa0] sm:$0xff]  ;;  %v154_v16 = vld [vmem:[#allocation3 + $0xa8] sm:$0xff]  ;;  %4462 = vmatpush3.bf16.msra.mxu0 %v4461_v8  ;;  %v4465_v17 = vpack.c.bf16 %v136_v14, %v135_v12  ;;  %v167_v18 = vld [vmem:[#allocation3 + $0x110] sm:$0xff]  ;;  %v5147_v11 = vshrl.u32 %v52_v3, 7 }
  0x2a   :  { %v168_v19 = vld [vmem:[#allocation3 + $0x118] sm:$0xff]  ;;  %4464 = vmatprep.subr.bf16.mxu0 %v4463_v9  ;;  %v4467_v20 = vpack.c.bf16 %v154_v16, %v153_v15  ;;  %v137_v22 = vld [vmem:[#allocation3 + $0x20] sm:$0xff]  ;;  %v138_v23 = vld [vmem:[#allocation3 + $0x28] sm:$0xff] }
  0x2b   :  { %4492 = vmatprep.subr.bf16.mxu1 %v4491_v13  ;;  %v4495_v21 = vpack.c.bf16 %v168_v19, %v167_v18  ;;  %v155_v24 = vld [vmem:[#allocation3 + $0xb0] sm:$0xff]  ;;  %v156_v25 = vld [vmem:[#allocation3 + $0xb8] sm:$0xff]  ;;  %v169_v26 = vld [vmem:[#allocation3 + $0x120] sm:$0xff]  ;;  %v4469_v29 = vpack.c.bf16 %v138_v23, %v137_v22 }
  0x2c   :  { %4494 = vmatpush3.bf16.msra.mxu1 %v4491_v13  ;;  %v170_v27 = vld [vmem:[#allocation3 + $0x128] sm:$0xff]  ;;  %v171_v30 = vld [vmem:[#allocation3 + $0x130] sm:$0xff]  ;;  %v172_v31 = vld [vmem:[#allocation3 + $0x138] sm:$0xff]  ;;  %v4471_v32 = vpack.c.bf16 %v156_v25, %v155_v24 }
  0x2d   :  { %4496 = vmatprep.subr.bf16.mxu1 %v4495_v21  ;;  %v4499_v28 = vpack.c.bf16 %v170_v27, %v169_v26  ;;  %4466 = vmatpush3.bf16.msra.mxu0 %v4465_v17  ;;  %v139_v33 = vld [vmem:[#allocation3 + $0x30] sm:$0xff]  ;;  %v140_v34 = vld [vmem:[#allocation3 + $0x38] sm:$0xff]  ;;  %v157_v35 = vld [vmem:[#allocation3 + $0xc0] sm:$0xff]  ;;  %v4503_v37 = vpack.c.bf16 %v172_v31, %v171_v30 }
  0x2e   :  { %4468 = vmatprep.subr.bf16.mxu0 %v4467_v20  ;;  %v158_v36 = vld [vmem:[#allocation3 + $0xc8] sm:$0xff]  ;;  %v4473_v38 = vpack.c.bf16 %v140_v34, %v139_v33  ;;  %v173_v39 = vld [vmem:[#allocation3 + $0x140] sm:$0xff]  ;;  %v159_v44 = vld [vmem:[#allocation3 + $0xd0] sm:$0xff]  ;;  %v5150_v20 = vand.u32 31, %v5147_v11 }
  0x2f   :  { %v174_v40 = vld [vmem:[#allocation3 + $0x148] sm:$0xff]  ;;  %v4475_v41 = vpack.c.bf16 %v158_v36, %v157_v35  ;;  %v141_v42 = vld [vmem:[#allocation3 + $0x40] sm:$0xff]  ;;  %v160_v45 = vld [vmem:[#allocation3 + $0xd8] sm:$0xff] }
  0x30   :  { %4498 = vmatpush3.bf16.msra.mxu1 %v4495_v21  ;;  %v142_v43 = vld [vmem:[#allocation3 + $0x48] sm:$0xff]  ;;  %v4507_v46 = vpack.c.bf16 %v174_v40, %v173_v39  ;;  %v143_v47 = vld [vmem:[#allocation3 + $0x50] sm:$0xff]  ;;  %v144_v48 = vld [vmem:[#allocation3 + $0x58] sm:$0xff]  ;;  %v4479_v56 = vpack.c.bf16 %v160_v45, %v159_v44  ;;  %vm101_vm0 = vcmp.ge.s32.totalorder %v5150_v20, 1  ;;  %vm556_vm10 = vcmp.ge.s32.totalorder %v5150_v20, 2 }
  0x31   :  { %4500 = vmatprep.subr.bf16.mxu1 %v4499_v28  ;;  %4470 = vmatpush3.bf16.msra.mxu0 %v4469_v29  ;;  %v175_v49 = vld [vmem:[#allocation3 + $0x150] sm:$0xff]  ;;  %v4477_v51 = vpack.c.bf16 %v142_v43, %v141_v42  ;;  %v161_v52 = vld [vmem:[#allocation3 + $0xe0] sm:$0xff]  ;;  %v176_v53 = vld [vmem:[#allocation3 + $0x158] sm:$0xff]  ;;  %v4481_v0 = vpack.c.bf16 %v144_v48, %v143_v47 }
  0x32   :  { %4472 = vmatprep.subr.bf16.mxu0 %v4471_v32  ;;  %v69_v50 = vld [vmem:[%s5989_s0] sm:$0xff]  ;;  %v70_v54 = vld [vmem:[%s5989_s0 + $0x8] sm:$0xff]  ;;  %v5114_v55 = vld [vmem:[%s5989_s0 + $0x10] sm:$0xff]  ;;  %v4511_v63 = vpack.c.bf16 %v176_v53, %v175_v49 }
  0x33   :  { %77 = vst [vmem:[#allocation2 + $0x8] sm:$0xff] %v69_v50  ;;  %266 = vmatprep.mubr.f32.mxu0 %v69_v50  ;;  %78 = vst [vmem:[#allocation2 + $0x10] sm:$0xff] %v70_v54  ;;  %v5120_v57 = vld [vmem:[%s5989_s0 + $0x18] sm:$0xff]  ;;  %v5125_v58 = vld [vmem:[%s5989_s0 + $0x20] sm:$0xff] }
  0x34   :  { %4502 = vmatpush3.bf16.msra.mxu1 %v4499_v28  ;;  %79 = vst [vmem:[#allocation2 + $0x18] sm:$0xff] %v5114_v55  ;;  %v5130_v59 = vld [vmem:[%s5989_s0 + $0x28] sm:$0xff]  ;;  %v162_v60 = vld [vmem:[#allocation3 + $0xe8] sm:$0xff]  ;;  %80 = vst [vmem:[#allocation2 + $0x20] sm:$0xff] %v5120_v57  ;;  %v5155_v28 = vadd.s32 32, %v5147_v11 }
  0x35   :  { %4504 = vmatprep.subr.bf16.mxu1 %v4503_v37  ;;  %4474 = vmatpush3.bf16.msra.mxu0 %v4473_v38  ;;  %81 = vst [vmem:[#allocation2 + $0x28] sm:$0xff] %v5125_v58  ;;  %v5137_v61 = vld [vmem:[%s5989_s0 + $0x30] sm:$0xff]  ;;  %82 = vst [vmem:[#allocation2 + $0x30] sm:$0xff] %v5130_v59  ;;  %v5143_v62 = vld [vmem:[%s5989_s0 + $0x38] sm:$0xff]  ;;  %v4483_v4 = vpack.c.bf16 %v162_v60, %v161_v52 }
  0x36   :  { %4476 = vmatprep.subr.bf16.mxu0 %v4475_v41  ;;  %83 = vst [vmem:[#allocation2 + $0x38] sm:$0xff] %v5137_v61  ;;  %84 = vst [vmem:[#allocation2 + $0x40] sm:$0xff] %v5143_v62  ;;  %v177_v1 = vld [vmem:[#allocation3 + $0x160] sm:$0xff]  ;;  %v178_v2 = vld [vmem:[#allocation3 + $0x168] sm:$0xff]  ;;  %v5159_v32 = vand.u32 31, %v5155_v28 }
  0x37   :  { %v145_v5 = vld [vmem:[#allocation3 + $0x60] sm:$0xff]  ;;  %v146_v6 = vld [vmem:[#allocation3 + $0x68] sm:$0xff]  ;;  %v163_v7 = vld [vmem:[#allocation3 + $0xf0] sm:$0xff]  ;;  %v4515_v9 = vpack.c.bf16 %v178_v2, %v177_v1 }
  0x38   :  { %4506 = vmatpush3.bf16.msra.mxu1 %v4503_v37  ;;  %v164_v8 = vld [vmem:[#allocation3 + $0xf8] sm:$0xff]  ;;  %v4485_v10 = vpack.c.bf16 %v146_v6, %v145_v5  ;;  %v179_v12 = vld [vmem:[#allocation3 + $0x170] sm:$0xff]  ;;  %vm105_vm1 = vcmp.ge.s32.totalorder %v5159_v32, 1  ;;  %v605_v38 = vld [vmem:[#allocation3 + $0x200] sm:$0xff]  ;;  %vm560_vm11 = vcmp.ge.s32.totalorder %v5159_v32, 2 }
  0x39   :  { %4508 = vmatprep.subr.bf16.mxu1 %v4507_v46  ;;  %4478 = vmatpush3.bf16.msra.mxu0 %v4477_v51  ;;  %v180_v13 = vld [vmem:[#allocation3 + $0x178] sm:$0xff]  ;;  %v4487_v15 = vpack.c.bf16 %v164_v8, %v163_v7  ;;  %v147_v16 = vld [vmem:[#allocation3 + $0x70] sm:$0xff]  ;;  %v606_v39 = vld [vmem:[#allocation3 + $0x208] sm:$0xff] }
  0x3a   :  { %4480 = vmatprep.subr.bf16.mxu0 %v4479_v56  ;;  %v93_v14 = vld [vmem:[#allocation2 + $0x9] sm:$0xff]  ;;  %v4519_v18 = vpack.c.bf16 %v180_v13, %v179_v12  ;;  %v4523_v40 = vpack.c.bf16 %v606_v39, %v605_v38  ;;  %v590_v42 = vld [vmem:[#allocation3 + $0x188] sm:$0xff]  ;;  %v607_v47 = vld [vmem:[#allocation3 + $0x210] sm:$0xff] }
  0x3b   :  { %v148_v17 = vld [vmem:[#allocation3 + $0x78] sm:$0xff]  ;;  %4139 = vmatprep.mubr.f32.mxu1 %v93_v14  ;;  %v94_v22 = vld [vmem:[#allocation2 + $0x11] sm:$0xff]  ;;  %v95_v23 = vld [vmem:[#allocation2 + $0x19] sm:$0xff] }
  0x3c   :  { %4510 = vmatpush3.bf16.msra.mxu1 %v4507_v46  ;;  %v4489_v19 = vpack.c.bf16 %v148_v17, %v147_v16  ;;  %v85_v21 = vld [vmem:[#allocation2 + $0x7] sm:$0xff]  ;;  %v86_v24 = vld [vmem:[#allocation2 + $0xf] sm:$0xff]  ;;  %v87_v27 = vld [vmem:[#allocation2 + $0x17] sm:$0xff] }
  0x3d   :  { %4512 = vmatprep.subr.bf16.mxu1 %v4511_v63  ;;  %4482 = vmatpush3.bf16.msra.mxu0 %v4481_v0  ;;  %v96_v25 = vld [vmem:[#allocation2 + $0x21] sm:$0xff]  ;;  %v97_v26 = vld [vmem:[#allocation2 + $0x29] sm:$0xff]  ;;  %v98_v29 = vld [vmem:[#allocation2 + $0x31] sm:$0xff] }
  0x3e   :  { %4484 = vmatprep.subr.bf16.mxu0 %v4483_v4  ;;  %v99_v30 = vld [vmem:[#allocation2 + $0x39] sm:$0xff]  ;;  %v100_v33 = vld [vmem:[#allocation2 + $0x41] sm:$0xff]  ;;  %v90_v35 = vld [vmem:[#allocation2 + $0x2f] sm:$0xff] }
  0x3f   :  { %v88_v31 = vld [vmem:[#allocation2 + $0x1f] sm:$0xff]  ;;  %v89_v34 = vld [vmem:[#allocation2 + $0x27] sm:$0xff]  ;;  %v91_v36 = vld [vmem:[#allocation2 + $0x37] sm:$0xff] }
  0x40   :  { %4514 = vmatpush3.bf16.msra.mxu1 %v4511_v63  ;;  %v92_v37 = vld [vmem:[#allocation2 + $0x3f] sm:$0xff]  ;;  %v589_v41 = vld [vmem:[#allocation3 + $0x180] sm:$0xff]  ;;  %v608_v48 = vld [vmem:[#allocation3 + $0x218] sm:$0xff] }
  0x41   :  { %4516 = vmatprep.subr.bf16.mxu1 %v4515_v9  ;;  %4486 = vmatpush3.bf16.msra.mxu0 %v4485_v10  ;;  %v621_v43 = vld [vmem:[#allocation3 + $0x280] sm:$0xff]  ;;  %v4525_v44 = vpack.c.bf16 %v590_v42, %v589_v41  ;;  %v622_v45 = vld [vmem:[#allocation3 + $0x288] sm:$0xff]  ;;  %v4527_v49 = vpack.c.bf16 %v608_v48, %v607_v47  ;;  %v591_v50 = vld [vmem:[#allocation3 + $0x190] sm:$0xff] }
  0x42   :  { %4488 = vmatprep.subr.bf16.mxu0 %v4487_v15  ;;  %v4555_v46 = vpack.c.bf16 %v622_v45, %v621_v43  ;;  %v592_v51 = vld [vmem:[#allocation3 + $0x198] sm:$0xff]  ;;  %v623_v52 = vld [vmem:[#allocation3 + $0x290] sm:$0xff]  ;;  %v609_v56 = vld [vmem:[#allocation3 + $0x220] sm:$0xff] }
  0x43   :  { %v4529_v53 = vpack.c.bf16 %v592_v51, %v591_v50  ;;  %v594_v60 = vld [vmem:[#allocation3 + $0x1a8] sm:$0xff]  ;;  %v611_v1 = vld [vmem:[#allocation3 + $0x230] sm:$0xff]  ;;  %v612_v2 = vld [vmem:[#allocation3 + $0x238] sm:$0xff]  ;;  %v5167_v50 = vsub.s32 0, %v5147_v11 }
  0x44   :  { %4518 = vmatpush3.bf16.msra.mxu1 %v4515_v9  ;;  %v626_v63 = vld [vmem:[#allocation3 + $0x2a8] sm:$0xff]  ;;  %v4535_v3 = vpack.c.bf16 %v612_v2, %v611_v1  ;;  %v595_v4 = vld [vmem:[#allocation3 + $0x1b0] sm:$0xff]  ;;  %v596_v5 = vld [vmem:[#allocation3 + $0x1b8] sm:$0xff] }
  0x45   :  { %4520 = vmatprep.subr.bf16.mxu1 %v4519_v18  ;;  %4490 = vmatpush3.bf16.msra.mxu0 %v4489_v19  ;;  %v627_v6 = vld [vmem:[#allocation3 + $0x2b0] sm:$0xff]  ;;  %v4537_v7 = vpack.c.bf16 %v596_v5, %v595_v4  ;;  %v628_v8 = vld [vmem:[#allocation3 + $0x2b8] sm:$0xff]  ;;  %v613_v10 = vld [vmem:[#allocation3 + $0x240] sm:$0xff]  ;;  %v6017_v4 = vmov 0 }
  0x46   :  { %4524 = vmatprep.subr.bf16.mxu0 %v4523_v40  ;;  %v4567_v9 = vpack.c.bf16 %v628_v8, %v627_v6  ;;  %v614_v12 = vld [vmem:[#allocation3 + $0x248] sm:$0xff]  ;;  %v597_v14 = vld [vmem:[#allocation3 + $0x1c0] sm:$0xff]  ;;  %v619_v40 = vld [vmem:[#allocation3 + $0x270] sm:$0xff] }
  0x47   :  { %v4539_v13 = vpack.c.bf16 %v614_v12, %v613_v10  ;;  %v598_v15 = vld [vmem:[#allocation3 + $0x1c8] sm:$0xff]  ;;  %v629_v16 = vld [vmem:[#allocation3 + $0x2c0] sm:$0xff]  ;;  %v620_v41 = vld [vmem:[#allocation3 + $0x278] sm:$0xff]  ;;  %v5195_v12 = vadd.s32 24, %v5147_v11 }
  0x48   :  { %4522 = vmatpush3.bf16.msra.mxu1 %v4519_v18  ;;  %3403 = vmatmul.mubr.msk.f32.vlgmr.msra.gmra.mrb[0].mxu0 %vm101_vm0, %v85_v21  ;;  %v4541_v17 = vpack.c.bf16 %v598_v15, %v597_v14  ;;  %v630_v18 = vld [vmem:[#allocation3 + $0x2c8] sm:$0xff]  ;;  %v615_v21 = vld [vmem:[#allocation3 + $0x250] sm:$0xff]  ;;  %v4551_v43 = vpack.c.bf16 %v620_v41, %v619_v40  ;;  %v604_v45 = vld [vmem:[#allocation3 + $0x1f8] sm:$0xff] }
  0x49   :  { %271 = vmatprep.mubr.f32.mxu0 %v70_v54  ;;  %4526 = vmatpush3.bf16.msra.mxu0 %v4525_v44  ;;  %v624_v54 = vld [vmem:[#allocation3 + $0x298] sm:$0xff]  ;;  %v4571_v19 = vpack.c.bf16 %v630_v18, %v629_v16  ;;  %v634_v39 = vld [vmem:[#allocation3 + $0x2e8] sm:$0xff]  ;;  %v603_v44 = vld [vmem:[#allocation3 + $0x1f0] sm:$0xff] }
  0x4a   :  { %4556 = vmatprep.subr.bf16.mxu1 %v4555_v46  ;;  %4528 = vmatprep.subr.bf16.mxu0 %v4527_v49  ;;  %v4553_v47 = vpack.c.bf16 %v604_v45, %v603_v44  ;;  %v636_v48 = vld [vmem:[#allocation3 + $0x2f8] sm:$0xff]  ;;  %v5169_v51 = vld [vmem:[#allocation5] sm:$0xff] }
  0x4b   :  { %4140 = vmatmul.mubr.f32.vlgmr.msra.gmra.mrb[0].mxu1 %v94_v22  ;;  %v616_v22 = vld [vmem:[#allocation3 + $0x258] sm:$0xff] }
  0x4c   :  { %4142 = vmatprep.mubr.f32.mxu1 %v95_v23  ;;  %272 = vmatmul.mubr.f32.gmra.mrb[2].mxu0 %v86_v24  ;;  %v4543_v23 = vpack.c.bf16 %v616_v22, %v615_v21  ;;  %v599_v24 = vld [vmem:[#allocation3 + $0x1d0] sm:$0xff]  ;;  %v6021_v21 = vmov 0 }
  0x4d   :  { %276 = vmatprep.mubr.f32.mxu0 %v5114_v55  ;;  %4558 = vmatpush3.bf16.msra.mxu1 %v4555_v46  ;;  %v4559_v55 = vpack.c.bf16 %v624_v54, %v623_v52  ;;  %v635_v46 = vld [vmem:[#allocation3 + $0x2f0] sm:$0xff] }
  0x4e   :  { %4530 = vmatpush3.bf16.msra.mxu0 %v4529_v53  ;;  %v4583_v49 = vpack.c.bf16 %v636_v48, %v635_v46  ;;  %v5173_v53 = vrot.slane %v5169_v51, %v5167_v50 }
  0x4f   :  { %4143 = vmatmul.mubr.f32.gmra.mrb[2].mxu1 %v96_v25  ;;  %4560 = vmatprep.subr.bf16.mxu1 %v4559_v55  ;;  %v600_v25 = vld [vmem:[#allocation3 + $0x1d8] sm:$0xff] }
  0x50   :  { %4145 = vmatprep.mubr.f32.mxu1 %v97_v26  ;;  %277 = vmatmul.mubr.f32.gmra.mrb[4].mxu0 %v87_v27  ;;  %v631_v26 = vld [vmem:[#allocation3 + $0x2d0] sm:$0xff]  ;;  %v4545_v27 = vpack.c.bf16 %v600_v25, %v599_v24 }
  0x51   :  { %281 = vmatprep.mubr.f32.mxu0 %v5120_v57  ;;  %v610_v57 = vld [vmem:[#allocation3 + $0x228] sm:$0xff]  ;;  %4562 = vmatpush3.bf16.msra.mxu1 %v4559_v55  ;;  %v5176_v55 = vadd.s32 8, %v5147_v11 }
  0x53   :  { %4146 = vmatmul.mubr.f32.gmra.mrb[4].mxu1 %v98_v29  ;;  %v632_v29 = vld [vmem:[#allocation3 + $0x2d8] sm:$0xff] }
  0x54   :  { %4148 = vmatprep.mubr.f32.mxu1 %v99_v30  ;;  %282 = vmatmul.mubr.f32.gmra.mrb[6].mxu0 %v88_v31  ;;  %v4575_v30 = vpack.c.bf16 %v632_v29, %v631_v26  ;;  %v617_v31 = vld [vmem:[#allocation3 + $0x260] sm:$0xff]  ;;  %v185_v26 = vand.u32 1, %v5195_v12 }
  0x55   :  { %286 = vmatprep.mubr.f32.mxu0 %v5125_v58  ;;  %v4531_v58 = vpack.c.bf16 %v610_v57, %v609_v56 }
  0x56   :  { %vm5225_vm5 = vcmp.eq.s32.totalorder %v185_v26, 0 }
  0x57   :  { %4149 = vmatmul.mubr.f32.gmra.mrb[6].mxu1 %v100_v33  ;;  %4532 = vmatprep.subr.bf16.mxu0 %v4531_v58  ;;  %v618_v33 = vld [vmem:[#allocation3 + $0x268] sm:$0xff]  ;;  %v182_v58 = vand.u32 1, %v5147_v11 }
  0x58   :  { %3404 = vmatmul.mubr.msk.f32.gmra.mrb[8].mxu0 %vm105_vm1, %v89_v34  ;;  %v4547_v34 = vpack.c.bf16 %v618_v33, %v617_v31 }
  0x59   :  { %291 = vmatprep.mubr.f32.mxu0 %v5130_v59  ;;  %v593_v59 = vld [vmem:[#allocation3 + $0x1a0] sm:$0xff]  ;;  %vm5184_vm2 = vcmp.eq.s32.totalorder %v182_v58, 0 }
  0x5a   :  { %v6018_v4 = vsel %vm5184_vm2, 4294967295, %v6017_v4 }
  0x5c   :  { %292 = vmatmul.mubr.f32.gmra.mrb[10].mxu0 %v90_v35  ;;  %v601_v35 = vld [vmem:[#allocation3 + $0x1e0] sm:$0xff] }
  0x5d   :  { %296 = vmatprep.mubr.f32.mxu0 %v5137_v61  ;;  %v625_v61 = vld [vmem:[#allocation3 + $0x2a0] sm:$0xff] }
  0x5e   :  { %v4563_v0 = vpack.c.bf16 %v626_v63, %v625_v61  ;;  %v183_v63 = vand.u32 1, %v5176_v55 }
  0x60   :  { %297 = vmatmul.mubr.f32.gmra.mrb[12].mxu0 %v91_v36  ;;  %4564 = vmatprep.subr.bf16.mxu1 %v4563_v0  ;;  %v602_v36 = vld [vmem:[#allocation3 + $0x1e8] sm:$0xff]  ;;  %vm5190_vm3 = vcmp.eq.s32.totalorder %v183_v63, 0 }
  0x61   :  { %301 = vmatprep.mubr.f32.mxu0 %v5143_v62  ;;  %v4533_v62 = vpack.c.bf16 %v594_v60, %v593_v59  ;;  %4566 = vmatpush3.bf16.msra.mxu1 %v4563_v0  ;;  %v4549_v38 = vpack.c.bf16 %v602_v36, %v601_v35 }
  0x62   :  { %4568 = vmatprep.subr.bf16.mxu1 %v4567_v9 }
  0x63   :  { %4534 = vmatpush3.bf16.msra.mxu0 %v4533_v62  ;;  %v5181_v62 = vadd.s32 16, %v5147_v11 }
  0x64   :  { %302 = vmatmul.mubr.f32.gmra.mrb[14].mxu0 %v92_v37  ;;  %4536 = vmatprep.subr.bf16.mxu0 %v4535_v3  ;;  %v633_v37 = vld [vmem:[#allocation3 + $0x2e0] sm:$0xff] }
  0x65   :  { %4570 = vmatpush3.bf16.msra.mxu1 %v4567_v9  ;;  %v4579_v42 = vpack.c.bf16 %v634_v39, %v633_v37  ;;  %v184_v8 = vand.u32 1, %v5181_v62  ;;  %v6019_v9 = vmov 0  ;;  %v6023_v39 = vmov 0 }
  0x66   :  { %4572 = vmatprep.subr.bf16.mxu1 %v4571_v19  ;;  %v6020_v9 = vsel %vm5190_vm3, 4294967295, %v6019_v9  ;;  %v6024_v39 = vsel %vm5225_vm5, 4294967295, %v6023_v39 }
  0x67   :  { %4538 = vmatpush3.bf16.msra.mxu0 %v4537_v7  ;;  %vm5205_vm4 = vcmp.eq.s32.totalorder %v184_v8, 0  ;;  %v5262_v8 = vadd.s32 56, %v5147_v11 }
  0x68   :  { %4540 = vmatprep.subr.bf16.mxu0 %v4539_v13  ;;  %v6022_v21 = vsel %vm5205_vm4, 4294967295, %v6021_v21 }
  0x69   :  { %4574 = vmatpush3.bf16.msra.mxu1 %v4571_v19 }
  0x6a   :  { %4576 = vmatprep.subr.bf16.mxu1 %v4575_v30 }
  0x6b   :  { %4542 = vmatpush3.bf16.msra.mxu0 %v4541_v17 }
  0x6c   :  { %4544 = vmatprep.subr.bf16.mxu0 %v4543_v23 }
  0x6d   :  { %4578 = vmatpush3.bf16.msra.mxu1 %v4575_v30 }
  0x6e   :  { %4580 = vmatprep.subr.bf16.mxu1 %v4579_v42 }
  0x6f   :  { %4546 = vmatpush3.bf16.msra.mxu0 %v4545_v27 }
  0x70   :  { %4548 = vmatprep.subr.bf16.mxu0 %v4547_v34 }
  0x71   :  { %4582 = vmatpush3.bf16.msra.mxu1 %v4579_v42 }
  0x72   :  { %4584 = vmatprep.subr.bf16.mxu1 %v4583_v49 }
  0x73   :  { %4550 = vmatpush3.bf16.msra.mxu0 %v4549_v38  ;;  %v5223_v38 = vadd.s32 40, %v5147_v11 }
  0x74   :  { %4552 = vmatprep.subr.bf16.mxu0 %v4551_v43  ;;  %v186_v43 = vand.u32 1, %v5155_v28 }
  0x75   :  { %4586 = vmatpush3.bf16.msra.mxu1 %v4583_v49  ;;  %v187_v49 = vand.u32 1, %v5223_v38 }
  0x76   :  { %vm5241_vm6 = vcmp.eq.s32.totalorder %v186_v43, 0 }
  0x77   :  { %4554 = vmatpush3.bf16.msra.mxu0 %v4553_v47  ;;  %vm5249_vm7 = vcmp.eq.s32.totalorder %v187_v49, 0 }
 0x11b   :  { %v3499_v52 = vpop.f32.mrb[0].mxu0 }
 0x11c   :  { %v3500_v54 = vpop.f32.mrb[1].mxu0 }
 0x11d   :  { %v3501_v56 = vadd.f32 %v3500_v54, %v3499_v52 }
 0x11e   :  { %v4141_v57 = vpop.f32.mrb[0].mxu1 }
 0x11f   :  { %v373_v59 = vpop.f32.mrb[1].mxu1  ;;  %v3502_v60 = vpop.f32.mrb[2].mxu0  ;;  %v269_v61 = vadd.f32 %v3501_v56, %v5173_v53 }
 0x120   :  { %v3503_v0 = vpop.f32.mrb[3].mxu0 }
 0x121   :  { %v3504_v1 = vadd.f32 %v3503_v0, %v3502_v60  ;;  %v374_v2 = vadd.f32 %v373_v59, %v269_v61  ;;  %v5247_v59 = vadd.s32 48, %v5147_v11  ;;  %v6027_v0 = vmov 0 }
 0x122   :  { %v4144_v3 = vpop.f32.mrb[2].mxu1  ;;  %v6028_v0 = vsel %vm5249_vm7, 4294967295, %v6027_v0 }
 0x123   :  { %v383_v5 = vpop.f32.mrb[3].mxu1  ;;  %v274_v6 = vadd.f32 %v3504_v1, %v5173_v53  ;;  %v3505_v7 = vpop.f32.mrb[4].mxu0  ;;  %v5199_v14 = vsel %vm5184_vm2, %v374_v2, 0.0 }
 0x124   :  { %v3506_v10 = vpop.f32.mrb[5].mxu0  ;;  %v450_v24 = vmul.f32 %v5199_v14, %v5199_v14 }
 0x125   :  { %v379_v13 = vadd.f32 %v4141_v57, %v274_v6  ;;  %v3507_v15 = vadd.f32 %v3506_v10, %v3505_v7  ;;  %v6025_v57 = vmov 0  ;;  %v188_v10 = vand.u32 1, %v5247_v59 }
 0x126   :  { %v4147_v16 = vpop.f32.mrb[4].mxu1  ;;  %v6026_v57 = vsel %vm5241_vm6, 4294967295, %v6025_v57 }
 0x127   :  { %v393_v17 = vpop.f32.mrb[5].mxu1  ;;  %v5203_v18 = vsel %vm5190_vm3, %v379_v13, 0.0  ;;  %v3508_v19 = vpop.f32.mrb[6].mxu0  ;;  %v279_v22 = vadd.f32 %v3507_v15, %v5173_v53  ;;  %vm5269_vm8 = vcmp.eq.s32.totalorder %v188_v10, 0 }
 0x128   :  { %v436_v23 = vadd.f32 %v5203_v18, %v5199_v14  ;;  %v451_v25 = vmul.f32 %v5203_v18, %v5203_v18  ;;  %v3509_v27 = vpop.f32.mrb[7].mxu0 }
 0x129   :  { %v3510_v29 = vadd.f32 %v3509_v27, %v3508_v19  ;;  %v384_v30 = vadd.f32 %v383_v5, %v279_v22  ;;  %v6029_v27 = vmov 0 }
 0x12a   :  { %v4150_v31 = vpop.f32.mrb[6].mxu1  ;;  %v458_v33 = vadd.f32 %v451_v25, %v450_v24  ;;  %v189_v25 = vand.u32 1, %v5262_v8  ;;  %v6030_v27 = vsel %vm5269_vm8, 4294967295, %v6029_v27 }
 0x12b   :  { %v403_v34 = vpop.f32.mrb[7].mxu1  ;;  %v284_v35 = vadd.f32 %v3510_v29, %v5173_v53  ;;  %v5220_v36 = vsel %vm5205_vm4, %v384_v30, 0.0  ;;  %v3511_v37 = vpop.f32.mrb[8].mxu0 }
 0x12c   :  { %v437_v40 = vadd.f32 %v436_v23, %v5220_v36  ;;  %v452_v41 = vmul.f32 %v5220_v36, %v5220_v36  ;;  %v3512_v42 = vpop.f32.mrb[9].mxu0  ;;  %vm5276_vm9 = vcmp.eq.s32.totalorder %v189_v25, 0 }
 0x12d   :  { %v389_v44 = vadd.f32 %v4144_v3, %v284_v35  ;;  %v3513_v45 = vadd.f32 %v3512_v42, %v3511_v37 }
 0x12e   :  { %v459_v46 = vadd.f32 %v458_v33, %v452_v41 }
 0x12f   :  { %v5235_v47 = vsel %vm5225_vm5, %v389_v44, 0.0  ;;  %v3514_v48 = vpop.f32.mrb[10].mxu0  ;;  %v289_v52 = vadd.f32 %v3513_v45, %v5173_v53 }
 0x130   :  { %v453_v54 = vmul.f32 %v5235_v47, %v5235_v47  ;;  %v3515_v56 = vpop.f32.mrb[11].mxu0  ;;  %v438_v58 = vadd.f32 %v437_v40, %v5235_v47  ;;  %v6031_v40 = vmov 0 }
 0x131   :  { %v3516_v60 = vadd.f32 %v3515_v56, %v3514_v48  ;;  %v394_v61 = vadd.f32 %v393_v17, %v289_v52  ;;  %v6032_v40 = vsel %vm5276_vm9, 4294967295, %v6031_v40 }
 0x132   :  { %v460_v63 = vadd.f32 %v459_v46, %v453_v54  ;;  %6033 = vst [vmem:[#allocation9_spill] sm:$0xff] %v6032_v40 }
 0x133   :  { %v294_v1 = vadd.f32 %v3516_v60, %v5173_v53  ;;  %v5256_v2 = vsel %vm5241_vm6, %v394_v61, 0.0  ;;  %v3517_v3 = vpop.f32.mrb[12].mxu0 }
 0x134   :  { %v439_v5 = vadd.f32 %v438_v58, %v5256_v2  ;;  %v454_v6 = vmul.f32 %v5256_v2, %v5256_v2  ;;  %v3518_v7 = vpop.f32.mrb[13].mxu0 }
 0x135   :  { %v399_v13 = vadd.f32 %v4147_v16, %v294_v1  ;;  %v3519_v15 = vadd.f32 %v3518_v7, %v3517_v3 }
 0x136   :  { %v461_v17 = vadd.f32 %v460_v63, %v454_v6 }
 0x137   :  { %v433_v19 = vsel %vm5249_vm7, %v399_v13, 0.0  ;;  %v3520_v22 = vpop.f32.mrb[14].mxu0  ;;  %v299_v23 = vadd.f32 %v3519_v15, %v5173_v53 }
 0x138   :  { %v455_v24 = vmul.f32 %v433_v19, %v433_v19  ;;  %v3521_v26 = vpop.f32.mrb[15].mxu0  ;;  %v440_v29 = vadd.f32 %v439_v5, %v433_v19 }
 0x139   :  { %v3522_v30 = vadd.f32 %v3521_v26, %v3520_v22  ;;  %v404_v33 = vadd.f32 %v403_v34, %v299_v23 }
 0x13a   :  { %v462_v16 = vadd.f32 %v461_v17, %v455_v24 }
 0x13b   :  { %v304_v35 = vadd.f32 %v3522_v30, %v5173_v53  ;;  %v434_v37 = vsel %vm5269_vm8, %v404_v33, 0.0  ;;  %v5288_v30 = vsub.s32 1, %v5147_v11  ;;  %v5291_v33 = vsub.s32 2, %v5147_v11 }
 0x13c   :  { %v441_v41 = vadd.f32 %v440_v29, %v434_v37  ;;  %v456_v42 = vmul.f32 %v434_v37, %v434_v37 }
 0x13d   :  { %v409_v43 = vadd.f32 %v4150_v31, %v304_v35 }
 0x13e   :  { %v463_v44 = vadd.f32 %v462_v16, %v456_v42 }
 0x13f   :  { %v435_v45 = vsel %vm5276_vm9, %v409_v43, 0.0 }
 0x140   :  { %v457_v46 = vmul.f32 %v435_v45, %v435_v45  ;;  %v442_v48 = vadd.f32 %v441_v41, %v435_v45 }
 0x142   :  { %v443_v34 = vrot.slane %v442_v48, 4  ;;  %v464_v49 = vadd.f32 %v463_v44, %v457_v46 }
 0x144   :  { %v444_v52 = vadd.f32 %v443_v34, %v442_v48  ;;  %v465_v53 = vrot.slane %v464_v49, 4 }
 0x146   :  { %v445_v54 = vrot.slane %v444_v52, 2  ;;  %v466_v56 = vadd.f32 %v465_v53, %v464_v49 }
 0x148   :  { %v446_v58 = vadd.f32 %v445_v54, %v444_v52  ;;  %v467_v60 = vrot.slane %v466_v56, 2 }
 0x14a   :  { %v447_v61 = vrot.slane %v446_v58, 1  ;;  %v468_v63 = vadd.f32 %v467_v60, %v466_v56 }
 0x14c   :  { %v448_v1 = vadd.f32 %v447_v61, %v446_v58  ;;  %v469_v3 = vrot.slane %v468_v63, 1 }
 0x14e   :  { %v449_v5 = vmul.f32 0.03125, %v448_v1  ;;  %v470_v31 = vadd.f32 %v469_v3, %v468_v63 }
 0x150   :  { %v471_v6 = vmul.f32 0.03125, %v470_v31  ;;  %v472_v7 = vmul.f32 %v449_v5, %v449_v5  ;;  %v475_v10 = vsub.f32 %v5203_v18, %v449_v5  ;;  %v476_v13 = vsub.f32 %v5220_v36, %v449_v5 }
 0x151   :  { %v477_v15 = vsub.f32 %v5235_v47, %v449_v5  ;;  %v478_v17 = vsub.f32 %v5256_v2, %v449_v5  ;;  %v479_v22 = vsub.f32 %v433_v19, %v449_v5  ;;  %v480_v23 = vsub.f32 %v434_v37, %v449_v5 }
 0x152   :  { %v473_v24 = vsub.f32 %v471_v6, %v472_v7  ;;  %v481_v25 = vsub.f32 %v435_v45, %v449_v5  ;;  %v474_v26 = vsub.f32 %v5199_v14, %v449_v5  ;;  %v495_v18 = vrot.slane %v5169_v51, %v5288_v30 }
 0x153   :  { %v507_v47 = vrot.slane %v5169_v51, %v5291_v33 }
 0x154   :  { %v482_v29 = vadd.f32 1e-05, %v473_v24 }
 0x156   :  { %4976 = vrsqrt.f32 %v482_v29 }
 0x160   :  { %v4977_v36 = vpop.eup %4976 }
 0x161   :  { %v485_v2 = vmul.f32 %v4977_v36, %v475_v10  ;;  %v486_v19 = vmul.f32 %v4977_v36, %v476_v13  ;;  %v487_v16 = vmul.f32 %v4977_v36, %v477_v15  ;;  %v488_v35 = vmul.f32 %v4977_v36, %v478_v17 }
 0x162   :  { %v489_v14 = vmul.f32 %v4977_v36, %v479_v22  ;;  %v490_v37 = vmul.f32 %v4977_v36, %v480_v23  ;;  %v491_v41 = vmul.f32 %v4977_v36, %v481_v25  ;;  %v484_v42 = vmul.f32 %v4977_v36, %v474_v26 }
 0x163   :  { %v497_v43 = vmul.f32 %v495_v18, %v485_v2  ;;  %v498_v44 = vmul.f32 %v495_v18, %v486_v19  ;;  %v499_v45 = vmul.f32 %v495_v18, %v487_v16  ;;  %v500_v46 = vmul.f32 %v495_v18, %v488_v35 }
 0x164   :  { %v501_v48 = vmul.f32 %v495_v18, %v489_v14  ;;  %v502_v34 = vmul.f32 %v495_v18, %v490_v37  ;;  %v503_v49 = vmul.f32 %v495_v18, %v491_v41  ;;  %v496_v52 = vmul.f32 %v495_v18, %v484_v42 }
 0x165   :  { %v509_v53 = vadd.f32 %v507_v47, %v497_v43  ;;  %v510_v54 = vadd.f32 %v507_v47, %v498_v44  ;;  %v511_v56 = vadd.f32 %v507_v47, %v499_v45  ;;  %v512_v51 = vadd.f32 %v507_v47, %v500_v46 }
 0x166   :  { %v513_v58 = vadd.f32 %v507_v47, %v501_v48  ;;  %v5297_v60 = vadd.f32 %v507_v47, %v502_v34  ;;  %v5299_v61 = vadd.f32 %v507_v47, %v503_v49  ;;  %v508_v63 = vadd.f32 %v507_v47, %v496_v52  ;;  %v1055_v34 = vld [vmem:[#allocation3 + $0x380] sm:$0xff]  ;;  %v1056_v49 = vld [vmem:[#allocation3 + $0x388] sm:$0xff] }
 0x167   :  { %v517_v1 = vmax.f32 %v509_v53, 0.0  ;;  %v518_v3 = vmax.f32 %v510_v54, 0.0  ;;  %v519_v5 = vmax.f32 %v511_v56, 0.0  ;;  %v520_v31 = vmax.f32 %v512_v51, 0.0  ;;  %v1039_v53 = vld [vmem:[#allocation3 + $0x300] sm:$0xff]  ;;  %v1040_v54 = vld [vmem:[#allocation3 + $0x308] sm:$0xff] }
 0x168   :  { %v521_v6 = vmax.f32 %v513_v58, 0.0  ;;  %v522_v7 = vmax.f32 %v5297_v60, 0.0  ;;  %v523_v10 = vmax.f32 %v5299_v61, 0.0  ;;  %v516_v13 = vmax.f32 %v508_v63, 0.0  ;;  %v1071_v56 = vld [vmem:[#allocation3 + $0x400] sm:$0xff]  ;;  %v1072_v58 = vld [vmem:[#allocation3 + $0x408] sm:$0xff] }
 0x169   :  { %v525_v15 = vsel %vm5190_vm3, %v517_v1, 0.0  ;;  %v526_v17 = vsel %vm5205_vm4, %v518_v3, 0.0  ;;  %v527_v22 = vsel %vm5225_vm5, %v519_v5, 0.0  ;;  %v528_v23 = vsel %vm5241_vm6, %v520_v31, 0.0  ;;  %v1057_v61 = vld [vmem:[#allocation3 + $0x390] sm:$0xff]  ;;  %v1058_v63 = vld [vmem:[#allocation3 + $0x398] sm:$0xff] }
 0x16a   :  { %v529_v24 = vsel %vm5249_vm7, %v521_v6, 0.0  ;;  %v530_v25 = vsel %vm5269_vm8, %v522_v7, 0.0  ;;  %v531_v26 = vsel %vm5276_vm9, %v523_v10, 0.0  ;;  %533 = vst [vmem:[#allocation2 + $0x10] sm:$0xff] %v525_v15  ;;  %534 = vst [vmem:[#allocation2 + $0x18] sm:$0xff] %v526_v17  ;;  %v524_v29 = vsel %vm5184_vm2, %v516_v13, 0.0  ;;  %3405 = vmatprep.mubr.msk.f32.mxu0 %vm5184_vm2, %v516_v13 }
 0x16b   :  { %535 = vst [vmem:[#allocation2 + $0x20] sm:$0xff] %v527_v22  ;;  %536 = vst [vmem:[#allocation2 + $0x28] sm:$0xff] %v528_v23  ;;  %v4587_v52 = vpack.c.bf16 %v1056_v49, %v1055_v34  ;;  %v4589_v51 = vpack.c.bf16 %v1040_v54, %v1039_v53  ;;  %v4619_v60 = vpack.c.bf16 %v1072_v58, %v1071_v56  ;;  %v1059_v13 = vld [vmem:[#allocation3 + $0x3a0] sm:$0xff]  ;;  %v1060_v15 = vld [vmem:[#allocation3 + $0x3a8] sm:$0xff] }
 0x16c   :  { %538 = vst [vmem:[#allocation2 + $0x38] sm:$0xff] %v530_v25  ;;  %539 = vst [vmem:[#allocation2 + $0x40] sm:$0xff] %v531_v26  ;;  %v4595_v17 = vpack.c.bf16 %v1060_v15, %v1059_v13  ;;  %v1043_v22 = vld [vmem:[#allocation3 + $0x320] sm:$0xff]  ;;  %v1044_v23 = vld [vmem:[#allocation3 + $0x328] sm:$0xff] }
 0x16d   :  { %537 = vst [vmem:[#allocation2 + $0x30] sm:$0xff] %v529_v24  ;;  %532 = vst [vmem:[#allocation2 + $0x8] sm:$0xff] %v524_v29  ;;  %4588 = vmatprep.subr.bf16.mxu0 %v4587_v52  ;;  %4620 = vmatprep.subr.bf16.mxu1 %v4619_v60  ;;  %v1075_v24 = vld [vmem:[#allocation3 + $0x420] sm:$0xff]  ;;  %v4597_v25 = vpack.c.bf16 %v1044_v23, %v1043_v22  ;;  %v1076_v26 = vld [vmem:[#allocation3 + $0x428] sm:$0xff] }
 0x16e   :  { %v4627_v29 = vpack.c.bf16 %v1076_v26, %v1075_v24  ;;  %v1080_v34 = vld [vmem:[#allocation3 + $0x448] sm:$0xff]  ;;  %v1065_v52 = vld [vmem:[#allocation3 + $0x3d0] sm:$0xff]  ;;  %v1066_v53 = vld [vmem:[#allocation3 + $0x3d8] sm:$0xff] }
 0x16f   :  { %v4607_v54 = vpack.c.bf16 %v1066_v53, %v1065_v52  ;;  %v1049_v56 = vld [vmem:[#allocation3 + $0x350] sm:$0xff]  ;;  %v1070_v22 = vld [vmem:[#allocation3 + $0x3f8] sm:$0xff] }
 0x170   :  { %v1081_v58 = vld [vmem:[#allocation3 + $0x450] sm:$0xff] }
 0x171   :  { %v549_v18 = vld [vmem:[#allocation2 + $0x12] sm:$0xff]  ;;  %v1053_v23 = vld [vmem:[#allocation3 + $0x370] sm:$0xff] }
 0x172   :  { %v550_v2 = vld [vmem:[#allocation2 + $0x1a] sm:$0xff]  ;;  %v551_v16 = vld [vmem:[#allocation2 + $0x22] sm:$0xff] }
 0x173   :  { %v542_v14 = vld [vmem:[#allocation2 + $0x16] sm:$0xff]  ;;  %v543_v42 = vld [vmem:[#allocation2 + $0x1e] sm:$0xff]  ;;  %v544_v44 = vld [vmem:[#allocation2 + $0x26] sm:$0xff] }
 0x174   :  { %v540_v36 = vld [vmem:[#allocation2 + $0x6] sm:$0xff]  ;;  %v541_v19 = vld [vmem:[#allocation2 + $0xe] sm:$0xff]  ;;  %v554_v41 = vld [vmem:[#allocation2 + $0x3a] sm:$0xff] }
 0x175   :  { %v548_v47 = vld [vmem:[#allocation2 + $0xa] sm:$0xff]  ;;  %3406 = vmatmul.mubr.msk.f32.vlgmr.msra.gmra.mrb[16].mxu0 %vm556_vm10, %v540_v36  ;;  %v553_v37 = vld [vmem:[#allocation2 + $0x32] sm:$0xff]  ;;  %v555_v43 = vld [vmem:[#allocation2 + $0x42] sm:$0xff] }
 0x176   :  { %4183 = vmatprep.mubr.f32.mxu1 %v548_v47  ;;  %3407 = vmatprep.mubr.msk.f32.mxu0 %vm5190_vm3, %v517_v1  ;;  %v552_v35 = vld [vmem:[#allocation2 + $0x2a] sm:$0xff]  ;;  %v546_v46 = vld [vmem:[#allocation2 + $0x36] sm:$0xff]  ;;  %v547_v48 = vld [vmem:[#allocation2 + $0x3e] sm:$0xff]  ;;  %v4591_v1 = vpack.c.bf16 %v1058_v63, %v1057_v61 }
 0x177   :  { %4184 = vmatmul.mubr.f32.vlgmr.msra.gmra.mrb[8].mxu1 %v549_v18  ;;  %v545_v45 = vld [vmem:[#allocation2 + $0x2e] sm:$0xff]  ;;  %4590 = vmatpush3.bf16.msra.mxu0 %v4589_v51  ;;  %v1061_v18 = vld [vmem:[#allocation3 + $0x3b0] sm:$0xff] }
 0x178   :  { %4186 = vmatprep.mubr.f32.mxu1 %v550_v2  ;;  %4622 = vmatpush3.bf16.msra.mxu1 %v4619_v60  ;;  %v1062_v36 = vld [vmem:[#allocation3 + $0x3b8] sm:$0xff]  ;;  %v1045_v2 = vld [vmem:[#allocation3 + $0x330] sm:$0xff] }
 0x179   :  { %729 = vmatmul.mubr.f32.gmra.mrb[18].mxu0 %v541_v19  ;;  %4592 = vmatprep.subr.bf16.mxu0 %v4591_v1  ;;  %v4599_v47 = vpack.c.bf16 %v1062_v36, %v1061_v18  ;;  %v1046_v19 = vld [vmem:[#allocation3 + $0x338] sm:$0xff]  ;;  %v1067_v1 = vld [vmem:[#allocation3 + $0x3e0] sm:$0xff]  ;;  %v1085_v26 = vld [vmem:[#allocation3 + $0x470] sm:$0xff] }
 0x17a   :  { %3408 = vmatprep.mubr.msk.f32.mxu0 %vm5205_vm4, %v518_v3  ;;  %v1041_v3 = vld [vmem:[#allocation3 + $0x310] sm:$0xff]  ;;  %v1050_v51 = vld [vmem:[#allocation3 + $0x358] sm:$0xff] }
 0x17b   :  { %4187 = vmatmul.mubr.f32.gmra.mrb[10].mxu1 %v551_v16  ;;  %v1077_v16 = vld [vmem:[#allocation3 + $0x430] sm:$0xff]  ;;  %v4609_v60 = vpack.c.bf16 %v1050_v51, %v1049_v56  ;;  %v1082_v61 = vld [vmem:[#allocation3 + $0x458] sm:$0xff]  ;;  %v641_v56 = vand.u32 3, %v5181_v62 }
 0x17c   :  { %4189 = vmatprep.mubr.f32.mxu1 %v552_v35  ;;  %v4601_v35 = vpack.c.bf16 %v1046_v19, %v1045_v2  ;;  %v4639_v63 = vpack.c.bf16 %v1082_v61, %v1081_v58 }
 0x17d   :  { %734 = vmatmul.mubr.f32.gmra.mrb[20].mxu0 %v542_v14  ;;  %v1078_v14 = vld [vmem:[#allocation3 + $0x438] sm:$0xff]  ;;  %vm5364_vm14 = vcmp.eq.s32.totalorder %v641_v56, 0 }
 0x17e   :  { %3409 = vmatprep.mubr.msk.f32.mxu0 %vm5225_vm5, %v519_v5  ;;  %v1042_v5 = vld [vmem:[#allocation3 + $0x318] sm:$0xff] }
 0x17f   :  { %4190 = vmatmul.mubr.f32.gmra.mrb[12].mxu1 %v553_v37  ;;  %v4631_v37 = vpack.c.bf16 %v1078_v14, %v1077_v16 }
 0x180   :  { %4192 = vmatprep.mubr.f32.mxu1 %v554_v41  ;;  %v1063_v41 = vld [vmem:[#allocation3 + $0x3c0] sm:$0xff] }
 0x181   :  { %739 = vmatmul.mubr.f32.gmra.mrb[22].mxu0 %v543_v42  ;;  %v1064_v42 = vld [vmem:[#allocation3 + $0x3c8] sm:$0xff] }
 0x182   :  { %3410 = vmatprep.mubr.msk.f32.mxu0 %vm5241_vm6, %v520_v31  ;;  %v1073_v31 = vld [vmem:[#allocation3 + $0x410] sm:$0xff] }
 0x183   :  { %4193 = vmatmul.mubr.f32.gmra.mrb[14].mxu1 %v555_v43  ;;  %v4603_v43 = vpack.c.bf16 %v1064_v42, %v1063_v41  ;;  %v639_v41 = vand.u32 3, %v5147_v11 }
 0x185   :  { %3411 = vmatmul.mubr.msk.f32.gmra.mrb[24].mxu0 %vm560_vm11, %v544_v44  ;;  %v1047_v44 = vld [vmem:[#allocation3 + $0x340] sm:$0xff]  ;;  %vm5346_vm12 = vcmp.eq.s32.totalorder %v639_v41, 0 }
 0x186   :  { %3412 = vmatprep.mubr.msk.f32.mxu0 %vm5249_vm7, %v521_v6  ;;  %v4593_v6 = vpack.c.bf16 %v1042_v5, %v1041_v3  ;;  %v1068_v3 = vld [vmem:[#allocation3 + $0x3e8] sm:$0xff]  ;;  %v1051_v5 = vld [vmem:[#allocation3 + $0x360] sm:$0xff] }
 0x188   :  { %4594 = vmatpush3.bf16.msra.mxu0 %v4593_v6  ;;  %v1052_v6 = vld [vmem:[#allocation3 + $0x368] sm:$0xff] }
 0x189   :  { %749 = vmatmul.mubr.f32.gmra.mrb[26].mxu0 %v545_v45  ;;  %4596 = vmatprep.subr.bf16.mxu0 %v4595_v17  ;;  %v1048_v45 = vld [vmem:[#allocation3 + $0x348] sm:$0xff]  ;;  %v4613_v13 = vpack.c.bf16 %v1052_v6, %v1051_v5  ;;  %v1069_v17 = vld [vmem:[#allocation3 + $0x3f0] sm:$0xff] }
 0x18a   :  { %3413 = vmatprep.mubr.msk.f32.mxu0 %vm5269_vm8, %v522_v7  ;;  %v1074_v7 = vld [vmem:[#allocation3 + $0x418] sm:$0xff]  ;;  %v4615_v24 = vpack.c.bf16 %v1070_v22, %v1069_v17  ;;  %v642_v17 = vand.u32 3, %v5195_v12 }
 0x18c   :  { %4598 = vmatpush3.bf16.msra.mxu0 %v4597_v25  ;;  %v1054_v25 = vld [vmem:[#allocation3 + $0x378] sm:$0xff]  ;;  %vm5384_vm15 = vcmp.eq.s32.totalorder %v642_v17, 0  ;;  %v6044_v17 = vmov 0 }
 0x18d   :  { %754 = vmatmul.mubr.f32.gmra.mrb[28].mxu0 %v546_v46  ;;  %4600 = vmatprep.subr.bf16.mxu0 %v4599_v47  ;;  %v1079_v46 = vld [vmem:[#allocation3 + $0x440] sm:$0xff]  ;;  %v4617_v18 = vpack.c.bf16 %v1054_v25, %v1053_v23  ;;  %v5337_v47 = vld [vmem:[#allocation5 + $0x8] sm:$0xff] }
 0x18e   :  { %3414 = vmatprep.mubr.msk.f32.mxu0 %vm5276_vm9, %v523_v10  ;;  %v4623_v10 = vpack.c.bf16 %v1074_v7, %v1073_v31  ;;  %v4635_v49 = vpack.c.bf16 %v1080_v34, %v1079_v46  ;;  %v4611_v31 = vpack.c.bf16 %v1068_v3, %v1067_v1  ;;  %v1083_v7 = vld [vmem:[#allocation3 + $0x460] sm:$0xff]  ;;  %v5341_v19 = vrot.slane %v5337_v47, %v5167_v50 }
 0x18f   :  { %vm1006_vm9 = vcmp.ge.s32.totalorder %v5150_v20, 4 }
 0x190   :  { %4624 = vmatprep.subr.bf16.mxu1 %v4623_v10  ;;  %4602 = vmatpush3.bf16.msra.mxu0 %v4601_v35 }
 0x191   :  { %759 = vmatmul.mubr.f32.gmra.mrb[30].mxu0 %v547_v48  ;;  %4626 = vmatpush3.bf16.msra.mxu1 %v4623_v10  ;;  %v4605_v48 = vpack.c.bf16 %v1048_v45, %v1047_v44  ;;  %v1084_v10 = vld [vmem:[#allocation3 + $0x468] sm:$0xff]  ;;  %v640_v44 = vand.u32 3, %v5176_v55 }
 0x192   :  { %4628 = vmatprep.subr.bf16.mxu1 %v4627_v29  ;;  %4604 = vmatprep.subr.bf16.mxu0 %v4603_v43  ;;  %v4643_v15 = vpack.c.bf16 %v1084_v10, %v1083_v7 }
 0x193   :  { %vm5352_vm13 = vcmp.eq.s32.totalorder %v640_v44, 0 }
 0x194   :  { %4606 = vmatpush3.bf16.msra.mxu0 %v4605_v48 }
 0x195   :  { %4630 = vmatpush3.bf16.msra.mxu1 %v4627_v29  ;;  %4608 = vmatprep.subr.bf16.mxu0 %v4607_v54  ;;  %v1086_v29 = vld [vmem:[#allocation3 + $0x478] sm:$0xff] }
 0x196   :  { %4632 = vmatprep.subr.bf16.mxu1 %v4631_v37  ;;  %v4647_v36 = vpack.c.bf16 %v1086_v29, %v1085_v26 }
 0x198   :  { %4610 = vmatpush3.bf16.msra.mxu0 %v4609_v60 }
 0x199   :  { %4634 = vmatpush3.bf16.msra.mxu1 %v4631_v37  ;;  %4612 = vmatprep.subr.bf16.mxu0 %v4611_v31 }
 0x19a   :  { %4636 = vmatprep.subr.bf16.mxu1 %v4635_v49 }
 0x19c   :  { %4614 = vmatpush3.bf16.msra.mxu0 %v4613_v13 }
 0x19d   :  { %4638 = vmatpush3.bf16.msra.mxu1 %v4635_v49  ;;  %4616 = vmatprep.subr.bf16.mxu0 %v4615_v24 }
 0x19e   :  { %4640 = vmatprep.subr.bf16.mxu1 %v4639_v63 }
 0x1a0   :  { %4618 = vmatpush3.bf16.msra.mxu0 %v4617_v18 }
 0x1a1   :  { %4642 = vmatpush3.bf16.msra.mxu1 %v4639_v63 }
 0x1a2   :  { %4644 = vmatprep.subr.bf16.mxu1 %v4643_v15 }
 0x1a5   :  { %4646 = vmatpush3.bf16.msra.mxu1 %v4643_v15 }
 0x1a6   :  { %4648 = vmatprep.subr.bf16.mxu1 %v4647_v36 }
 0x1a9   :  { %4650 = vmatpush3.bf16.msra.mxu1 %v4647_v36 }
 0x248   :  { %v3579_v2 = vpop.f32.mrb[16].mxu0 }
 0x249   :  { %v3580_v16 = vpop.f32.mrb[17].mxu0 }
 0x24a   :  { %v4185_v35 = vpop.f32.mrb[8].mxu1  ;;  %v3581_v14 = vadd.f32 %v3580_v16, %v3579_v2 }
 0x24b   :  { %v830_v37 = vpop.f32.mrb[9].mxu1 }
 0x24c   :  { %v726_v42 = vadd.f32 %v3581_v14, %v5341_v19  ;;  %v3582_v43 = vpop.f32.mrb[18].mxu0 }
 0x24d   :  { %v3583_v45 = vpop.f32.mrb[19].mxu0 }
 0x24e   :  { %v4188_v46 = vpop.f32.mrb[10].mxu1  ;;  %v831_v48 = vadd.f32 %v830_v37, %v726_v42  ;;  %v3584_v34 = vadd.f32 %v3583_v45, %v3582_v43  ;;  %v643_v37 = vand.u32 3, %v5155_v28 }
 0x24f   :  { %v840_v49 = vpop.f32.mrb[11].mxu1 }
 0x250   :  { %v731_v53 = vadd.f32 %v3584_v34, %v5341_v19  ;;  %v3585_v54 = vpop.f32.mrb[20].mxu0  ;;  %v5358_v61 = vsel %vm5346_vm12, %v831_v48, 0.0  ;;  %vm5397_vm0 = vcmp.eq.s32.totalorder %v643_v37, 0 }
 0x251   :  { %v3586_v58 = vpop.f32.mrb[21].mxu0  ;;  %v907_v10 = vmul.f32 %v5358_v61, %v5358_v61 }
 0x252   :  { %v4191_v60 = vpop.f32.mrb[12].mxu1  ;;  %v836_v63 = vadd.f32 %v4185_v35, %v731_v53  ;;  %v3587_v1 = vadd.f32 %v3586_v58, %v3585_v54  ;;  %v3141_v54 = vld [vmem:[#allocation3 + $0xb00] sm:$0xff] }
 0x253   :  { %v850_v3 = vpop.f32.mrb[13].mxu1 }
 0x254   :  { %v5362_v5 = vsel %vm5352_vm13, %v836_v63, 0.0  ;;  %v736_v6 = vadd.f32 %v3587_v1, %v5341_v19  ;;  %v3588_v7 = vpop.f32.mrb[22].mxu0 }
 0x255   :  { %v893_v13 = vadd.f32 %v5362_v5, %v5358_v61  ;;  %v908_v15 = vmul.f32 %v5362_v5, %v5362_v5  ;;  %v3589_v22 = vpop.f32.mrb[23].mxu0 }
 0x256   :  { %v4194_v23 = vpop.f32.mrb[14].mxu1  ;;  %v841_v24 = vadd.f32 %v840_v49, %v736_v6  ;;  %v3590_v25 = vadd.f32 %v3589_v22, %v3588_v7 }
 0x257   :  { %v860_v26 = vpop.f32.mrb[15].mxu1  ;;  %v915_v29 = vadd.f32 %v908_v15, %v907_v10 }
 0x258   :  { %v5378_v18 = vsel %vm5364_vm14, %v841_v24, 0.0  ;;  %v741_v36 = vadd.f32 %v3590_v25, %v5341_v19  ;;  %v3591_v2 = vpop.f32.mrb[24].mxu0 }
 0x259   :  { %v894_v16 = vadd.f32 %v893_v13, %v5378_v18  ;;  %v909_v35 = vmul.f32 %v5378_v18, %v5378_v18  ;;  %v3592_v41 = vpop.f32.mrb[25].mxu0 }
 0x25a   :  { %v846_v42 = vadd.f32 %v4188_v46, %v741_v36  ;;  %v3593_v43 = vadd.f32 %v3592_v41, %v3591_v2  ;;  %v644_v46 = vand.u32 3, %v5223_v38  ;;  %v6046_v41 = vmov 0 }
 0x25b   :  { %v916_v44 = vadd.f32 %v915_v29, %v909_v35 }
 0x25c   :  { %v5391_v45 = vsel %vm5384_vm15, %v846_v42, 0.0  ;;  %v746_v48 = vadd.f32 %v3593_v43, %v5341_v19  ;;  %v3594_v34 = vpop.f32.mrb[26].mxu0  ;;  %vm5410_vm1 = vcmp.eq.s32.totalorder %v644_v46, 0  ;;  %v646_v42 = vand.u32 3, %v5262_v8 }
 0x25d   :  { %v895_v49 = vadd.f32 %v894_v16, %v5391_v45  ;;  %v910_v53 = vmul.f32 %v5391_v45, %v5391_v45  ;;  %v3595_v56 = vpop.f32.mrb[27].mxu0  ;;  %v6045_v17 = vsel %vm5410_vm1, 4294967295, %v6044_v17 }
 0x25e   :  { %v851_v58 = vadd.f32 %v850_v3, %v746_v48  ;;  %v3596_v63 = vadd.f32 %v3595_v56, %v3594_v34  ;;  %v645_v3 = vand.u32 3, %v5247_v59  ;;  %vm5426_vm11 = vcmp.eq.s32.totalorder %v646_v42, 0 }
 0x25f   :  { %v917_v1 = vadd.f32 %v916_v44, %v910_v53  ;;  %v6048_v56 = vmov 0 }
 0x260   :  { %v5404_v6 = vsel %vm5397_vm0, %v851_v58, 0.0  ;;  %v751_v7 = vadd.f32 %v3596_v63, %v5341_v19  ;;  %v3597_v10 = vpop.f32.mrb[28].mxu0  ;;  %vm5418_vm10 = vcmp.eq.s32.totalorder %v645_v3, 0  ;;  %v6049_v56 = vsel %vm5426_vm11, 4294967295, %v6048_v56 }
 0x261   :  { %v896_v13 = vadd.f32 %v895_v49, %v5404_v6  ;;  %v911_v15 = vmul.f32 %v5404_v6, %v5404_v6  ;;  %v3598_v22 = vpop.f32.mrb[29].mxu0  ;;  %v6047_v41 = vsel %vm5418_vm10, 4294967295, %v6046_v41 }
 0x262   :  { %v856_v24 = vadd.f32 %v4191_v60, %v751_v7  ;;  %v3599_v25 = vadd.f32 %v3598_v22, %v3597_v10 }
 0x263   :  { %v918_v29 = vadd.f32 %v917_v1, %v911_v15 }
 0x264   :  { %v890_v36 = vsel %vm5410_vm1, %v856_v24, 0.0  ;;  %v756_v2 = vadd.f32 %v3599_v25, %v5341_v19  ;;  %v3600_v16 = vpop.f32.mrb[30].mxu0 }
 0x265   :  { %v897_v35 = vadd.f32 %v896_v13, %v890_v36  ;;  %v912_v37 = vmul.f32 %v890_v36, %v890_v36  ;;  %v3601_v43 = vpop.f32.mrb[31].mxu0 }
 0x266   :  { %v861_v44 = vadd.f32 %v860_v26, %v756_v2  ;;  %v3602_v48 = vadd.f32 %v3601_v43, %v3600_v16 }
 0x267   :  { %v919_v60 = vadd.f32 %v918_v29, %v912_v37 }
 0x268   :  { %v891_v34 = vsel %vm5418_vm10, %v861_v44, 0.0  ;;  %v761_v49 = vadd.f32 %v3602_v48, %v5341_v19 }
 0x269   :  { %v898_v53 = vadd.f32 %v897_v35, %v891_v34  ;;  %v913_v46 = vmul.f32 %v891_v34, %v891_v34 }
 0x26a   :  { %v866_v58 = vadd.f32 %v4194_v23, %v761_v49 }
 0x26b   :  { %v920_v63 = vadd.f32 %v919_v60, %v913_v46 }
 0x26c   :  { %v892_v1 = vsel %vm5426_vm11, %v866_v58, 0.0 }
 0x26d   :  { %v899_v7 = vadd.f32 %v898_v53, %v892_v1  ;;  %v914_v26 = vmul.f32 %v892_v1, %v892_v1 }
 0x26f   :  { %v900_v10 = vrot.slane %v899_v7, 4  ;;  %v921_v13 = vadd.f32 %v920_v63, %v914_v26 }
 0x271   :  { %v901_v15 = vadd.f32 %v900_v10, %v899_v7  ;;  %v922_v3 = vrot.slane %v921_v13, 4  ;;  %v952_v10 = vrot.slane %v5337_v47, %v5288_v30 }
 0x273   :  { %v902_v22 = vrot.slane %v901_v15, 2  ;;  %v923_v24 = vadd.f32 %v922_v3, %v921_v13 }
 0x275   :  { %v903_v19 = vadd.f32 %v902_v22, %v901_v15  ;;  %v924_v25 = vrot.slane %v923_v24, 2 }
 0x277   :  { %v904_v29 = vrot.slane %v903_v19, 1  ;;  %v925_v2 = vadd.f32 %v924_v25, %v923_v24 }
 0x279   :  { %v905_v16 = vadd.f32 %v904_v29, %v903_v19  ;;  %v926_v35 = vrot.slane %v925_v2, 1 }
 0x27b   :  { %v906_v37 = vmul.f32 0.0625, %v905_v16  ;;  %v927_v23 = vadd.f32 %v926_v35, %v925_v2 }
 0x27d   :  { %v928_v42 = vmul.f32 0.0625, %v927_v23  ;;  %v929_v43 = vmul.f32 %v906_v37, %v906_v37  ;;  %v932_v44 = vsub.f32 %v5362_v5, %v906_v37  ;;  %v933_v48 = vsub.f32 %v5378_v18, %v906_v37 }
 0x27e   :  { %v934_v60 = vsub.f32 %v5391_v45, %v906_v37  ;;  %v935_v49 = vsub.f32 %v5404_v6, %v906_v37  ;;  %v936_v53 = vsub.f32 %v890_v36, %v906_v37  ;;  %v937_v46 = vsub.f32 %v891_v34, %v906_v37 }
 0x27f   :  { %v930_v58 = vsub.f32 %v928_v42, %v929_v43  ;;  %v938_v63 = vsub.f32 %v892_v1, %v906_v37  ;;  %v931_v7 = vsub.f32 %v5358_v61, %v906_v37  ;;  %v964_v5 = vrot.slane %v5337_v47, %v5291_v33 }
 0x281   :  { %v939_v26 = vadd.f32 1e-05, %v930_v58 }
 0x283   :  { %4978 = vrsqrt.f32 %v939_v26 }
 0x28d   :  { %v4979_v13 = vpop.eup %4978 }
 0x28e   :  { %v942_v18 = vmul.f32 %v4979_v13, %v932_v44  ;;  %v943_v15 = vmul.f32 %v4979_v13, %v933_v48  ;;  %v944_v45 = vmul.f32 %v4979_v13, %v934_v60  ;;  %v945_v3 = vmul.f32 %v4979_v13, %v935_v49 }
 0x28f   :  { %v946_v6 = vmul.f32 %v4979_v13, %v936_v53  ;;  %v947_v36 = vmul.f32 %v4979_v13, %v937_v46  ;;  %v948_v34 = vmul.f32 %v4979_v13, %v938_v63  ;;  %v941_v22 = vmul.f32 %v4979_v13, %v931_v7 }
 0x290   :  { %v954_v1 = vmul.f32 %v952_v10, %v942_v18  ;;  %v955_v24 = vmul.f32 %v952_v10, %v943_v15  ;;  %v956_v61 = vmul.f32 %v952_v10, %v944_v45  ;;  %v957_v19 = vmul.f32 %v952_v10, %v945_v3 }
 0x291   :  { %v958_v25 = vmul.f32 %v952_v10, %v946_v6  ;;  %v959_v29 = vmul.f32 %v952_v10, %v947_v36  ;;  %v960_v2 = vmul.f32 %v952_v10, %v948_v34  ;;  %v953_v16 = vmul.f32 %v952_v10, %v941_v22 }
 0x292   :  { %v966_v35 = vadd.f32 %v964_v5, %v954_v1  ;;  %v967_v37 = vadd.f32 %v964_v5, %v955_v24  ;;  %v968_v23 = vadd.f32 %v964_v5, %v956_v61  ;;  %v969_v47 = vadd.f32 %v964_v5, %v957_v19 }
 0x293   :  { %v970_v42 = vadd.f32 %v964_v5, %v958_v25  ;;  %v971_v43 = vadd.f32 %v964_v5, %v959_v29  ;;  %v972_v44 = vadd.f32 %v964_v5, %v960_v2  ;;  %v965_v48 = vadd.f32 %v964_v5, %v953_v16  ;;  %v1512_v29 = vld [vmem:[#allocation3 + $0x500] sm:$0xff]  ;;  %v1513_v2 = vld [vmem:[#allocation3 + $0x508] sm:$0xff] }
 0x294   :  { %v974_v60 = vmax.f32 %v966_v35, 0.0  ;;  %v975_v49 = vmax.f32 %v967_v37, 0.0  ;;  %v976_v53 = vmax.f32 %v968_v23, 0.0  ;;  %v977_v46 = vmax.f32 %v969_v47, 0.0  ;;  %v1496_v35 = vld [vmem:[#allocation3 + $0x480] sm:$0xff]  ;;  %v1497_v37 = vld [vmem:[#allocation3 + $0x488] sm:$0xff] }
 0x295   :  { %v978_v58 = vmax.f32 %v970_v42, 0.0  ;;  %v979_v63 = vmax.f32 %v971_v43, 0.0  ;;  %v980_v7 = vmax.f32 %v972_v44, 0.0  ;;  %v973_v26 = vmax.f32 %v965_v48, 0.0  ;;  %v1528_v23 = vld [vmem:[#allocation3 + $0x580] sm:$0xff]  ;;  %v1529_v47 = vld [vmem:[#allocation3 + $0x588] sm:$0xff] }
 0x296   :  { %v982_v13 = vsel %vm5352_vm13, %v974_v60, 0.0  ;;  %v983_v10 = vsel %vm5364_vm14, %v975_v49, 0.0  ;;  %v984_v18 = vsel %vm5384_vm15, %v976_v53, 0.0  ;;  %v985_v5 = vsel %vm5397_vm0, %v977_v46, 0.0  ;;  %v1514_v43 = vld [vmem:[#allocation3 + $0x510] sm:$0xff]  ;;  %v1515_v44 = vld [vmem:[#allocation3 + $0x518] sm:$0xff] }
 0x297   :  { %v986_v15 = vsel %vm5410_vm1, %v978_v58, 0.0  ;;  %v987_v45 = vsel %vm5418_vm10, %v979_v63, 0.0  ;;  %v988_v3 = vsel %vm5426_vm11, %v980_v7, 0.0  ;;  %990 = vst [vmem:[#allocation2 + $0x10] sm:$0xff] %v982_v13  ;;  %991 = vst [vmem:[#allocation2 + $0x18] sm:$0xff] %v983_v10  ;;  %v981_v6 = vsel %vm5346_vm12, %v973_v26, 0.0  ;;  %3415 = vmatprep.mubr.msk.f32.mxu0 %vm5346_vm12, %v973_v26 }
 0x298   :  { %992 = vst [vmem:[#allocation2 + $0x20] sm:$0xff] %v984_v18  ;;  %993 = vst [vmem:[#allocation2 + $0x28] sm:$0xff] %v985_v5  ;;  %v4651_v16 = vpack.c.bf16 %v1513_v2, %v1512_v29  ;;  %v4683_v42 = vpack.c.bf16 %v1529_v47, %v1528_v23  ;;  %v4655_v48 = vpack.c.bf16 %v1515_v44, %v1514_v43  ;;  %v1517_v26 = vld [vmem:[#allocation3 + $0x528] sm:$0xff]  ;;  %v1500_v10 = vld [vmem:[#allocation3 + $0x4a0] sm:$0xff] }
 0x299   :  { %996 = vst [vmem:[#allocation2 + $0x40] sm:$0xff] %v988_v3  ;;  %994 = vst [vmem:[#allocation2 + $0x30] sm:$0xff] %v986_v15  ;;  %v1501_v18 = vld [vmem:[#allocation3 + $0x4a8] sm:$0xff]  ;;  %v1532_v5 = vld [vmem:[#allocation3 + $0x5a0] sm:$0xff] }
 0x29a   :  { %995 = vst [vmem:[#allocation2 + $0x38] sm:$0xff] %v987_v45  ;;  %989 = vst [vmem:[#allocation2 + $0x8] sm:$0xff] %v981_v6  ;;  %4652 = vmatprep.subr.bf16.mxu0 %v4651_v16  ;;  %4684 = vmatprep.subr.bf16.mxu1 %v4683_v42  ;;  %v4661_v15 = vpack.c.bf16 %v1501_v18, %v1500_v10  ;;  %v1533_v45 = vld [vmem:[#allocation3 + $0x5a8] sm:$0xff]  ;;  %v1518_v6 = vld [vmem:[#allocation3 + $0x530] sm:$0xff] }
 0x29b   :  { %v4691_v3 = vpack.c.bf16 %v1533_v45, %v1532_v5  ;;  %v1521_v29 = vld [vmem:[#allocation3 + $0x548] sm:$0xff]  ;;  %v1504_v16 = vld [vmem:[#allocation3 + $0x4c0] sm:$0xff]  ;;  %v1523_v43 = vld [vmem:[#allocation3 + $0x558] sm:$0xff] }
 0x29c   :  { %v1509_v10 = vld [vmem:[#allocation3 + $0x4e8] sm:$0xff]  ;;  %v1540_v18 = vld [vmem:[#allocation3 + $0x5e0] sm:$0xff] }
 0x29e   :  { %v999_v36 = vld [vmem:[#allocation2 + $0x14] sm:$0xff] }
 0x29f   :  { %v1000_v1 = vld [vmem:[#allocation2 + $0x1c] sm:$0xff]  ;;  %v1001_v24 = vld [vmem:[#allocation2 + $0x24] sm:$0xff] }
 0x2a0   :  { %v1002_v61 = vld [vmem:[#allocation2 + $0x2c] sm:$0xff]  ;;  %v1005_v25 = vld [vmem:[#allocation2 + $0x44] sm:$0xff] }
 0x2a1   :  { %v997_v34 = vld [vmem:[#allocation2 + $0x4] sm:$0xff]  ;;  %v998_v22 = vld [vmem:[#allocation2 + $0xc] sm:$0xff]  ;;  %v1003_v20 = vld [vmem:[#allocation2 + $0x34] sm:$0xff] }
 0x2a2   :  { %3416 = vmatmul.mubr.msk.f32.vlgmr.msra.gmra.mrb[32].mxu0 %vm1006_vm9, %v997_v34  ;;  %4227 = vmatprep.mubr.f32.mxu1 %v998_v22  ;;  %v1004_v19 = vld [vmem:[#allocation2 + $0x3c] sm:$0xff]  ;;  %vm1010_vm9 = vcmp.ge.s32.totalorder %v5159_v32, 4  ;;  %v4653_v32 = vpack.c.bf16 %v1497_v37, %v1496_v35  ;;  %v1536_v37 = vld [vmem:[#allocation3 + $0x5c0] sm:$0xff] }
 0x2a3   :  { %3417 = vmatprep.mubr.msk.f32.mxu0 %vm5352_vm13, %v974_v60  ;;  %4228 = vmatmul.mubr.f32.vlgmr.msra.gmra.mrb[16].mxu1 %v999_v36  ;;  %v1498_v60 = vld [vmem:[#allocation3 + $0x490] sm:$0xff]  ;;  %v1505_v35 = vld [vmem:[#allocation3 + $0x4c8] sm:$0xff] }
 0x2a4   :  { %4230 = vmatprep.mubr.f32.mxu1 %v1000_v1  ;;  %4654 = vmatpush3.bf16.msra.mxu0 %v4653_v32  ;;  %v4669_v23 = vpack.c.bf16 %v1505_v35, %v1504_v16  ;;  %v1537_v32 = vld [vmem:[#allocation3 + $0x5c8] sm:$0xff] }
 0x2a5   :  { %4686 = vmatpush3.bf16.msra.mxu1 %v4683_v42  ;;  %4656 = vmatprep.subr.bf16.mxu0 %v4655_v48  ;;  %v4699_v47 = vpack.c.bf16 %v1537_v32, %v1536_v37  ;;  %v1522_v42 = vld [vmem:[#allocation3 + $0x550] sm:$0xff]  ;;  %v1890_v16 = vld [vmem:[#allocation3 + $0x708] sm:$0xff] }
 0x2a6   :  { %1179 = vmatmul.mubr.f32.gmra.mrb[34].mxu0 %v998_v22  ;;  %v1502_v22 = vld [vmem:[#allocation3 + $0x4b0] sm:$0xff]  ;;  %v4671_v44 = vpack.c.bf16 %v1523_v43, %v1522_v42 }
 0x2a7   :  { %3418 = vmatprep.mubr.msk.f32.mxu0 %vm5364_vm14, %v975_v49  ;;  %4231 = vmatmul.mubr.f32.gmra.mrb[18].mxu1 %v1001_v24  ;;  %v1499_v49 = vld [vmem:[#allocation3 + $0x498] sm:$0xff]  ;;  %v1506_v48 = vld [vmem:[#allocation3 + $0x4d0] sm:$0xff] }
 0x2a8   :  { %4233 = vmatprep.mubr.f32.mxu1 %v1002_v61  ;;  %v5478_v37 = vld [vmem:[#allocation5 + $0x10] sm:$0xff] }
 0x2a9   :  { %v5482_v32 = vrot.slane %v5478_v37, %v5167_v50 }
 0x2aa   :  { %1184 = vmatmul.mubr.f32.gmra.mrb[36].mxu0 %v999_v36  ;;  %v1519_v36 = vld [vmem:[#allocation3 + $0x538] sm:$0xff] }
 0x2ab   :  { %3419 = vmatprep.mubr.msk.f32.mxu0 %vm5384_vm15, %v976_v53  ;;  %4234 = vmatmul.mubr.f32.gmra.mrb[20].mxu1 %v1003_v20  ;;  %v1530_v53 = vld [vmem:[#allocation3 + $0x590] sm:$0xff]  ;;  %v4663_v34 = vpack.c.bf16 %v1519_v36, %v1518_v6  ;;  %v1527_v6 = vld [vmem:[#allocation3 + $0x578] sm:$0xff] }
 0x2ac   :  { %4236 = vmatprep.mubr.f32.mxu1 %v1004_v19 }
 0x2ae   :  { %1189 = vmatmul.mubr.f32.gmra.mrb[38].mxu0 %v1000_v1  ;;  %v1503_v1 = vld [vmem:[#allocation3 + $0x4b8] sm:$0xff] }
 0x2af   :  { %3420 = vmatprep.mubr.msk.f32.mxu0 %vm5397_vm0, %v977_v46  ;;  %4237 = vmatmul.mubr.f32.gmra.mrb[22].mxu1 %v1005_v25  ;;  %v4657_v46 = vpack.c.bf16 %v1499_v49, %v1498_v60  ;;  %v1520_v25 = vld [vmem:[#allocation3 + $0x540] sm:$0xff]  ;;  %v1507_v60 = vld [vmem:[#allocation3 + $0x4d8] sm:$0xff]  ;;  %v1538_v49 = vld [vmem:[#allocation3 + $0x5d0] sm:$0xff] }
 0x2b0   :  { %v4667_v2 = vpack.c.bf16 %v1521_v29, %v1520_v25  ;;  %v1874_v25 = vld [vmem:[#allocation3 + $0x688] sm:$0xff] }
 0x2b1   :  { %4658 = vmatpush3.bf16.msra.mxu0 %v4657_v46  ;;  %v1539_v46 = vld [vmem:[#allocation3 + $0x5d8] sm:$0xff] }
 0x2b2   :  { %3421 = vmatmul.mubr.msk.f32.gmra.mrb[40].mxu0 %vm1010_vm9, %v1001_v24  ;;  %v1534_v24 = vld [vmem:[#allocation3 + $0x5b0] sm:$0xff] }
 0x2b3   :  { %3422 = vmatprep.mubr.msk.f32.mxu0 %vm5410_vm1, %v978_v58  ;;  %v1531_v58 = vld [vmem:[#allocation3 + $0x598] sm:$0xff] }
 0x2b6   :  { %1199 = vmatmul.mubr.f32.gmra.mrb[42].mxu0 %v1002_v61  ;;  %v4665_v61 = vpack.c.bf16 %v1503_v1, %v1502_v22  ;;  %v1511_v22 = vld [vmem:[#allocation3 + $0x4f8] sm:$0xff]  ;;  %v1542_v1 = vld [vmem:[#allocation3 + $0x5f0] sm:$0xff] }
 0x2b7   :  { %3423 = vmatprep.mubr.msk.f32.mxu0 %vm5418_vm10, %v979_v63  ;;  %v4687_v63 = vpack.c.bf16 %v1531_v58, %v1530_v53  ;;  %v4673_v53 = vpack.c.bf16 %v1507_v60, %v1506_v48  ;;  %v4703_v58 = vpack.c.bf16 %v1539_v46, %v1538_v49  ;;  %v1089_v48 = vand.u32 7, %v5147_v11 }
 0x2b9   :  { %4688 = vmatprep.subr.bf16.mxu1 %v4687_v63  ;;  %vm5487_vm9 = vcmp.eq.s32.totalorder %v1089_v48, 0 }
 0x2ba   :  { %1204 = vmatmul.mubr.f32.gmra.mrb[44].mxu0 %v1003_v20  ;;  %4690 = vmatpush3.bf16.msra.mxu1 %v4687_v63  ;;  %v1535_v20 = vld [vmem:[#allocation3 + $0x5b8] sm:$0xff]  ;;  %v1524_v63 = vld [vmem:[#allocation3 + $0x560] sm:$0xff] }
 0x2bb   :  { %3424 = vmatprep.mubr.msk.f32.mxu0 %vm5426_vm11, %v980_v7  ;;  %v1516_v7 = vld [vmem:[#allocation3 + $0x520] sm:$0xff]  ;;  %4692 = vmatprep.subr.bf16.mxu1 %v4691_v3 }
 0x2bc   :  { %v4659_v13 = vpack.c.bf16 %v1517_v26, %v1516_v7  ;;  %v1525_v7 = vld [vmem:[#allocation3 + $0x568] sm:$0xff] }
 0x2bd   :  { %v4675_v26 = vpack.c.bf16 %v1525_v7, %v1524_v63 }
 0x2be   :  { %1209 = vmatmul.mubr.f32.gmra.mrb[46].mxu0 %v1004_v19  ;;  %4660 = vmatprep.subr.bf16.mxu0 %v4659_v13  ;;  %v4695_v19 = vpack.c.bf16 %v1535_v20, %v1534_v24  ;;  %v1508_v13 = vld [vmem:[#allocation3 + $0x4e0] sm:$0xff] }
 0x2bf   :  { %4662 = vmatpush3.bf16.msra.mxu0 %v4661_v15  ;;  %4694 = vmatpush3.bf16.msra.mxu1 %v4691_v3  ;;  %v4677_v5 = vpack.c.bf16 %v1509_v10, %v1508_v13  ;;  %v1541_v15 = vld [vmem:[#allocation3 + $0x5e8] sm:$0xff]  ;;  %v1526_v3 = vld [vmem:[#allocation3 + $0x570] sm:$0xff] }
 0x2c0   :  { %4664 = vmatprep.subr.bf16.mxu0 %v4663_v34  ;;  %4696 = vmatprep.subr.bf16.mxu1 %v4695_v19  ;;  %v4707_v45 = vpack.c.bf16 %v1541_v15, %v1540_v18  ;;  %v4679_v36 = vpack.c.bf16 %v1527_v6, %v1526_v3  ;;  %v1510_v34 = vld [vmem:[#allocation3 + $0x4f0] sm:$0xff] }
 0x2c1   :  { %v4681_v24 = vpack.c.bf16 %v1511_v22, %v1510_v34 }
 0x2c3   :  { %4666 = vmatpush3.bf16.msra.mxu0 %v4665_v61  ;;  %4698 = vmatpush3.bf16.msra.mxu1 %v4695_v19  ;;  %v1543_v61 = vld [vmem:[#allocation3 + $0x5f8] sm:$0xff]  ;;  %v1873_v19 = vld [vmem:[#allocation3 + $0x680] sm:$0xff] }
 0x2c4   :  { %4668 = vmatprep.subr.bf16.mxu0 %v4667_v2  ;;  %4700 = vmatprep.subr.bf16.mxu1 %v4699_v47  ;;  %v4711_v20 = vpack.c.bf16 %v1543_v61, %v1542_v1  ;;  %v4715_v29 = vpack.c.bf16 %v1874_v25, %v1873_v19  ;;  %v1889_v2 = vld [vmem:[#allocation3 + $0x700] sm:$0xff]  ;;  %v2717_v1 = vld [vmem:[#allocation3 + $0x988] sm:$0xff] }
 0x2c5   :  { %v5475_v35 = vpack.c.bf16 %v1890_v16, %v1889_v2 }
 0x2c7   :  { %4670 = vmatpush3.bf16.msra.mxu0 %v4669_v23  ;;  %4702 = vmatpush3.bf16.msra.mxu1 %v4699_v47 }
 0x2c8   :  { %4672 = vmatprep.subr.bf16.mxu0 %v4671_v44  ;;  %4704 = vmatprep.subr.bf16.mxu1 %v4703_v58 }
 0x2cb   :  { %4674 = vmatpush3.bf16.msra.mxu0 %v4673_v53  ;;  %4706 = vmatpush3.bf16.msra.mxu1 %v4703_v58  ;;  %v1090_v53 = vand.u32 7, %v5176_v55 }
 0x2cc   :  { %4676 = vmatprep.subr.bf16.mxu0 %v4675_v26  ;;  %4708 = vmatprep.subr.bf16.mxu1 %v4707_v45 }
 0x2cd   :  { %vm5493_vm8 = vcmp.eq.s32.totalorder %v1090_v53, 0 }
 0x2cf   :  { %4678 = vmatpush3.bf16.msra.mxu0 %v4677_v5  ;;  %4710 = vmatpush3.bf16.msra.mxu1 %v4707_v45  ;;  %v1091_v5 = vand.u32 7, %v5181_v62 }
 0x2d0   :  { %4680 = vmatprep.subr.bf16.mxu0 %v4679_v36  ;;  %4712 = vmatprep.subr.bf16.mxu1 %v4711_v20 }
 0x2d1   :  { %vm5505_vm7 = vcmp.eq.s32.totalorder %v1091_v5, 0 }
 0x2d3   :  { %4682 = vmatpush3.bf16.msra.mxu0 %v4681_v24  ;;  %4714 = vmatpush3.bf16.msra.mxu1 %v4711_v20 }
 0x2d4   :  { %4716 = vmatprep.subr.bf16.mxu0 %v4715_v29  ;;  %4748 = vmatprep.subr.bf16.mxu1 %v5475_v35  ;;  %v1092_v29 = vand.u32 7, %v5195_v12 }
 0x2d6   :  { %vm5525_vm6 = vcmp.eq.s32.totalorder %v1092_v29, 0 }
 0x375   :  { %v3659_v23 = vpop.f32.mrb[32].mxu0 }
 0x376   :  { %v3660_v47 = vpop.f32.mrb[33].mxu0  ;;  %v4229_v42 = vpop.f32.mrb[16].mxu1 }
 0x377   :  { %v3661_v43 = vadd.f32 %v3660_v47, %v3659_v23  ;;  %v1280_v44 = vpop.f32.mrb[17].mxu1 }
 0x379   :  { %v1176_v60 = vadd.f32 %v3661_v43, %v5482_v32  ;;  %v3662_v49 = vpop.f32.mrb[34].mxu0 }
 0x37a   :  { %v3663_v46 = vpop.f32.mrb[35].mxu0  ;;  %v4232_v58 = vpop.f32.mrb[18].mxu1 }
 0x37b   :  { %v1281_v63 = vadd.f32 %v1280_v44, %v1176_v60  ;;  %v3664_v7 = vadd.f32 %v3663_v46, %v3662_v49  ;;  %v1290_v26 = vpop.f32.mrb[19].mxu1 }
 0x37d   :  { %v1181_v10 = vadd.f32 %v3664_v7, %v5482_v32  ;;  %v3665_v18 = vpop.f32.mrb[36].mxu0  ;;  %v5499_v3 = vsel %vm5487_vm9, %v1281_v63, 0.0  ;;  %v1093_v63 = vand.u32 7, %v5155_v28 }
 0x37e   :  { %v3666_v45 = vpop.f32.mrb[37].mxu0  ;;  %v4235_v55 = vpop.f32.mrb[20].mxu1  ;;  %v1357_v20 = vmul.f32 %v5499_v3, %v5499_v3 }
 0x37f   :  { %v1286_v6 = vadd.f32 %v4229_v42, %v1181_v10  ;;  %v3667_v36 = vadd.f32 %v3666_v45, %v3665_v18  ;;  %v1300_v34 = vpop.f32.mrb[21].mxu1  ;;  %vm5538_vm5 = vcmp.eq.s32.totalorder %v1093_v63, 0 }
 0x381   :  { %v5503_v22 = vsel %vm5493_vm8, %v1286_v6, 0.0  ;;  %v1186_v24 = vadd.f32 %v3667_v36, %v5482_v32  ;;  %v3668_v61 = vpop.f32.mrb[38].mxu0 }
 0x382   :  { %v1343_v19 = vadd.f32 %v5503_v22, %v5499_v3  ;;  %v1358_v25 = vmul.f32 %v5503_v22, %v5503_v22  ;;  %v3669_v2 = vpop.f32.mrb[39].mxu0  ;;  %v4238_v16 = vpop.f32.mrb[22].mxu1 }
 0x383   :  { %v1291_v23 = vadd.f32 %v1290_v26, %v1186_v24  ;;  %v3670_v47 = vadd.f32 %v3669_v2, %v3668_v61  ;;  %v1310_v42 = vpop.f32.mrb[23].mxu1  ;;  %v2701_v61 = vld [vmem:[#allocation3 + $0x908] sm:$0xff] }
 0x384   :  { %v1365_v43 = vadd.f32 %v1358_v25, %v1357_v20 }
 0x385   :  { %v5519_v44 = vsel %vm5505_vm7, %v1291_v23, 0.0  ;;  %v1191_v48 = vadd.f32 %v3670_v47, %v5482_v32  ;;  %v3671_v60 = vpop.f32.mrb[40].mxu0 }
 0x386   :  { %v1344_v49 = vadd.f32 %v1343_v19, %v5519_v44  ;;  %v1359_v53 = vmul.f32 %v5519_v44, %v5519_v44  ;;  %v3672_v7 = vpop.f32.mrb[41].mxu0 }
 0x387   :  { %v1296_v26 = vadd.f32 %v4232_v58, %v1191_v48  ;;  %v3673_v10 = vadd.f32 %v3672_v7, %v3671_v60  ;;  %v1094_v58 = vand.u32 7, %v5223_v38  ;;  %v1095_v38 = vand.u32 7, %v5247_v59 }
 0x388   :  { %v1366_v18 = vadd.f32 %v1365_v43, %v1359_v53 }
 0x389   :  { %v5532_v5 = vsel %vm5525_vm6, %v1296_v26, 0.0  ;;  %v1196_v45 = vadd.f32 %v3673_v10, %v5482_v32  ;;  %v3674_v6 = vpop.f32.mrb[42].mxu0  ;;  %vm5551_vm4 = vcmp.eq.s32.totalorder %v1094_v58, 0  ;;  %vm5559_vm3 = vcmp.eq.s32.totalorder %v1095_v38, 0 }
 0x38a   :  { %v1345_v36 = vadd.f32 %v1344_v49, %v5532_v5  ;;  %v1360_v24 = vmul.f32 %v5532_v5, %v5532_v5  ;;  %v3675_v20 = vpop.f32.mrb[43].mxu0 }
 0x38b   :  { %v1301_v19 = vadd.f32 %v1300_v34, %v1196_v45  ;;  %v3676_v25 = vadd.f32 %v3675_v20, %v3674_v6 }
 0x38c   :  { %v1367_v29 = vadd.f32 %v1366_v18, %v1360_v24 }
 0x38d   :  { %v5545_v2 = vsel %vm5538_vm5, %v1301_v19, 0.0  ;;  %v1201_v23 = vadd.f32 %v3676_v25, %v5482_v32  ;;  %v3677_v47 = vpop.f32.mrb[44].mxu0 }
 0x38e   :  { %v1346_v43 = vadd.f32 %v1345_v36, %v5545_v2  ;;  %v1361_v48 = vmul.f32 %v5545_v2, %v5545_v2  ;;  %v3678_v34 = vpop.f32.mrb[45].mxu0  ;;  %v1096_v36 = vand.u32 7, %v5262_v8 }
 0x38f   :  { %v1306_v49 = vadd.f32 %v4235_v55, %v1201_v23  ;;  %v3679_v53 = vadd.f32 %v3678_v34, %v3677_v47  ;;  %v2734_v47 = vld [vmem:[#allocation3 + $0xa10] sm:$0xff] }
 0x390   :  { %v1368_v63 = vadd.f32 %v1367_v29, %v1361_v48  ;;  %vm5567_vm2 = vcmp.eq.s32.totalorder %v1096_v36, 0 }
 0x391   :  { %v1340_v7 = vsel %vm5551_vm4, %v1306_v49, 0.0  ;;  %v1206_v26 = vadd.f32 %v3679_v53, %v5482_v32  ;;  %v3680_v10 = vpop.f32.mrb[46].mxu0 }
 0x392   :  { %v1347_v18 = vadd.f32 %v1346_v43, %v1340_v7  ;;  %v1362_v45 = vmul.f32 %v1340_v7, %v1340_v7  ;;  %v3681_v24 = vpop.f32.mrb[47].mxu0 }
 0x393   :  { %v1311_v58 = vadd.f32 %v1310_v42, %v1206_v26  ;;  %v3682_v20 = vadd.f32 %v3681_v24, %v3680_v10 }
 0x394   :  { %v1369_v55 = vadd.f32 %v1368_v63, %v1362_v45 }
 0x395   :  { %v1341_v19 = vsel %vm5559_vm3, %v1311_v58, 0.0  ;;  %v1211_v25 = vadd.f32 %v3682_v20, %v5482_v32 }
 0x396   :  { %v1348_v29 = vadd.f32 %v1347_v18, %v1341_v19  ;;  %v1363_v23 = vmul.f32 %v1341_v19, %v1341_v19 }
 0x397   :  { %v1316_v43 = vadd.f32 %v4238_v16, %v1211_v25 }
 0x398   :  { %v1370_v48 = vadd.f32 %v1369_v55, %v1363_v23 }
 0x399   :  { %v1342_v38 = vsel %vm5567_vm2, %v1316_v43, 0.0 }
 0x39a   :  { %v1349_v34 = vadd.f32 %v1348_v29, %v1342_v38  ;;  %v1364_v42 = vmul.f32 %v1342_v38, %v1342_v38 }
 0x39c   :  { %v1350_v49 = vrot.slane %v1349_v34, 4  ;;  %v1371_v53 = vadd.f32 %v1370_v48, %v1364_v42 }
 0x39e   :  { %v1351_v63 = vadd.f32 %v1350_v49, %v1349_v34  ;;  %v1372_v26 = vrot.slane %v1371_v53, 4 }
 0x3a0   :  { %v1352_v10 = vrot.slane %v1351_v63, 2  ;;  %v1373_v45 = vadd.f32 %v1372_v26, %v1371_v53 }
 0x3a2   :  { %v1353_v32 = vadd.f32 %v1352_v10, %v1351_v63  ;;  %v1374_v18 = vrot.slane %v1373_v45, 2  ;;  %v1402_v10 = vrot.slane %v5478_v37, %v5288_v30 }
 0x3a4   :  { %v1354_v24 = vrot.slane %v1353_v32, 1  ;;  %v1375_v36 = vadd.f32 %v1374_v18, %v1373_v45 }
 0x3a6   :  { %v1355_v58 = vadd.f32 %v1354_v24, %v1353_v32  ;;  %v1376_v20 = vrot.slane %v1375_v36, 1 }
 0x3a8   :  { %v1356_v40 = vmul.f32 0.125, %v1355_v58  ;;  %v1377_v16 = vadd.f32 %v1376_v20, %v1375_v36 }
 0x3aa   :  { %v1378_v55 = vmul.f32 0.125, %v1377_v16  ;;  %v1379_v25 = vmul.f32 %v1356_v40, %v1356_v40  ;;  %v1384_v23 = vsub.f32 %v5532_v5, %v1356_v40  ;;  %v1385_v29 = vsub.f32 %v5545_v2, %v1356_v40 }
 0x3ab   :  { %v1386_v43 = vsub.f32 %v1340_v7, %v1356_v40  ;;  %v1387_v48 = vsub.f32 %v1341_v19, %v1356_v40  ;;  %v1388_v34 = vsub.f32 %v1342_v38, %v1356_v40  ;;  %v1381_v42 = vsub.f32 %v5499_v3, %v1356_v40 }
 0x3ac   :  { %v1380_v49 = vsub.f32 %v1378_v55, %v1379_v25  ;;  %v1382_v53 = vsub.f32 %v5503_v22, %v1356_v40  ;;  %v1383_v63 = vsub.f32 %v5519_v44, %v1356_v40  ;;  %v1414_v5 = vrot.slane %v5478_v37, %v5291_v33  ;;  %v1857_v37 = vld [vmem:[#allocation3 + $0x600] sm:$0xff] }
 0x3ae   :  { %v1389_v26 = vadd.f32 1e-05, %v1380_v49 }
 0x3b0   :  { %4980 = vrsqrt.f32 %v1389_v26 }
 0x3ba   :  { %v4981_v45 = vpop.eup %4980 }
 0x3bb   :  { %v1394_v2 = vmul.f32 %v4981_v45, %v1384_v23  ;;  %v1395_v7 = vmul.f32 %v4981_v45, %v1385_v29  ;;  %v1396_v19 = vmul.f32 %v4981_v45, %v1386_v43  ;;  %v1397_v38 = vmul.f32 %v4981_v45, %v1387_v48  ;;  %v1858_v23 = vld [vmem:[#allocation3 + $0x608] sm:$0xff] }
 0x3bc   :  { %v1398_v32 = vmul.f32 %v4981_v45, %v1388_v34  ;;  %v1391_v3 = vmul.f32 %v4981_v45, %v1381_v42  ;;  %v1392_v18 = vmul.f32 %v4981_v45, %v1382_v53  ;;  %v1393_v24 = vmul.f32 %v4981_v45, %v1383_v63  ;;  %v1875_v42 = vld [vmem:[#allocation3 + $0x690] sm:$0xff]  ;;  %v1876_v53 = vld [vmem:[#allocation3 + $0x698] sm:$0xff] }
 0x3bd   :  { %v1406_v22 = vmul.f32 %v1402_v10, %v1394_v2  ;;  %v1407_v36 = vmul.f32 %v1402_v10, %v1395_v7  ;;  %v1408_v40 = vmul.f32 %v1402_v10, %v1396_v19  ;;  %v1409_v29 = vmul.f32 %v1402_v10, %v1397_v38  ;;  %v1891_v7 = vld [vmem:[#allocation3 + $0x710] sm:$0xff]  ;;  %v1892_v19 = vld [vmem:[#allocation3 + $0x718] sm:$0xff] }
 0x3be   :  { %v1403_v44 = vmul.f32 %v1402_v10, %v1391_v3  ;;  %v1404_v58 = vmul.f32 %v1402_v10, %v1392_v18  ;;  %v1405_v20 = vmul.f32 %v1402_v10, %v1393_v24  ;;  %v1410_v43 = vmul.f32 %v1402_v10, %v1398_v32  ;;  %v1859_v24 = vld [vmem:[#allocation3 + $0x610] sm:$0xff] }
 0x3bf   :  { %v5582_v16 = vadd.f32 %v1414_v5, %v1406_v22  ;;  %v1419_v48 = vadd.f32 %v1414_v5, %v1407_v36  ;;  %v1420_v34 = vadd.f32 %v1414_v5, %v1408_v40  ;;  %v4717_v3 = vpack.c.bf16 %v1858_v23, %v1857_v37  ;;  %v1860_v22 = vld [vmem:[#allocation3 + $0x618] sm:$0xff]  ;;  %v5587_v32 = vld [vmem:[#allocation2] sm:$0xff]  ;;  %v1877_v36 = vld [vmem:[#allocation3 + $0x6a0] sm:$0xff] }
 0x3c0   :  { %v1415_v55 = vadd.f32 %v1414_v5, %v1403_v44  ;;  %v1416_v25 = vadd.f32 %v1414_v5, %v1404_v58  ;;  %v1417_v49 = vadd.f32 %v1414_v5, %v1405_v20  ;;  %v4719_v18 = vpack.c.bf16 %v1876_v53, %v1875_v42  ;;  %v1878_v40 = vld [vmem:[#allocation3 + $0x6a8] sm:$0xff]  ;;  %v1880_v23 = vld [vmem:[#allocation3 + $0x6b8] sm:$0xff]  ;;  %v1881_v42 = vld [vmem:[#allocation3 + $0x6c0] sm:$0xff] }
 0x3c1   :  { %v1426_v63 = vmax.f32 %v5582_v16, 0.0  ;;  %v1421_v38 = vadd.f32 %v1414_v5, %v1409_v29  ;;  %v1427_v10 = vmax.f32 %v1419_v48, 0.0  ;;  %v4751_v44 = vpack.c.bf16 %v1892_v19, %v1891_v7  ;;  %v1863_v48 = vld [vmem:[#allocation3 + $0x630] sm:$0xff]  ;;  %v1882_v53 = vld [vmem:[#allocation3 + $0x6c8] sm:$0xff] }
 0x3c2   :  { %v1423_v26 = vmax.f32 %v1415_v55, 0.0  ;;  %v1424_v45 = vmax.f32 %v1416_v25, 0.0  ;;  %v1425_v2 = vmax.f32 %v1417_v49, 0.0  ;;  %v1422_v58 = vadd.f32 %v1414_v5, %v1410_v43  ;;  %v1861_v25 = vld [vmem:[#allocation3 + $0x620] sm:$0xff]  ;;  %v1862_v49 = vld [vmem:[#allocation3 + $0x628] sm:$0xff]  ;;  %v1879_v5 = vld [vmem:[#allocation3 + $0x6b0] sm:$0xff] }
 0x3c3   :  { %v1428_v20 = vmax.f32 %v1420_v34, 0.0  ;;  %v4721_v16 = vpack.c.bf16 %v1860_v22, %v1859_v24  ;;  %v4723_v55 = vpack.c.bf16 %v1878_v40, %v1877_v36  ;;  %v1429_v37 = vmax.f32 %v1421_v38, 0.0  ;;  %v1864_v34 = vld [vmem:[#allocation3 + $0x638] sm:$0xff]  ;;  %v1866_v19 = vld [vmem:[#allocation3 + $0x648] sm:$0xff]  ;;  %v1883_v24 = vld [vmem:[#allocation3 + $0x6d0] sm:$0xff] }
 0x3c4   :  { %3425 = vmatprep.mubr.msk.f32.mxu0 %vm5487_vm9, %v1423_v26  ;;  %4989 = vmatprep.mubr.msk.f32.mxu1 %vm5493_vm8, %v1424_v45  ;;  %v1430_v29 = vmax.f32 %v1422_v58, 0.0  ;;  %v4725_v43 = vpack.c.bf16 %v1862_v49, %v1861_v25  ;;  %v4731_v7 = vpack.c.bf16 %v1882_v53, %v1881_v42  ;;  %v1884_v22 = vld [vmem:[#allocation3 + $0x6d8] sm:$0xff]  ;;  %v1895_v38 = vld [vmem:[#allocation3 + $0x730] sm:$0xff]  ;;  %v1897_v25 = vld [vmem:[#allocation3 + $0x740] sm:$0xff] }
 0x3c5   :  { %1631 = vmatmul.mubr.f32.vlgmr.msra.gmra.mrb[48].mxu0 %v5587_v32  ;;  %4990 = vmatmul.mubr.msk.f32.vlgmr.msra.gmra.mrb[24].mxu1 %vm5505_vm7, %v1425_v2  ;;  %v1867_v36 = vld [vmem:[#allocation3 + $0x650] sm:$0xff]  ;;  %v1868_v40 = vld [vmem:[#allocation3 + $0x658] sm:$0xff] }
 0x3c6   :  { %3426 = vmatprep.mubr.msk.f32.mxu0 %vm5493_vm8, %v1424_v45  ;;  %4991 = vmatprep.mubr.msk.f32.mxu1 %vm5525_vm6, %v1426_v63  ;;  %v4737_v58 = vpack.c.bf16 %v1868_v40, %v1867_v36  ;;  %v1871_v53 = vld [vmem:[#allocation3 + $0x670] sm:$0xff] }
 0x3c7   :  { %4718 = vmatpush3.bf16.msra.mxu0 %v4717_v3  ;;  %4750 = vmatpush3.bf16.msra.mxu1 %v5475_v35  ;;  %v4727_v35 = vpack.c.bf16 %v1880_v23, %v1879_v5  ;;  %v1870_v5 = vld [vmem:[#allocation3 + $0x668] sm:$0xff] }
 0x3c8   :  { %4720 = vmatprep.subr.bf16.mxu0 %v4719_v18  ;;  %4752 = vmatprep.subr.bf16.mxu1 %v4751_v44  ;;  %v1898_v23 = vld [vmem:[#allocation3 + $0x748] sm:$0xff] }
 0x3c9   :  { %4992 = vmatmul.mubr.msk.f32.gmra.mrb[50].mxu0 %vm5487_vm9, %v1423_v26  ;;  %4993 = vmatmul.mubr.msk.f32.gmra.mrb[26].mxu1 %vm5538_vm5, %v1427_v10  ;;  %v4729_v26 = vpack.c.bf16 %v1864_v34, %v1863_v48  ;;  %v1888_v48 = vld [vmem:[#allocation3 + $0x6f8] sm:$0xff]  ;;  %v1899_v34 = vld [vmem:[#allocation3 + $0x750] sm:$0xff] }
 0x3ca   :  { %3427 = vmatprep.mubr.msk.f32.mxu0 %vm5505_vm7, %v1425_v2  ;;  %4994 = vmatprep.mubr.msk.f32.mxu1 %vm5551_vm4, %v1428_v20 }
 0x3cb   :  { %4722 = vmatpush3.bf16.msra.mxu0 %v4721_v16  ;;  %4754 = vmatpush3.bf16.msra.mxu1 %v4751_v44  ;;  %v1896_v44 = vld [vmem:[#allocation3 + $0x738] sm:$0xff]  ;;  %v1885_v16 = vld [vmem:[#allocation3 + $0x6e0] sm:$0xff] }
 0x3cc   :  { %4724 = vmatprep.subr.bf16.mxu0 %v4723_v55  ;;  %v1886_v55 = vld [vmem:[#allocation3 + $0x6e8] sm:$0xff] }
 0x3cd   :  { %4995 = vmatmul.mubr.msk.f32.gmra.mrb[52].mxu0 %vm5493_vm8, %v1424_v45  ;;  %4996 = vmatmul.mubr.msk.f32.gmra.mrb[28].mxu1 %vm5559_vm3, %v1429_v37  ;;  %v1894_v45 = vld [vmem:[#allocation3 + $0x728] sm:$0xff]  ;;  %v4739_v49 = vpack.c.bf16 %v1886_v55, %v1885_v16 }
 0x3ce   :  { %3428 = vmatprep.mubr.msk.f32.mxu0 %vm5525_vm6, %v1426_v63  ;;  %4997 = vmatprep.mubr.msk.f32.mxu1 %vm5567_vm2, %v1430_v29  ;;  %v1893_v63 = vld [vmem:[#allocation3 + $0x720] sm:$0xff] }
 0x3cf   :  { %4726 = vmatpush3.bf16.msra.mxu0 %v4725_v43  ;;  %v4755_v3 = vpack.c.bf16 %v1894_v45, %v1893_v63  ;;  %v4763_v43 = vpack.c.bf16 %v1898_v23, %v1897_v25 }
 0x3d0   :  { %4728 = vmatprep.subr.bf16.mxu0 %v4727_v35  ;;  %v1887_v35 = vld [vmem:[#allocation3 + $0x6f0] sm:$0xff] }
 0x3d1   :  { %4998 = vmatmul.mubr.msk.f32.gmra.mrb[54].mxu0 %vm5505_vm7, %v1425_v2  ;;  %4281 = vmatmul.mubr.f32.gmra.mrb[30].mxu1 %v5587_v32  ;;  %v1865_v2 = vld [vmem:[#allocation3 + $0x640] sm:$0xff]  ;;  %v4743_v42 = vpack.c.bf16 %v1888_v48, %v1887_v35  ;;  %v1548_v48 = vand.u32 15, %v5181_v62 }
 0x3d2   :  { %3429 = vmatprep.mubr.msk.f32.mxu0 %vm5538_vm5, %v1427_v10  ;;  %4315 = vmatprep.mubr.f32.mxu1 %v5587_v32  ;;  %v4733_v18 = vpack.c.bf16 %v1866_v19, %v1865_v2  ;;  %v1901_v2 = vld [vmem:[#allocation3 + $0x760] sm:$0xff]  ;;  %v1902_v19 = vld [vmem:[#allocation3 + $0x768] sm:$0xff] }
 0x3d3   :  { %4730 = vmatpush3.bf16.msra.mxu0 %v4729_v26  ;;  %4756 = vmatprep.subr.bf16.mxu1 %v4755_v3  ;;  %v1872_v26 = vld [vmem:[#allocation3 + $0x678] sm:$0xff]  ;;  %vm5645_vm10 = vcmp.eq.s32.totalorder %v1548_v48, 0 }
 0x3d4   :  { %4732 = vmatprep.subr.bf16.mxu0 %v4731_v7  ;;  %4758 = vmatpush3.bf16.msra.mxu1 %v4755_v3  ;;  %v1900_v7 = vld [vmem:[#allocation3 + $0x758] sm:$0xff]  ;;  %v4745_v63 = vpack.c.bf16 %v1872_v26, %v1871_v53  ;;  %v4771_v3 = vpack.c.bf16 %v1902_v19, %v1901_v2 }
 0x3d5   :  { %1651 = vmatmul.mubr.f32.gmra.mrb[56].mxu0 %v5587_v32  ;;  %v4767_v45 = vpack.c.bf16 %v1900_v7, %v1899_v34  ;;  %v2309_v7 = vld [vmem:[#allocation3 + $0x890] sm:$0xff] }
 0x3d6   :  { %3430 = vmatprep.mubr.msk.f32.mxu0 %vm5551_vm4, %v1428_v20 }
 0x3d7   :  { %4734 = vmatpush3.bf16.msra.mxu0 %v4733_v18  ;;  %v1903_v18 = vld [vmem:[#allocation3 + $0x770] sm:$0xff] }
 0x3d9   :  { %4999 = vmatmul.mubr.msk.f32.gmra.mrb[58].mxu0 %vm5538_vm5, %v1427_v10  ;;  %v4735_v10 = vpack.c.bf16 %v1884_v22, %v1883_v24  ;;  %v1904_v24 = vld [vmem:[#allocation3 + $0x778] sm:$0xff] }
 0x3da   :  { %3431 = vmatprep.mubr.msk.f32.mxu0 %vm5559_vm3, %v1429_v37  ;;  %v4775_v22 = vpack.c.bf16 %v1904_v24, %v1903_v18  ;;  %v1550_v18 = vand.u32 15, %v5155_v28 }
 0x3db   :  { %4736 = vmatprep.subr.bf16.mxu0 %v4735_v10 }
 0x3dc   :  { %4738 = vmatpush3.bf16.msra.mxu0 %v4737_v58  ;;  %v1546_v58 = vand.u32 15, %v5147_v11 }
 0x3dd   :  { %5000 = vmatmul.mubr.msk.f32.gmra.mrb[60].mxu0 %vm5551_vm4, %v1428_v20  ;;  %v4759_v20 = vpack.c.bf16 %v1896_v44, %v1895_v38  ;;  %4740 = vmatprep.subr.bf16.mxu0 %v4739_v49  ;;  %v1545_v38 = vld [vmem:[#allocation5 + $0x18] sm:$0xff] }
 0x3de   :  { %3432 = vmatprep.mubr.msk.f32.mxu0 %vm5567_vm2, %v1430_v29  ;;  %v1565_v36 = vrot.slane %v1545_v38, %v5167_v50  ;;  %vm5636_vm11 = vcmp.eq.s32.totalorder %v1546_v58, 0  ;;  %v1552_v58 = vand.u32 15, %v5247_v59  ;;  %v2291_v59 = vld [vmem:[#allocation3 + $0x800] sm:$0xff] }
 0x3df   :  { %4760 = vmatprep.subr.bf16.mxu1 %v4759_v20 }
 0x3e0   :  { %4762 = vmatpush3.bf16.msra.mxu1 %v4759_v20  ;;  %vm1560_vm1 = vcmp.eq.s32.totalorder %v1552_v58, 0  ;;  %v2281_v58 = vld [vmem:[#allocation3 + $0x7b0] sm:$0xff] }
 0x3e1   :  { %5001 = vmatmul.mubr.msk.f32.gmra.mrb[62].mxu0 %vm5559_vm3, %v1429_v37  ;;  %v1869_v37 = vld [vmem:[#allocation3 + $0x660] sm:$0xff]  ;;  %4764 = vmatprep.subr.bf16.mxu1 %v4763_v43 }
 0x3e2   :  { %v4741_v29 = vpack.c.bf16 %v1870_v5, %v1869_v37  ;;  %v2292_v37 = vld [vmem:[#allocation3 + $0x808] sm:$0xff] }
 0x3e4   :  { %4742 = vmatpush3.bf16.msra.mxu0 %v4741_v29  ;;  %4766 = vmatpush3.bf16.msra.mxu1 %v4763_v43 }
 0x3e5   :  { %4744 = vmatprep.subr.bf16.mxu0 %v4743_v42  ;;  %4768 = vmatprep.subr.bf16.mxu1 %v4767_v45 }
 0x3e8   :  { %4746 = vmatpush3.bf16.msra.mxu0 %v4745_v63  ;;  %4770 = vmatpush3.bf16.msra.mxu1 %v4767_v45 }
 0x3e9   :  { %4772 = vmatprep.subr.bf16.mxu1 %v4771_v3 }
 0x3ec   :  { %4774 = vmatpush3.bf16.msra.mxu1 %v4771_v3 }
 0x3ed   :  { %4776 = vmatprep.subr.bf16.mxu1 %v4775_v22 }
 0x3f0   :  { %4778 = vmatpush3.bf16.msra.mxu1 %v4775_v22 }
 0x498   :  { %v3739_v10 = vpop.f32.mrb[48].mxu0  ;;  %v4273_v44 = vpop.f32.mrb[24].mxu1 }
 0x499   :  { %v3740_v40 = vpop.f32.mrb[49].mxu0  ;;  %v1737_v16 = vpop.f32.mrb[25].mxu1 }
 0x49a   :  { %v3741_v20 = vadd.f32 %v3740_v40, %v3739_v10 }
 0x49c   :  { %v3742_v55 = vpop.f32.mrb[50].mxu0  ;;  %v1633_v25 = vadd.f32 %v3741_v20, %v1565_v36  ;;  %v4276_v5 = vpop.f32.mrb[26].mxu1 }
 0x49d   :  { %v3743_v49 = vpop.f32.mrb[51].mxu0  ;;  %v1747_v29 = vpop.f32.mrb[27].mxu1  ;;  %v4779_v5 = vpack.c.bf16 %v2292_v37, %v2291_v59  ;;  %v2299_v59 = vld [vmem:[#allocation3 + $0x840] sm:$0xff]  ;;  %v2300_v37 = vld [vmem:[#allocation3 + $0x848] sm:$0xff] }
 0x49e   :  { %v1738_v23 = vadd.f32 %v1737_v16, %v1633_v25 }
 0x49f   :  { %4780 = vmatprep.subr.bf16.mxu0 %v4779_v5  ;;  %v4795_v5 = vpack.c.bf16 %v2300_v37, %v2299_v59 }
 0x4a0   :  { %v3745_v43 = vpop.f32.mrb[52].mxu0  ;;  %3433 = vmatprep.mubr.msk.f32.mxu0 %vm5636_vm11, %v1738_v23  ;;  %v4279_v11 = vpop.f32.mrb[28].mxu1 }
 0x4a1   :  { %v3746_v35 = vpop.f32.mrb[53].mxu0  ;;  %1976 = vmatmul.mubr.f32.vlgmr.msra.gmra.mrb[64].mxu0 %v5587_v32  ;;  %v1757_v42 = vpop.f32.mrb[29].mxu1  ;;  %v2293_v11 = vld [vmem:[#allocation3 + $0x810] sm:$0xff] }
 0x4a2   :  { %v3747_v34 = vadd.f32 %v3746_v35, %v3745_v43  ;;  %1980 = vmatprep.mubr.f32.mxu0 %v5587_v32  ;;  %v2308_v35 = vld [vmem:[#allocation3 + $0x888] sm:$0xff] }
 0x4a4   :  { %v1643_v53 = vadd.f32 %v3747_v34, %v1565_v36  ;;  %v3748_v26 = vpop.f32.mrb[54].mxu0  ;;  %v4282_v45 = vpop.f32.mrb[30].mxu1  ;;  %v2294_v34 = vld [vmem:[#allocation3 + $0x818] sm:$0xff] }
 0x4a5   :  { %v3749_v63 = vpop.f32.mrb[55].mxu0  ;;  %5002 = vmatmul.mubr.msk.f32.gmra.mrb[66].mxu0 %vm5636_vm11, %v1738_v23  ;;  %v1767_v62 = vpop.f32.mrb[31].mxu1  ;;  %vm1558_vm11 = vcmp.eq.s32.totalorder %v1550_v18, 0  ;;  %v2275_v23 = vld [vmem:[#allocation3 + $0x780] sm:$0xff]  ;;  %v2278_v26 = vld [vmem:[#allocation3 + $0x798] sm:$0xff]  ;;  %v2280_v18 = vld [vmem:[#allocation3 + $0x7a8] sm:$0xff] }
 0x4a6   :  { %v1748_v2 = vadd.f32 %v1747_v29, %v1643_v53  ;;  %v2307_v29 = vld [vmem:[#allocation3 + $0x880] sm:$0xff]  ;;  %v2277_v53 = vld [vmem:[#allocation3 + $0x790] sm:$0xff]  ;;  %v2310_v63 = vld [vmem:[#allocation3 + $0x898] sm:$0xff] }
 0x4a7   :  { %v4811_v48 = vpack.c.bf16 %v2308_v35, %v2307_v29  ;;  %v4815_v45 = vpack.c.bf16 %v2310_v63, %v2309_v7  ;;  %v2315_v29 = vld [vmem:[#allocation3 + $0x8c0] sm:$0xff]  ;;  %v2316_v35 = vld [vmem:[#allocation3 + $0x8c8] sm:$0xff]  ;;  %v2317_v7 = vld [vmem:[#allocation3 + $0x8d0] sm:$0xff] }
 0x4a8   :  { %v3751_v19 = vpop.f32.mrb[56].mxu0  ;;  %3434 = vmatprep.mubr.msk.f32.mxu0 %vm5645_vm10, %v1748_v2  ;;  %5003 = vmatmul.mubr.msk.f32.vlgmr.msra.gmra.mrb[32].mxu1 %vm5645_vm10, %v1748_v2  ;;  %v2318_v63 = vld [vmem:[#allocation3 + $0x8d8] sm:$0xff] }
 0x4a9   :  { %v3752_v3 = vpop.f32.mrb[57].mxu0  ;;  %1986 = vmatmul.mubr.f32.gmra.mrb[68].mxu0 %v5587_v32  ;;  %4318 = vmatprep.mubr.f32.mxu1 %v5587_v32 }
 0x4aa   :  { %v3753_v24 = vadd.f32 %v3752_v3, %v3751_v19  ;;  %1990 = vmatprep.mubr.f32.mxu0 %v5587_v32  ;;  %4812 = vmatprep.subr.bf16.mxu1 %v4811_v48  ;;  %v2279_v3 = vld [vmem:[#allocation3 + $0x7a0] sm:$0xff] }
 0x4ab   :  { %4814 = vmatpush3.bf16.msra.mxu1 %v4811_v48  ;;  %v4827_v48 = vpack.c.bf16 %v2316_v35, %v2315_v29 }
 0x4ac   :  { %v1653_v22 = vadd.f32 %v3753_v24, %v1565_v36  ;;  %v3754_v38 = vpop.f32.mrb[58].mxu0  ;;  %4319 = vmatmul.mubr.f32.gmra.mrb[34].mxu1 %v5587_v32  ;;  %4816 = vmatprep.subr.bf16.mxu1 %v4815_v45  ;;  %v2311_v24 = vld [vmem:[#allocation3 + $0x8a0] sm:$0xff] }
 0x4ad   :  { %v3755_v10 = vpop.f32.mrb[59].mxu0  ;;  %5004 = vmatmul.mubr.msk.f32.gmra.mrb[70].mxu0 %vm5645_vm10, %v1748_v2  ;;  %4321 = vmatprep.mubr.f32.mxu1 %v5587_v32  ;;  %v2295_v2 = vld [vmem:[#allocation3 + $0x820] sm:$0xff]  ;;  %v2312_v38 = vld [vmem:[#allocation3 + $0x8a8] sm:$0xff]  ;;  %vm6079_vm10 = vnez %v6030_v27 }
 0x4ae   :  { %v1758_v40 = vadd.f32 %v1757_v42, %v1653_v22  ;;  %v4783_v42 = vpack.c.bf16 %v2294_v34, %v2293_v11  ;;  %v4789_v22 = vpack.c.bf16 %v2280_v18, %v2279_v3  ;;  %v4819_v10 = vpack.c.bf16 %v2312_v38, %v2311_v24  ;;  %v2301_v11 = vld [vmem:[#allocation3 + $0x850] sm:$0xff]  ;;  %v2302_v34 = vld [vmem:[#allocation3 + $0x858] sm:$0xff]  ;;  %v2287_v3 = vld [vmem:[#allocation3 + $0x7e0] sm:$0xff] }
 0x4af   :  { %4818 = vmatpush3.bf16.msra.mxu1 %v4815_v45  ;;  %v4831_v45 = vpack.c.bf16 %v2318_v63, %v2317_v7  ;;  %v2288_v18 = vld [vmem:[#allocation3 + $0x7e8] sm:$0xff]  ;;  %v2319_v24 = vld [vmem:[#allocation3 + $0x8e0] sm:$0xff] }
 0x4b0   :  { %v3757_v44 = vpop.f32.mrb[60].mxu0  ;;  %3435 = vmatprep.mubr.msk.f32.mxu0 %vm1558_vm11, %v1758_v40  ;;  %4820 = vmatprep.subr.bf16.mxu1 %v4819_v10  ;;  %v2320_v38 = vld [vmem:[#allocation3 + $0x8e8] sm:$0xff] }
 0x4b1   :  { %v3758_v28 = vpop.f32.mrb[61].mxu0  ;;  %1996 = vmatmul.mubr.f32.gmra.mrb[72].mxu0 %v5587_v32 }
 0x4b2   :  { %v3759_v20 = vadd.f32 %v3758_v28, %v3757_v44  ;;  %2000 = vmatprep.mubr.f32.mxu0 %v5587_v32  ;;  %v2298_v44 = vld [vmem:[#allocation3 + $0x838] sm:$0xff] }
 0x4b3   :  { %4822 = vmatpush3.bf16.msra.mxu1 %v4819_v10  ;;  %v2305_v10 = vld [vmem:[#allocation3 + $0x870] sm:$0xff] }
 0x4b4   :  { %v3760_v16 = vpop.f32.mrb[62].mxu0  ;;  %v1663_v55 = vadd.f32 %v3759_v20, %v1565_v36  ;;  %v2276_v36 = vld [vmem:[#allocation3 + $0x788] sm:$0xff]  ;;  %v2282_v20 = vld [vmem:[#allocation3 + $0x7b8] sm:$0xff] }
 0x4b5   :  { %v3761_v25 = vpop.f32.mrb[63].mxu0  ;;  %5005 = vmatmul.mubr.msk.f32.gmra.mrb[74].mxu0 %vm1558_vm11, %v1758_v40  ;;  %v4781_v43 = vpack.c.bf16 %v2276_v36, %v2275_v23  ;;  %v2297_v40 = vld [vmem:[#allocation3 + $0x830] sm:$0xff]  ;;  %v2283_v23 = vld [vmem:[#allocation3 + $0x7c0] sm:$0xff]  ;;  %v2284_v36 = vld [vmem:[#allocation3 + $0x7c8] sm:$0xff] }
 0x4b6   :  { %v1768_v49 = vadd.f32 %v1767_v62, %v1663_v55  ;;  %v2296_v62 = vld [vmem:[#allocation3 + $0x828] sm:$0xff]  ;;  %v4791_v28 = vpack.c.bf16 %v2298_v44, %v2297_v40  ;;  %v2313_v16 = vld [vmem:[#allocation3 + $0x8b0] sm:$0xff]  ;;  %v4793_v55 = vpack.c.bf16 %v2282_v20, %v2281_v58  ;;  %v2314_v25 = vld [vmem:[#allocation3 + $0x8b8] sm:$0xff]  ;;  %v4835_v44 = vpack.c.bf16 %v2320_v38, %v2319_v24 }
 0x4b7   :  { %4782 = vmatpush3.bf16.msra.mxu0 %v4781_v43  ;;  %v4787_v19 = vpack.c.bf16 %v2296_v62, %v2295_v2  ;;  %v4797_v43 = vpack.c.bf16 %v2284_v36, %v2283_v23  ;;  %v2303_v2 = vld [vmem:[#allocation3 + $0x860] sm:$0xff]  ;;  %v2304_v62 = vld [vmem:[#allocation3 + $0x868] sm:$0xff]  ;;  %v2306_v40 = vld [vmem:[#allocation3 + $0x878] sm:$0xff] }
 0x4b8   :  { %3436 = vmatprep.mubr.msk.f32.mxu0 %vm1560_vm1, %v1768_v49  ;;  %5006 = vmatmul.mubr.msk.f32.gmra.mrb[36].mxu1 %vm1560_vm1, %v1768_v49  ;;  %v2289_v58 = vld [vmem:[#allocation3 + $0x7f0] sm:$0xff]  ;;  %v2290_v20 = vld [vmem:[#allocation3 + $0x7f8] sm:$0xff] }
 0x4b9   :  { %2006 = vmatmul.mubr.f32.gmra.mrb[76].mxu0 %v5587_v32  ;;  %4324 = vmatprep.mubr.f32.mxu1 %v5587_v32 }
 0x4ba   :  { %2010 = vmatprep.mubr.f32.mxu0 %v5587_v32  ;;  %4784 = vmatprep.subr.bf16.mxu0 %v4783_v42  ;;  %v4799_v42 = vpack.c.bf16 %v2302_v34, %v2301_v11 }
 0x4bc   :  { %4325 = vmatmul.mubr.f32.gmra.mrb[38].mxu1 %v5587_v32  ;;  %v4785_v32 = vpack.c.bf16 %v2278_v26, %v2277_v53  ;;  %v2285_v53 = vld [vmem:[#allocation3 + $0x7d0] sm:$0xff]  ;;  %v2286_v26 = vld [vmem:[#allocation3 + $0x7d8] sm:$0xff] }
 0x4bd   :  { %5007 = vmatmul.mubr.msk.f32.gmra.mrb[78].mxu0 %vm1560_vm1, %v1768_v49  ;;  %v4823_v49 = vpack.c.bf16 %v2314_v25, %v2313_v16  ;;  %v2321_v16 = vld [vmem:[#allocation3 + $0x8f0] sm:$0xff]  ;;  %v2322_v25 = vld [vmem:[#allocation3 + $0x8f8] sm:$0xff] }
 0x4be   :  { %4786 = vmatpush3.bf16.msra.mxu0 %v4785_v32  ;;  %v4801_v32 = vpack.c.bf16 %v2286_v26, %v2285_v53 }
 0x4bf   :  { %4788 = vmatprep.subr.bf16.mxu0 %v4787_v19  ;;  %4824 = vmatprep.subr.bf16.mxu1 %v4823_v49  ;;  %v4803_v19 = vpack.c.bf16 %v2304_v62, %v2303_v2 }
 0x4c0   :  { %4826 = vmatpush3.bf16.msra.mxu1 %v4823_v49  ;;  %v4839_v49 = vpack.c.bf16 %v2322_v25, %v2321_v16 }
 0x4c1   :  { %4828 = vmatprep.subr.bf16.mxu1 %v4827_v48 }
 0x4c2   :  { %4790 = vmatpush3.bf16.msra.mxu0 %v4789_v22  ;;  %v4805_v22 = vpack.c.bf16 %v2288_v18, %v2287_v3 }
 0x4c3   :  { %4792 = vmatprep.subr.bf16.mxu0 %v4791_v28  ;;  %v4807_v28 = vpack.c.bf16 %v2306_v40, %v2305_v10 }
 0x4c4   :  { %4830 = vmatpush3.bf16.msra.mxu1 %v4827_v48 }
 0x4c5   :  { %4832 = vmatprep.subr.bf16.mxu1 %v4831_v45 }
 0x4c6   :  { %4794 = vmatpush3.bf16.msra.mxu0 %v4793_v55  ;;  %v4809_v55 = vpack.c.bf16 %v2290_v20, %v2289_v58 }
 0x4c7   :  { %4796 = vmatprep.subr.bf16.mxu0 %v4795_v5  ;;  %v5670_v5 = vld [vmem:[#allocation5 + $0x20] sm:$0xff] }
 0x4c8   :  { %4834 = vmatpush3.bf16.msra.mxu1 %v4831_v45  ;;  %v5674_v29 = vrot.slane %v5670_v5, %v5167_v50 }
 0x4c9   :  { %4836 = vmatprep.subr.bf16.mxu1 %v4835_v44 }
 0x4ca   :  { %4798 = vmatpush3.bf16.msra.mxu0 %v4797_v43 }
 0x4cb   :  { %4800 = vmatprep.subr.bf16.mxu0 %v4799_v42 }
 0x4cc   :  { %4838 = vmatpush3.bf16.msra.mxu1 %v4835_v44 }
 0x4cd   :  { %4840 = vmatprep.subr.bf16.mxu1 %v4839_v49 }
 0x4ce   :  { %4802 = vmatpush3.bf16.msra.mxu0 %v4801_v32 }
 0x4cf   :  { %4804 = vmatprep.subr.bf16.mxu0 %v4803_v19 }
 0x4d0   :  { %4842 = vmatpush3.bf16.msra.mxu1 %v4839_v49 }
 0x4d2   :  { %4806 = vmatpush3.bf16.msra.mxu0 %v4805_v22 }
 0x4d3   :  { %4808 = vmatprep.subr.bf16.mxu0 %v4807_v28 }
 0x4d6   :  { %4810 = vmatpush3.bf16.msra.mxu0 %v4809_v55 }
 0x574   :  { %v3819_v59 = vpop.f32.mrb[64].mxu0 }
 0x575   :  { %v3820_v37 = vpop.f32.mrb[65].mxu0 }
 0x576   :  { %v3821_v23 = vadd.f32 %v3820_v37, %v3819_v59 }
 0x578   :  { %v3822_v36 = vpop.f32.mrb[66].mxu0  ;;  %v1978_v42 = vadd.f32 %v3821_v23, %v5674_v29 }
 0x579   :  { %v3823_v43 = vpop.f32.mrb[67].mxu0 }
 0x57a   :  { %v3824_v35 = vadd.f32 %v3823_v43, %v3822_v36 }
 0x57b   :  { %v4317_v34 = vpop.f32.mrb[32].mxu1 }
 0x57c   :  { %v3825_v48 = vpop.f32.mrb[68].mxu0  ;;  %v1983_v11 = vadd.f32 %v3824_v35, %v5674_v29  ;;  %v2082_v26 = vpop.f32.mrb[33].mxu1 }
 0x57d   :  { %v3826_v53 = vpop.f32.mrb[69].mxu0  ;;  %v2083_v63 = vadd.f32 %v2082_v26, %v1978_v42 }
 0x57e   :  { %v3827_v7 = vadd.f32 %v3826_v53, %v3825_v48  ;;  %v2088_v32 = vadd.f32 %v4317_v34, %v1983_v11 }
 0x57f   :  { %v5684_v62 = vsel %vm5487_vm9, %v2083_v63, 0.0  ;;  %v4320_v19 = vpop.f32.mrb[34].mxu1 }
 0x580   :  { %v5680_v45 = vsel %vm5493_vm8, %v2088_v32, 0.0  ;;  %v3828_v2 = vpop.f32.mrb[70].mxu0  ;;  %v1988_v3 = vadd.f32 %v3827_v7, %v5674_v29  ;;  %v2143_v22 = vmul.f32 %v5684_v62, %v5684_v62  ;;  %v2092_v10 = vpop.f32.mrb[35].mxu1 }
 0x581   :  { %v2144_v18 = vmul.f32 %v5680_v45, %v5680_v45  ;;  %v2129_v24 = vadd.f32 %v5680_v45, %v5684_v62  ;;  %v3829_v38 = vpop.f32.mrb[71].mxu0 }
 0x582   :  { %v3830_v40 = vadd.f32 %v3829_v38, %v3828_v2  ;;  %v2093_v44 = vadd.f32 %v2092_v10, %v1988_v3 }
 0x583   :  { %v2151_v28 = vadd.f32 %v2144_v18, %v2143_v22 }
 0x584   :  { %v1993_v58 = vadd.f32 %v3830_v40, %v5674_v29  ;;  %v3831_v20 = vpop.f32.mrb[72].mxu0  ;;  %v5696_v16 = vsel %vm5505_vm7, %v2093_v44, 0.0 }
 0x585   :  { %v2130_v55 = vadd.f32 %v2129_v24, %v5696_v16  ;;  %v2145_v25 = vmul.f32 %v5696_v16, %v5696_v16  ;;  %v3832_v49 = vpop.f32.mrb[73].mxu0 }
 0x586   :  { %v2098_v59 = vadd.f32 %v4320_v19, %v1993_v58  ;;  %v3833_v37 = vadd.f32 %v3832_v49, %v3831_v20 }
 0x587   :  { %v2152_v23 = vadd.f32 %v2151_v28, %v2145_v25 }
 0x588   :  { %v5703_v36 = vsel %vm5525_vm6, %v2098_v59, 0.0  ;;  %v3834_v43 = vpop.f32.mrb[74].mxu0  ;;  %v1998_v32 = vadd.f32 %v3833_v37, %v5674_v29 }
 0x589   :  { %v2146_v35 = vmul.f32 %v5703_v36, %v5703_v36  ;;  %v3835_v48 = vpop.f32.mrb[75].mxu0  ;;  %v2131_v11 = vadd.f32 %v2130_v55, %v5703_v36 }
 0x58a   :  { %v3836_v34 = vadd.f32 %v3835_v48, %v3834_v43 }
 0x58b   :  { %v2153_v42 = vadd.f32 %v2152_v23, %v2146_v35  ;;  %v4323_v7 = vpop.f32.mrb[36].mxu1 }
 0x58c   :  { %v3837_v53 = vpop.f32.mrb[76].mxu0  ;;  %v2003_v26 = vadd.f32 %v3836_v34, %v5674_v29  ;;  %v2102_v2 = vpop.f32.mrb[37].mxu1 }
 0x58d   :  { %v3838_v63 = vpop.f32.mrb[77].mxu0  ;;  %v2103_v18 = vadd.f32 %v2102_v2, %v1998_v32 }
 0x58e   :  { %v3839_v19 = vadd.f32 %v3838_v63, %v3837_v53  ;;  %v2108_v3 = vadd.f32 %v4323_v7, %v2003_v26 }
 0x58f   :  { %v2125_v38 = vsel %vm5538_vm5, %v2103_v18, 0.0  ;;  %v4326_v10 = vpop.f32.mrb[38].mxu1 }
 0x590   :  { %v2126_v24 = vsel %vm5551_vm4, %v2108_v3, 0.0  ;;  %v3840_v22 = vpop.f32.mrb[78].mxu0  ;;  %v2008_v40 = vadd.f32 %v3839_v19, %v5674_v29  ;;  %v2132_v44 = vadd.f32 %v2131_v11, %v2125_v38  ;;  %v2147_v28 = vmul.f32 %v2125_v38, %v2125_v38  ;;  %v2112_v20 = vpop.f32.mrb[39].mxu1 }
 0x591   :  { %v3841_v58 = vpop.f32.mrb[79].mxu0  ;;  %v2148_v49 = vmul.f32 %v2126_v24, %v2126_v24 }
 0x592   :  { %v3842_v55 = vadd.f32 %v3841_v58, %v3840_v22  ;;  %v2113_v25 = vadd.f32 %v2112_v20, %v2008_v40  ;;  %v2154_v59 = vadd.f32 %v2153_v42, %v2147_v28  ;;  %v2133_v37 = vadd.f32 %v2132_v44, %v2126_v24 }
 0x594   :  { %v2013_v23 = vadd.f32 %v3842_v55, %v5674_v29  ;;  %v2127_v43 = vsel %vm5559_vm3, %v2113_v25, 0.0  ;;  %v2155_v34 = vadd.f32 %v2154_v59, %v2148_v49 }
 0x595   :  { %v2134_v35 = vadd.f32 %v2133_v37, %v2127_v43  ;;  %v2149_v48 = vmul.f32 %v2127_v43, %v2127_v43 }
 0x596   :  { %v2118_v53 = vadd.f32 %v4326_v10, %v2013_v23 }
 0x597   :  { %v2156_v26 = vadd.f32 %v2155_v34, %v2149_v48 }
 0x598   :  { %v2128_v11 = vsel %vm5567_vm2, %v2118_v53, 0.0 }
 0x599   :  { %v2150_v7 = vmul.f32 %v2128_v11, %v2128_v11  ;;  %v2135_v32 = vadd.f32 %v2134_v35, %v2128_v11 }
 0x59b   :  { %v2136_v63 = vrot.slane %v2135_v32, 4  ;;  %v2157_v2 = vadd.f32 %v2156_v26, %v2150_v7 }
 0x59d   :  { %v2137_v19 = vadd.f32 %v2136_v63, %v2135_v32  ;;  %v2158_v42 = vrot.slane %v2157_v2, 4  ;;  %v2188_v32 = vrot.slane %v5670_v5, %v5288_v30 }
 0x59f   :  { %v2138_v3 = vrot.slane %v2137_v19, 2  ;;  %v2159_v18 = vadd.f32 %v2158_v42, %v2157_v2 }
 0x5a1   :  { %v2139_v29 = vadd.f32 %v2138_v3, %v2137_v19  ;;  %v2160_v22 = vrot.slane %v2159_v18, 2 }
 0x5a3   :  { %v2140_v40 = vrot.slane %v2139_v29, 1  ;;  %v2161_v44 = vadd.f32 %v2160_v22, %v2159_v18 }
 0x5a5   :  { %v2141_v28 = vadd.f32 %v2140_v40, %v2139_v29  ;;  %v2162_v58 = vrot.slane %v2161_v44, 1 }
 0x5a7   :  { %v2142_v20 = vmul.f32 0.125, %v2141_v28  ;;  %v2163_v10 = vadd.f32 %v2162_v58, %v2161_v44 }
 0x5a9   :  { %v2164_v55 = vmul.f32 0.125, %v2163_v10  ;;  %v2165_v25 = vmul.f32 %v2142_v20, %v2142_v20  ;;  %v2168_v49 = vsub.f32 %v5680_v45, %v2142_v20  ;;  %v2169_v59 = vsub.f32 %v5696_v16, %v2142_v20 }
 0x5aa   :  { %v2170_v37 = vsub.f32 %v5703_v36, %v2142_v20  ;;  %v2171_v23 = vsub.f32 %v2125_v38, %v2142_v20  ;;  %v2172_v35 = vsub.f32 %v2126_v24, %v2142_v20  ;;  %v2173_v48 = vsub.f32 %v2127_v43, %v2142_v20 }
 0x5ab   :  { %v2166_v34 = vsub.f32 %v2164_v55, %v2165_v25  ;;  %v2174_v53 = vsub.f32 %v2128_v11, %v2142_v20  ;;  %v2167_v26 = vsub.f32 %v5684_v62, %v2142_v20  ;;  %v2200_v45 = vrot.slane %v5670_v5, %v5291_v33 }
 0x5ad   :  { %v2175_v7 = vadd.f32 1e-05, %v2166_v34 }
 0x5af   :  { %4982 = vrsqrt.f32 %v2175_v7 }
 0x5b9   :  { %v4983_v63 = vpop.eup %4982 }
 0x5ba   :  { %v2178_v2 = vmul.f32 %v4983_v63, %v2168_v49  ;;  %v2179_v16 = vmul.f32 %v4983_v63, %v2169_v59  ;;  %v2180_v19 = vmul.f32 %v4983_v63, %v2170_v37  ;;  %v2181_v36 = vmul.f32 %v4983_v63, %v2171_v23 }
 0x5bb   :  { %v2182_v38 = vmul.f32 %v4983_v63, %v2172_v35  ;;  %v2183_v24 = vmul.f32 %v4983_v63, %v2173_v48  ;;  %v2184_v43 = vmul.f32 %v4983_v63, %v2174_v53  ;;  %v2177_v42 = vmul.f32 %v4983_v63, %v2167_v26 }
 0x5bc   :  { %v2190_v11 = vmul.f32 %v2188_v32, %v2178_v2  ;;  %v2191_v3 = vmul.f32 %v2188_v32, %v2179_v16  ;;  %v2192_v62 = vmul.f32 %v2188_v32, %v2180_v19  ;;  %v2193_v18 = vmul.f32 %v2188_v32, %v2181_v36 }
 0x5bd   :  { %v2194_v29 = vmul.f32 %v2188_v32, %v2182_v38  ;;  %v2195_v22 = vmul.f32 %v2188_v32, %v2183_v24  ;;  %v2196_v40 = vmul.f32 %v2188_v32, %v2184_v43  ;;  %v2189_v44 = vmul.f32 %v2188_v32, %v2177_v42 }
 0x5be   :  { %v2202_v28 = vadd.f32 %v2200_v45, %v2190_v11  ;;  %v2203_v58 = vadd.f32 %v2200_v45, %v2191_v3  ;;  %v2204_v20 = vadd.f32 %v2200_v45, %v2192_v62  ;;  %v2205_v5 = vadd.f32 %v2200_v45, %v2193_v18 }
 0x5bf   :  { %v2206_v10 = vadd.f32 %v2200_v45, %v2194_v29  ;;  %v2207_v55 = vadd.f32 %v2200_v45, %v2195_v22  ;;  %v2208_v25 = vadd.f32 %v2200_v45, %v2196_v40  ;;  %v2201_v49 = vadd.f32 %v2200_v45, %v2189_v44  ;;  %v2700_v29 = vld [vmem:[#allocation3 + $0x900] sm:$0xff]  ;;  %v2733_v44 = vld [vmem:[#allocation3 + $0xa08] sm:$0xff] }
 0x5c0   :  { %v2210_v59 = vmax.f32 %v2202_v28, 0.0  ;;  %v2211_v37 = vmax.f32 %v2203_v58, 0.0  ;;  %v2212_v23 = vmax.f32 %v2204_v20, 0.0  ;;  %v2213_v35 = vmax.f32 %v2205_v5, 0.0  ;;  %v2732_v22 = vld [vmem:[#allocation3 + $0xa00] sm:$0xff]  ;;  %v2718_v28 = vld [vmem:[#allocation3 + $0x990] sm:$0xff] }
 0x5c1   :  { %v2214_v48 = vmax.f32 %v2206_v10, 0.0  ;;  %v2215_v34 = vmax.f32 %v2207_v55, 0.0  ;;  %v2216_v53 = vmax.f32 %v2208_v25, 0.0  ;;  %v2209_v26 = vmax.f32 %v2201_v49, 0.0  ;;  %v2719_v58 = vld [vmem:[#allocation3 + $0x998] sm:$0xff]  ;;  %v2702_v20 = vld [vmem:[#allocation3 + $0x910] sm:$0xff] }
 0x5c2   :  { %v2218_v7 = vsel %vm5493_vm8, %v2210_v59, 0.0  ;;  %v2219_v32 = vsel %vm5505_vm7, %v2211_v37, 0.0  ;;  %v2220_v63 = vsel %vm5525_vm6, %v2212_v23, 0.0  ;;  %v2221_v45 = vsel %vm5538_vm5, %v2213_v35, 0.0  ;;  %v2703_v5 = vld [vmem:[#allocation3 + $0x918] sm:$0xff]  ;;  %v2720_v49 = vld [vmem:[#allocation3 + $0x9a0] sm:$0xff] }
 0x5c3   :  { %v2222_v2 = vsel %vm5551_vm4, %v2214_v48, 0.0  ;;  %v2223_v16 = vsel %vm5559_vm3, %v2215_v34, 0.0  ;;  %v2224_v19 = vsel %vm5567_vm2, %v2216_v53, 0.0  ;;  %2226 = vst [vmem:[#allocation2 + $0x10] sm:$0xff] %v2218_v7  ;;  %2227 = vst [vmem:[#allocation2 + $0x18] sm:$0xff] %v2219_v32  ;;  %v2217_v36 = vsel %vm5487_vm9, %v2209_v26, 0.0  ;;  %3437 = vmatprep.mubr.msk.f32.mxu0 %vm5487_vm9, %v2209_v26 }
 0x5c4   :  { %2228 = vst [vmem:[#allocation2 + $0x20] sm:$0xff] %v2220_v63  ;;  %2229 = vst [vmem:[#allocation2 + $0x28] sm:$0xff] %v2221_v45  ;;  %v5747_v24 = vand.u32 31, %v5195_v12  ;;  %v5755_v3 = vand.u32 31, %v5262_v8  ;;  %v2716_v8 = vld [vmem:[#allocation3 + $0x980] sm:$0xff]  ;;  %v4845_v40 = vpack.c.bf16 %v2701_v61, %v2700_v29  ;;  %v4875_v60 = vpack.c.bf16 %v2733_v44, %v2732_v22  ;;  %v2735_v55 = vld [vmem:[#allocation3 + $0xa18] sm:$0xff] }
 0x5c5   :  { %2230 = vst [vmem:[#allocation2 + $0x30] sm:$0xff] %v2222_v2  ;;  %2231 = vst [vmem:[#allocation2 + $0x38] sm:$0xff] %v2223_v16  ;;  %v4843_v46 = vpack.c.bf16 %v2717_v1, %v2716_v8  ;;  %v4847_v6 = vpack.c.bf16 %v2719_v58, %v2718_v28  ;;  %v4849_v10 = vpack.c.bf16 %v2703_v5, %v2702_v20  ;;  %v2722_v7 = vld [vmem:[#allocation3 + $0x9b0] sm:$0xff]  ;;  %v2723_v32 = vld [vmem:[#allocation3 + $0x9b8] sm:$0xff] }
 0x5c6   :  { %2232 = vst [vmem:[#allocation2 + $0x40] sm:$0xff] %v2224_v19  ;;  %2225 = vst [vmem:[#allocation2 + $0x8] sm:$0xff] %v2217_v36  ;;  %vm2245_vm1 = vcmp.lt.s32.totalorder %v5747_v24, 28  ;;  %4876 = vmatprep.subr.bf16.mxu1 %v4875_v60  ;;  %v4879_v25 = vpack.c.bf16 %v2735_v55, %v2734_v47  ;;  %v4855_v63 = vpack.c.bf16 %v2723_v32, %v2722_v7  ;;  %v2706_v45 = vld [vmem:[#allocation3 + $0x930] sm:$0xff]  ;;  %v2707_v2 = vld [vmem:[#allocation3 + $0x938] sm:$0xff]  ;;  %vm3095_vm11 = vcmp.lt.s32.totalorder %v5747_v24, 31 }
 0x5c7   :  { %4844 = vmatprep.subr.bf16.mxu0 %v4843_v46  ;;  %v2738_v16 = vld [vmem:[#allocation3 + $0xa30] sm:$0xff]  ;;  %v4857_v19 = vpack.c.bf16 %v2707_v2, %v2706_v45  ;;  %v2739_v36 = vld [vmem:[#allocation3 + $0xa38] sm:$0xff]  ;;  %v2728_v58 = vld [vmem:[#allocation3 + $0x9e0] sm:$0xff] }
 0x5c8   :  { %v2726_v1 = vld [vmem:[#allocation3 + $0x9d0] sm:$0xff]  ;;  %v2727_v46 = vld [vmem:[#allocation3 + $0x9d8] sm:$0xff]  ;;  %v2712_v5 = vld [vmem:[#allocation3 + $0x960] sm:$0xff] }
 0x5c9   :  { %v4863_v29 = vpack.c.bf16 %v2727_v46, %v2726_v1  ;;  %v2710_v61 = vld [vmem:[#allocation3 + $0x950] sm:$0xff]  ;;  %v2711_v22 = vld [vmem:[#allocation3 + $0x958] sm:$0xff]  ;;  %v2713_v47 = vld [vmem:[#allocation3 + $0x968] sm:$0xff] }
 0x5ca   :  { %v2235_v38 = vld [vmem:[#allocation2 + $0x14] sm:$0xff]  ;;  %v4865_v44 = vpack.c.bf16 %v2711_v22, %v2710_v61  ;;  %v4869_v55 = vpack.c.bf16 %v2713_v47, %v2712_v5 }
 0x5cb   :  { %v2236_v11 = vld [vmem:[#allocation2 + $0x1c] sm:$0xff]  ;;  %v2237_v13 = vld [vmem:[#allocation2 + $0x24] sm:$0xff] }
 0x5cc   :  { %v2238_v12 = vld [vmem:[#allocation2 + $0x2c] sm:$0xff]  ;;  %v2239_v62 = vld [vmem:[#allocation2 + $0x34] sm:$0xff] }
 0x5cd   :  { %v2233_v43 = vld [vmem:[#allocation2 + $0x4] sm:$0xff]  ;;  %v2234_v42 = vld [vmem:[#allocation2 + $0xc] sm:$0xff]  ;;  %v2240_v15 = vld [vmem:[#allocation2 + $0x3c] sm:$0xff] }
 0x5ce   :  { %2394 = vmatmul.mubr.f32.vlgmr.msra.gmra.mrb[80].mxu0 %v2233_v43  ;;  %4359 = vmatprep.mubr.f32.mxu1 %v2234_v42  ;;  %v2241_v18 = vld [vmem:[#allocation2 + $0x44] sm:$0xff]  ;;  %v2724_v43 = vld [vmem:[#allocation3 + $0x9c0] sm:$0xff]  ;;  %v5768_v32 = vld [vmem:[#allocation5 + $0x28] sm:$0xff] }
 0x5cf   :  { %3438 = vmatprep.mubr.msk.f32.mxu0 %vm5493_vm8, %v2210_v59  ;;  %4360 = vmatmul.mubr.f32.vlgmr.msra.gmra.mrb[40].mxu1 %v2235_v38  ;;  %vm2249_vm8 = vcmp.lt.s32.totalorder %v5755_v3, 28  ;;  %v2721_v59 = vld [vmem:[#allocation3 + $0x9a8] sm:$0xff]  ;;  %v5772_v45 = vrot.slane %v5768_v32, %v5167_v50 }
 0x5d0   :  { %4362 = vmatprep.mubr.f32.mxu1 %v2236_v11  ;;  %4846 = vmatpush3.bf16.msra.mxu0 %v4845_v40  ;;  %v2742_v40 = vld [vmem:[#allocation3 + $0xa50] sm:$0xff] }
 0x5d1   :  { %4878 = vmatpush3.bf16.msra.mxu1 %v4875_v60  ;;  %4848 = vmatprep.subr.bf16.mxu0 %v4847_v6  ;;  %v2743_v60 = vld [vmem:[#allocation3 + $0xa58] sm:$0xff]  ;;  %v2729_v6 = vld [vmem:[#allocation3 + $0x9e8] sm:$0xff] }
 0x5d2   :  { %2399 = vmatmul.mubr.f32.gmra.mrb[82].mxu0 %v2234_v42  ;;  %4880 = vmatprep.subr.bf16.mxu1 %v4879_v25  ;;  %v2725_v42 = vld [vmem:[#allocation3 + $0x9c8] sm:$0xff]  ;;  %v4895_v28 = vpack.c.bf16 %v2743_v60, %v2742_v40  ;;  %v4867_v20 = vpack.c.bf16 %v2729_v6, %v2728_v58 }
 0x5d3   :  { %3439 = vmatprep.mubr.msk.f32.mxu0 %vm5505_vm7, %v2211_v37  ;;  %4363 = vmatmul.mubr.msk.f32.gmra.mrb[42].mxu1 %vm2245_vm1, %v2237_v13  ;;  %v4851_v37 = vpack.c.bf16 %v2721_v59, %v2720_v49  ;;  %v2730_v49 = vld [vmem:[#allocation3 + $0x9f0] sm:$0xff]  ;;  %v2731_v59 = vld [vmem:[#allocation3 + $0x9f8] sm:$0xff]  ;;  %vm6073_vm7 = vnez %v6018_v4  ;;  %vm3099_vm1 = vcmp.lt.s32.totalorder %v5755_v3, 31 }
 0x5d4   :  { %4365 = vmatprep.mubr.f32.mxu1 %v2238_v12  ;;  %4850 = vmatpush3.bf16.msra.mxu0 %v4849_v10  ;;  %v2744_v10 = vld [vmem:[#allocation3 + $0xa60] sm:$0xff] }
 0x5d5   :  { %4882 = vmatpush3.bf16.msra.mxu1 %v4879_v25  ;;  %4852 = vmatprep.subr.bf16.mxu0 %v4851_v37  ;;  %v2745_v25 = vld [vmem:[#allocation3 + $0xa68] sm:$0xff] }
 0x5d6   :  { %2404 = vmatmul.mubr.f32.gmra.mrb[84].mxu0 %v2235_v38  ;;  %v4887_v38 = vpack.c.bf16 %v2739_v36, %v2738_v16  ;;  %v4899_v37 = vpack.c.bf16 %v2745_v25, %v2744_v10 }
 0x5d7   :  { %3440 = vmatprep.mubr.msk.f32.mxu0 %vm5525_vm6, %v2212_v23  ;;  %4366 = vmatmul.mubr.f32.gmra.mrb[44].mxu1 %v2239_v62  ;;  %v2704_v23 = vld [vmem:[#allocation3 + $0x920] sm:$0xff]  ;;  %vm2674_vm6 = vcmp.lt.s32.totalorder %v5755_v3, 30 }
 0x5d8   :  { %4368 = vmatprep.mubr.f32.mxu1 %v2240_v15 }
 0x5da   :  { %2409 = vmatmul.mubr.f32.gmra.mrb[86].mxu0 %v2236_v11  ;;  %v4859_v11 = vpack.c.bf16 %v2725_v42, %v2724_v43 }
 0x5db   :  { %3441 = vmatprep.mubr.msk.f32.mxu0 %vm5538_vm5, %v2213_v35  ;;  %4369 = vmatmul.mubr.msk.f32.gmra.mrb[46].mxu1 %vm2249_vm8, %v2241_v18  ;;  %v2705_v35 = vld [vmem:[#allocation3 + $0x928] sm:$0xff]  ;;  %vm2670_vm5 = vcmp.lt.s32.totalorder %v5747_v24, 30 }
 0x5dc   :  { %v2741_v18 = vld [vmem:[#allocation3 + $0xa48] sm:$0xff] }
 0x5de   :  { %2414 = vmatmul.mubr.f32.gmra.mrb[88].mxu0 %v2237_v13  ;;  %v2708_v13 = vld [vmem:[#allocation3 + $0x940] sm:$0xff] }
 0x5df   :  { %3442 = vmatprep.mubr.msk.f32.mxu0 %vm5551_vm4, %v2214_v48  ;;  %v2736_v48 = vld [vmem:[#allocation3 + $0xa20] sm:$0xff]  ;;  %vm6072_vm4 = vnez %v6049_v56  ;;  %v3128_v56 = vld [vmem:[#allocation3 + $0xa98] sm:$0xff] }
 0x5e2   :  { %2419 = vmatmul.mubr.f32.gmra.mrb[90].mxu0 %v2238_v12  ;;  %v2709_v12 = vld [vmem:[#allocation3 + $0x948] sm:$0xff] }
 0x5e3   :  { %3443 = vmatprep.mubr.msk.f32.mxu0 %vm5559_vm3, %v2215_v34  ;;  %v4853_v34 = vpack.c.bf16 %v2705_v35, %v2704_v23  ;;  %v4871_v23 = vpack.c.bf16 %v2731_v59, %v2730_v49  ;;  %v2714_v35 = vld [vmem:[#allocation3 + $0x970] sm:$0xff]  ;;  %vm6071_vm3 = vnez %v6047_v41 }
 0x5e4   :  { %v3143_v41 = vld [vmem:[#allocation3 + $0xb10] sm:$0xff] }
 0x5e5   :  { %4854 = vmatpush3.bf16.msra.mxu0 %v4853_v34  ;;  %v2746_v34 = vld [vmem:[#allocation3 + $0xa70] sm:$0xff] }
 0x5e6   :  { %2424 = vmatmul.mubr.f32.gmra.mrb[92].mxu0 %v2239_v62  ;;  %4856 = vmatprep.subr.bf16.mxu0 %v4855_v63  ;;  %v2740_v62 = vld [vmem:[#allocation3 + $0xa40] sm:$0xff] }
 0x5e7   :  { %3444 = vmatprep.mubr.msk.f32.mxu0 %vm5567_vm2, %v2216_v53  ;;  %v2737_v53 = vld [vmem:[#allocation3 + $0xa28] sm:$0xff]  ;;  %v4891_v8 = vpack.c.bf16 %v2741_v18, %v2740_v62  ;;  %vm6070_vm2 = vnez %v6045_v17 }
 0x5e8   :  { %v4883_v26 = vpack.c.bf16 %v2737_v53, %v2736_v48  ;;  %v2715_v48 = vld [vmem:[#allocation3 + $0x978] sm:$0xff] }
 0x5e9   :  { %4858 = vmatpush3.bf16.msra.mxu0 %v4857_v19  ;;  %v4873_v53 = vpack.c.bf16 %v2715_v48, %v2714_v35 }
 0x5ea   :  { %2429 = vmatmul.mubr.f32.gmra.mrb[94].mxu0 %v2240_v15  ;;  %4884 = vmatprep.subr.bf16.mxu1 %v4883_v26  ;;  %v4861_v15 = vpack.c.bf16 %v2709_v12, %v2708_v13 }
 0x5eb   :  { %4886 = vmatpush3.bf16.msra.mxu1 %v4883_v26  ;;  %4860 = vmatprep.subr.bf16.mxu0 %v4859_v11  ;;  %v2747_v26 = vld [vmem:[#allocation3 + $0xa78] sm:$0xff] }
 0x5ec   :  { %4888 = vmatprep.subr.bf16.mxu1 %v4887_v38  ;;  %v4903_v7 = vpack.c.bf16 %v2747_v26, %v2746_v34 }
 0x5ed   :  { %4862 = vmatpush3.bf16.msra.mxu0 %v4861_v15 }
 0x5ee   :  { %4864 = vmatprep.subr.bf16.mxu0 %v4863_v29 }
 0x5ef   :  { %4890 = vmatpush3.bf16.msra.mxu1 %v4887_v38 }
 0x5f0   :  { %4892 = vmatprep.subr.bf16.mxu1 %v4891_v8 }
 0x5f1   :  { %4866 = vmatpush3.bf16.msra.mxu0 %v4865_v44 }
 0x5f2   :  { %4868 = vmatprep.subr.bf16.mxu0 %v4867_v20 }
 0x5f3   :  { %4894 = vmatpush3.bf16.msra.mxu1 %v4891_v8 }
 0x5f4   :  { %4896 = vmatprep.subr.bf16.mxu1 %v4895_v28 }
 0x5f5   :  { %4870 = vmatpush3.bf16.msra.mxu0 %v4869_v55 }
 0x5f6   :  { %4872 = vmatprep.subr.bf16.mxu0 %v4871_v23 }
 0x5f7   :  { %4898 = vmatpush3.bf16.msra.mxu1 %v4895_v28 }
 0x5f8   :  { %4900 = vmatprep.subr.bf16.mxu1 %v4899_v37 }
 0x5f9   :  { %4874 = vmatpush3.bf16.msra.mxu0 %v4873_v53 }
 0x5fb   :  { %4902 = vmatpush3.bf16.msra.mxu1 %v4899_v37 }
 0x5fc   :  { %4904 = vmatprep.subr.bf16.mxu1 %v4903_v7 }
 0x5ff   :  { %4906 = vmatpush3.bf16.msra.mxu1 %v4903_v7 }
 0x6a1   :  { %v3899_v63 = vpop.f32.mrb[80].mxu0 }
 0x6a2   :  { %v3900_v2 = vpop.f32.mrb[81].mxu0  ;;  %v4361_v16 = vpop.f32.mrb[40].mxu1 }
 0x6a3   :  { %v3901_v19 = vadd.f32 %v3900_v2, %v3899_v63  ;;  %v2500_v36 = vpop.f32.mrb[41].mxu1 }
 0x6a5   :  { %v2396_v38 = vadd.f32 %v3901_v19, %v5772_v45  ;;  %v3902_v43 = vpop.f32.mrb[82].mxu0 }
 0x6a6   :  { %v3903_v42 = vpop.f32.mrb[83].mxu0  ;;  %v4364_v11 = vpop.f32.mrb[42].mxu1 }
 0x6a7   :  { %v2501_v13 = vadd.f32 %v2500_v36, %v2396_v38  ;;  %v3904_v12 = vadd.f32 %v3903_v42, %v3902_v43  ;;  %v2510_v62 = vpop.f32.mrb[43].mxu1 }
 0x6a9   :  { %v2401_v15 = vadd.f32 %v3904_v12, %v5772_v45  ;;  %v3905_v18 = vpop.f32.mrb[84].mxu0  ;;  %v5778_v46 = vsel %vm5346_vm12, %v2501_v13, 0.0 }
 0x6aa   :  { %v3906_v8 = vpop.f32.mrb[85].mxu0  ;;  %v4367_v1 = vpop.f32.mrb[44].mxu1  ;;  %v2561_v28 = vmul.f32 %v5778_v46, %v5778_v46 }
 0x6ab   :  { %v2506_v29 = vadd.f32 %v4361_v16, %v2401_v15  ;;  %v3907_v61 = vadd.f32 %v3906_v8, %v3905_v18  ;;  %v2520_v22 = vpop.f32.mrb[45].mxu1 }
 0x6ad   :  { %v5782_v40 = vsel %vm5352_vm13, %v2506_v29, 0.0  ;;  %v2406_v44 = vadd.f32 %v3907_v61, %v5772_v45  ;;  %v3908_v60 = vpop.f32.mrb[86].mxu0 }
 0x6ae   :  { %v2547_v58 = vadd.f32 %v5782_v40, %v5778_v46  ;;  %v2562_v6 = vmul.f32 %v5782_v40, %v5782_v40  ;;  %v3909_v20 = vpop.f32.mrb[87].mxu0  ;;  %v4370_v5 = vpop.f32.mrb[46].mxu1 }
 0x6af   :  { %v2511_v47 = vadd.f32 %v2510_v62, %v2406_v44  ;;  %v3910_v10 = vadd.f32 %v3909_v20, %v3908_v60  ;;  %v2530_v55 = vpop.f32.mrb[47].mxu1 }
 0x6b0   :  { %v2569_v25 = vadd.f32 %v2562_v6, %v2561_v28 }
 0x6b1   :  { %v5793_v49 = vsel %vm5364_vm14, %v2511_v47, 0.0  ;;  %v2411_v59 = vadd.f32 %v3910_v10, %v5772_v45  ;;  %v3911_v37 = vpop.f32.mrb[88].mxu0 }
 0x6b2   :  { %v2548_v23 = vadd.f32 %v2547_v58, %v5793_v49  ;;  %v2563_v35 = vmul.f32 %v5793_v49, %v5793_v49  ;;  %v3912_v48 = vpop.f32.mrb[89].mxu0 }
 0x6b3   :  { %v2516_v34 = vadd.f32 %v4364_v11, %v2411_v59  ;;  %v3913_v53 = vadd.f32 %v3912_v48, %v3911_v37 }
 0x6b4   :  { %v2570_v26 = vadd.f32 %v2569_v25, %v2563_v35 }
 0x6b5   :  { %v5801_v7 = vsel %vm5384_vm15, %v2516_v34, 0.0  ;;  %v2416_v63 = vadd.f32 %v3913_v53, %v5772_v45  ;;  %v3914_v2 = vpop.f32.mrb[90].mxu0 }
 0x6b6   :  { %v2549_v16 = vadd.f32 %v2548_v23, %v5801_v7  ;;  %v2564_v19 = vmul.f32 %v5801_v7, %v5801_v7  ;;  %v3915_v36 = vpop.f32.mrb[91].mxu0 }
 0x6b7   :  { %v2521_v38 = vadd.f32 %v2520_v22, %v2416_v63  ;;  %v3916_v43 = vadd.f32 %v3915_v36, %v3914_v2 }
 0x6b8   :  { %v2571_v42 = vadd.f32 %v2570_v26, %v2564_v19 }
 0x6b9   :  { %v2543_v11 = vsel %vm5397_vm0, %v2521_v38, 0.0  ;;  %v2421_v13 = vadd.f32 %v3916_v43, %v5772_v45  ;;  %v3917_v12 = vpop.f32.mrb[92].mxu0 }
 0x6ba   :  { %v2550_v62 = vadd.f32 %v2549_v16, %v2543_v11  ;;  %v2565_v15 = vmul.f32 %v2543_v11, %v2543_v11  ;;  %v3918_v18 = vpop.f32.mrb[93].mxu0 }
 0x6bb   :  { %v2526_v8 = vadd.f32 %v4367_v1, %v2421_v13  ;;  %v3919_v29 = vadd.f32 %v3918_v18, %v3917_v12 }
 0x6bc   :  { %v2572_v61 = vadd.f32 %v2571_v42, %v2565_v15 }
 0x6bd   :  { %v2544_v44 = vsel %vm6070_vm2, %v2526_v8, 0.0  ;;  %v2426_v60 = vadd.f32 %v3919_v29, %v5772_v45  ;;  %v3920_v22 = vpop.f32.mrb[94].mxu0 }
 0x6be   :  { %v2551_v28 = vadd.f32 %v2550_v62, %v2544_v44  ;;  %v2566_v58 = vmul.f32 %v2544_v44, %v2544_v44  ;;  %v3921_v6 = vpop.f32.mrb[95].mxu0 }
 0x6bf   :  { %v2531_v20 = vadd.f32 %v2530_v55, %v2426_v60  ;;  %v3922_v47 = vadd.f32 %v3921_v6, %v3920_v22 }
 0x6c0   :  { %v2573_v10 = vadd.f32 %v2572_v61, %v2566_v58 }
 0x6c1   :  { %v2545_v25 = vsel %vm6071_vm3, %v2531_v20, 0.0  ;;  %v2431_v59 = vadd.f32 %v3922_v47, %v5772_v45  ;;  %v2606_v47 = vrot.slane %v5768_v32, %v5288_v30 }
 0x6c2   :  { %v2552_v1 = vadd.f32 %v2551_v28, %v2545_v25  ;;  %v2567_v37 = vmul.f32 %v2545_v25, %v2545_v25 }
 0x6c3   :  { %v2536_v23 = vadd.f32 %v4370_v5, %v2431_v59 }
 0x6c4   :  { %v2574_v35 = vadd.f32 %v2573_v10, %v2567_v37 }
 0x6c5   :  { %v2546_v48 = vsel %vm6072_vm4, %v2536_v23, 0.0 }
 0x6c6   :  { %v2553_v34 = vadd.f32 %v2552_v1, %v2546_v48  ;;  %v2568_v53 = vmul.f32 %v2546_v48, %v2546_v48 }
 0x6c8   :  { %v2554_v26 = vrot.slane %v2553_v34, 4  ;;  %v2575_v63 = vadd.f32 %v2574_v35, %v2568_v53 }
 0x6ca   :  { %v2555_v2 = vadd.f32 %v2554_v26, %v2553_v34  ;;  %v2576_v55 = vrot.slane %v2575_v63, 4 }
 0x6cc   :  { %v2556_v16 = vrot.slane %v2555_v2, 2  ;;  %v2577_v19 = vadd.f32 %v2576_v55, %v2575_v63 }
 0x6ce   :  { %v2557_v36 = vadd.f32 %v2556_v16, %v2555_v2  ;;  %v2578_v38 = vrot.slane %v2577_v19, 2 }
 0x6d0   :  { %v2558_v43 = vrot.slane %v2557_v36, 1  ;;  %v2579_v42 = vadd.f32 %v2578_v38, %v2577_v19 }
 0x6d2   :  { %v2559_v45 = vadd.f32 %v2558_v43, %v2557_v36  ;;  %v2580_v13 = vrot.slane %v2579_v42, 1 }
 0x6d4   :  { %v2560_v12 = vmul.f32 0.0625, %v2559_v45  ;;  %v2581_v5 = vadd.f32 %v2580_v13, %v2579_v42 }
 0x6d6   :  { %v2582_v62 = vmul.f32 0.0625, %v2581_v5  ;;  %v2583_v15 = vmul.f32 %v2560_v12, %v2560_v12  ;;  %v2586_v18 = vsub.f32 %v5782_v40, %v2560_v12  ;;  %v2587_v8 = vsub.f32 %v5793_v49, %v2560_v12 }
 0x6d7   :  { %v2588_v29 = vsub.f32 %v5801_v7, %v2560_v12  ;;  %v2589_v61 = vsub.f32 %v2543_v11, %v2560_v12  ;;  %v2590_v60 = vsub.f32 %v2544_v44, %v2560_v12  ;;  %v2591_v22 = vsub.f32 %v2545_v25, %v2560_v12 }
 0x6d8   :  { %v2584_v28 = vsub.f32 %v2582_v62, %v2583_v15  ;;  %v2592_v58 = vsub.f32 %v2546_v48, %v2560_v12  ;;  %v2585_v6 = vsub.f32 %v5778_v46, %v2560_v12  ;;  %v2618_v40 = vrot.slane %v5768_v32, %v5291_v33 }
 0x6da   :  { %v2593_v20 = vadd.f32 1e-05, %v2584_v28 }
 0x6dc   :  { %4984 = vrsqrt.f32 %v2593_v20 }
 0x6e6   :  { %v4985_v10 = vpop.eup %4984 }
 0x6e7   :  { %v2596_v59 = vmul.f32 %v4985_v10, %v2586_v18  ;;  %v2597_v49 = vmul.f32 %v4985_v10, %v2587_v8  ;;  %v2598_v1 = vmul.f32 %v4985_v10, %v2588_v29  ;;  %v2599_v7 = vmul.f32 %v4985_v10, %v2589_v61 }
 0x6e8   :  { %v2600_v11 = vmul.f32 %v4985_v10, %v2590_v60  ;;  %v2601_v44 = vmul.f32 %v4985_v10, %v2591_v22  ;;  %v2602_v25 = vmul.f32 %v4985_v10, %v2592_v58  ;;  %v2595_v37 = vmul.f32 %v4985_v10, %v2585_v6 }
 0x6e9   :  { %v2608_v23 = vmul.f32 %v2606_v47, %v2596_v59  ;;  %v2609_v35 = vmul.f32 %v2606_v47, %v2597_v49  ;;  %v2610_v46 = vmul.f32 %v2606_v47, %v2598_v1  ;;  %v2611_v48 = vmul.f32 %v2606_v47, %v2599_v7 }
 0x6ea   :  { %v2612_v34 = vmul.f32 %v2606_v47, %v2600_v11  ;;  %v2613_v53 = vmul.f32 %v2606_v47, %v2601_v44  ;;  %v2614_v26 = vmul.f32 %v2606_v47, %v2602_v25  ;;  %v2607_v63 = vmul.f32 %v2606_v47, %v2595_v37 }
 0x6eb   :  { %v2620_v2 = vadd.f32 %v2618_v40, %v2608_v23  ;;  %v2621_v55 = vadd.f32 %v2618_v40, %v2609_v35  ;;  %v2622_v16 = vadd.f32 %v2618_v40, %v2610_v46  ;;  %v2623_v32 = vadd.f32 %v2618_v40, %v2611_v48  ;;  %v3142_v23 = vld [vmem:[#allocation3 + $0xb08] sm:$0xff]  ;;  %v3125_v46 = vld [vmem:[#allocation3 + $0xa80] sm:$0xff] }
 0x6ec   :  { %v2624_v19 = vadd.f32 %v2618_v40, %v2612_v34  ;;  %v5826_v36 = vadd.f32 %v2618_v40, %v2613_v53  ;;  %v5828_v38 = vadd.f32 %v2618_v40, %v2614_v26  ;;  %v2619_v43 = vadd.f32 %v2618_v40, %v2607_v63  ;;  %v3126_v48 = vld [vmem:[#allocation3 + $0xa88] sm:$0xff]  ;;  %v3157_v34 = vld [vmem:[#allocation3 + $0xb80] sm:$0xff]  ;;  %v3144_v63 = vld [vmem:[#allocation3 + $0xb18] sm:$0xff] }
 0x6ed   :  { %v2628_v42 = vmax.f32 %v2620_v2, 0.0  ;;  %v2629_v45 = vmax.f32 %v2621_v55, 0.0  ;;  %v2630_v13 = vmax.f32 %v2622_v16, 0.0  ;;  %v2631_v12 = vmax.f32 %v2623_v32, 0.0  ;;  %v3158_v53 = vld [vmem:[#allocation3 + $0xb88] sm:$0xff]  ;;  %v3127_v55 = vld [vmem:[#allocation3 + $0xa90] sm:$0xff] }
 0x6ee   :  { %v2632_v5 = vmax.f32 %v2624_v19, 0.0  ;;  %v2633_v62 = vmax.f32 %v5826_v36, 0.0  ;;  %v2634_v15 = vmax.f32 %v5828_v38, 0.0  ;;  %v2627_v18 = vmax.f32 %v2619_v43, 0.0  ;;  %v3159_v16 = vld [vmem:[#allocation3 + $0xb90] sm:$0xff]  ;;  %v3160_v19 = vld [vmem:[#allocation3 + $0xb98] sm:$0xff] }
 0x6ef   :  { %v2636_v8 = vsel %vm5352_vm13, %v2628_v42, 0.0  ;;  %v2637_v29 = vsel %vm5364_vm14, %v2629_v45, 0.0  ;;  %v2638_v61 = vsel %vm5384_vm15, %v2630_v13, 0.0  ;;  %v2639_v60 = vsel %vm5397_vm0, %v2631_v12, 0.0  ;;  %v3145_v38 = vld [vmem:[#allocation3 + $0xb20] sm:$0xff]  ;;  %v3146_v43 = vld [vmem:[#allocation3 + $0xb28] sm:$0xff] }
 0x6f0   :  { %v2640_v22 = vsel %vm6070_vm2, %v2632_v5, 0.0  ;;  %v2641_v28 = vsel %vm6071_vm3, %v2633_v62, 0.0  ;;  %v2642_v58 = vsel %vm6072_vm4, %v2634_v15, 0.0  ;;  %2644 = vst [vmem:[#allocation2 + $0x10] sm:$0xff] %v2636_v8  ;;  %2645 = vst [vmem:[#allocation2 + $0x18] sm:$0xff] %v2637_v29  ;;  %v2635_v6 = vsel %vm5346_vm12, %v2627_v18, 0.0  ;;  %3447 = vmatprep.mubr.msk.f32.mxu0 %vm5346_vm12, %v2627_v18 }
 0x6f1   :  { %2646 = vst [vmem:[#allocation2 + $0x20] sm:$0xff] %v2638_v61  ;;  %2647 = vst [vmem:[#allocation2 + $0x28] sm:$0xff] %v2639_v60  ;;  %v4907_v35 = vpack.c.bf16 %v3142_v23, %v3141_v54  ;;  %v4909_v17 = vpack.c.bf16 %v3126_v48, %v3125_v46  ;;  %v4939_v26 = vpack.c.bf16 %v3158_v53, %v3157_v34  ;;  %v3147_v18 = vld [vmem:[#allocation3 + $0xb30] sm:$0xff]  ;;  %v3148_v8 = vld [vmem:[#allocation3 + $0xb38] sm:$0xff]  ;;  %vm6074_vm12 = vnez %v6020_v9 }
 0x6f2   :  { %2648 = vst [vmem:[#allocation2 + $0x30] sm:$0xff] %v2640_v22  ;;  %2649 = vst [vmem:[#allocation2 + $0x38] sm:$0xff] %v2641_v28  ;;  %v4911_v2 = vpack.c.bf16 %v3144_v63, %v3143_v41  ;;  %v4913_v32 = vpack.c.bf16 %v3128_v56, %v3127_v55  ;;  %v4943_v36 = vpack.c.bf16 %v3160_v19, %v3159_v16  ;;  %v3131_v61 = vld [vmem:[#allocation3 + $0xab0] sm:$0xff]  ;;  %v3132_v60 = vld [vmem:[#allocation3 + $0xab8] sm:$0xff] }
 0x6f3   :  { %2650 = vst [vmem:[#allocation2 + $0x40] sm:$0xff] %v2642_v58  ;;  %2643 = vst [vmem:[#allocation2 + $0x8] sm:$0xff] %v2635_v6  ;;  %4908 = vmatprep.subr.bf16.mxu0 %v4907_v35  ;;  %4940 = vmatprep.subr.bf16.mxu1 %v4939_v26  ;;  %v4919_v29 = vpack.c.bf16 %v3148_v8, %v3147_v18  ;;  %v3163_v22 = vld [vmem:[#allocation3 + $0xbb0] sm:$0xff]  ;;  %v4921_v28 = vpack.c.bf16 %v3132_v60, %v3131_v61  ;;  %v3164_v58 = vld [vmem:[#allocation3 + $0xbb8] sm:$0xff] }
 0x6f4   :  { %v4951_v6 = vpack.c.bf16 %v3164_v58, %v3163_v22  ;;  %v3168_v54 = vld [vmem:[#allocation3 + $0xbd8] sm:$0xff]  ;;  %v3153_v35 = vld [vmem:[#allocation3 + $0xb60] sm:$0xff]  ;;  %v3154_v46 = vld [vmem:[#allocation3 + $0xb68] sm:$0xff] }
 0x6f5   :  { %v3137_v48 = vld [vmem:[#allocation3 + $0xae0] sm:$0xff]  ;;  %v4931_v34 = vpack.c.bf16 %v3154_v46, %v3153_v35  ;;  %v3156_v55 = vld [vmem:[#allocation3 + $0xb78] sm:$0xff]  ;;  %v3139_v56 = vld [vmem:[#allocation3 + $0xaf0] sm:$0xff] }
 0x6f6   :  { %v3169_v53 = vld [vmem:[#allocation3 + $0xbe0] sm:$0xff]  ;;  %v3171_v19 = vld [vmem:[#allocation3 + $0xbf0] sm:$0xff] }
 0x6f7   :  { %v2660_v20 = vld [vmem:[#allocation2 + $0x12] sm:$0xff] }
 0x6f8   :  { %v2661_v40 = vld [vmem:[#allocation2 + $0x1a] sm:$0xff]  ;;  %v2662_v52 = vld [vmem:[#allocation2 + $0x22] sm:$0xff] }
 0x6f9   :  { %v2663_v49 = vld [vmem:[#allocation2 + $0x2a] sm:$0xff]  ;;  %v2653_v1 = vld [vmem:[#allocation2 + $0x16] sm:$0xff]  ;;  %v2654_v11 = vld [vmem:[#allocation2 + $0x1e] sm:$0xff] }
 0x6fa   :  { %v2651_v47 = vld [vmem:[#allocation2 + $0x6] sm:$0xff]  ;;  %v2652_v59 = vld [vmem:[#allocation2 + $0xe] sm:$0xff]  ;;  %v2665_v51 = vld [vmem:[#allocation2 + $0x3a] sm:$0xff] }
 0x6fb   :  { %v2659_v10 = vld [vmem:[#allocation2 + $0xa] sm:$0xff]  ;;  %2819 = vmatmul.mubr.f32.vlgmr.msra.gmra.mrb[96].mxu0 %v2651_v47  ;;  %v2664_v7 = vld [vmem:[#allocation2 + $0x32] sm:$0xff]  ;;  %v2666_v44 = vld [vmem:[#allocation2 + $0x42] sm:$0xff] }
 0x6fc   :  { %4403 = vmatprep.mubr.f32.mxu1 %v2659_v10  ;;  %3448 = vmatprep.mubr.msk.f32.mxu0 %vm5352_vm13, %v2628_v42  ;;  %v2655_v31 = vld [vmem:[#allocation2 + $0x26] sm:$0xff]  ;;  %v2656_v25 = vld [vmem:[#allocation2 + $0x2e] sm:$0xff]  ;;  %v2657_v14 = vld [vmem:[#allocation2 + $0x36] sm:$0xff]  ;;  %v4915_v42 = vpack.c.bf16 %v3146_v43, %v3145_v38  ;;  %vm6075_vm13 = vnez %v6022_v21 }
 0x6fd   :  { %4404 = vmatmul.mubr.f32.vlgmr.msra.gmra.mrb[48].mxu1 %v2660_v20  ;;  %v2658_v37 = vld [vmem:[#allocation2 + $0x3e] sm:$0xff]  ;;  %4910 = vmatpush3.bf16.msra.mxu0 %v4909_v17  ;;  %v3149_v20 = vld [vmem:[#allocation3 + $0xb40] sm:$0xff] }
 0x6fe   :  { %4406 = vmatprep.mubr.f32.mxu1 %v2661_v40  ;;  %4942 = vmatpush3.bf16.msra.mxu1 %v4939_v26  ;;  %v3150_v47 = vld [vmem:[#allocation3 + $0xb48] sm:$0xff]  ;;  %v3133_v40 = vld [vmem:[#allocation3 + $0xac0] sm:$0xff] }
 0x6ff   :  { %2824 = vmatmul.mubr.f32.gmra.mrb[98].mxu0 %v2652_v59  ;;  %4912 = vmatprep.subr.bf16.mxu0 %v4911_v2  ;;  %v4923_v10 = vpack.c.bf16 %v3150_v47, %v3149_v20  ;;  %v3134_v59 = vld [vmem:[#allocation3 + $0xac8] sm:$0xff]  ;;  %v3155_v2 = vld [vmem:[#allocation3 + $0xb70] sm:$0xff] }
 0x700   :  { %3449 = vmatprep.mubr.msk.f32.mxu0 %vm5364_vm14, %v2629_v45  ;;  %4944 = vmatprep.subr.bf16.mxu1 %v4943_v36  ;;  %v3129_v45 = vld [vmem:[#allocation3 + $0xaa0] sm:$0xff]  ;;  %v3138_v17 = vld [vmem:[#allocation3 + $0xae8] sm:$0xff]  ;;  %v4935_v16 = vpack.c.bf16 %v3156_v55, %v3155_v2  ;;  %vm6076_vm14 = vnez %v6024_v39 }
 0x701   :  { %4407 = vmatmul.mubr.msk.f32.gmra.mrb[50].mxu1 %vm2670_vm5, %v2662_v52  ;;  %4914 = vmatpush3.bf16.msra.mxu0 %v4913_v32  ;;  %v3165_v52 = vld [vmem:[#allocation3 + $0xbc0] sm:$0xff]  ;;  %v3170_v26 = vld [vmem:[#allocation3 + $0xbe8] sm:$0xff]  ;;  %v4933_v41 = vpack.c.bf16 %v3138_v17, %v3137_v48  ;;  %v3140_v32 = vld [vmem:[#allocation3 + $0xaf8] sm:$0xff] }
 0x702   :  { %4409 = vmatprep.mubr.f32.mxu1 %v2663_v49  ;;  %4946 = vmatpush3.bf16.msra.mxu1 %v4943_v36  ;;  %v4925_v49 = vpack.c.bf16 %v3134_v59, %v3133_v40  ;;  %v4963_v63 = vpack.c.bf16 %v3170_v26, %v3169_v53  ;;  %v3172_v36 = vld [vmem:[#allocation3 + $0xbf8] sm:$0xff]  ;;  %v4937_v38 = vpack.c.bf16 %v3140_v32, %v3139_v56 }
 0x703   :  { %2829 = vmatmul.mubr.f32.gmra.mrb[100].mxu0 %v2653_v1  ;;  %4916 = vmatprep.subr.bf16.mxu0 %v4915_v42  ;;  %v3166_v1 = vld [vmem:[#allocation3 + $0xbc8] sm:$0xff]  ;;  %v4967_v43 = vpack.c.bf16 %v3172_v36, %v3171_v19  ;;  %v5866_v42 = vld [vmem:[#allocation5 + $0x30] sm:$0xff] }
 0x704   :  { %3450 = vmatprep.mubr.msk.f32.mxu0 %vm5384_vm15, %v2630_v13  ;;  %v3130_v13 = vld [vmem:[#allocation3 + $0xaa8] sm:$0xff]  ;;  %vm6077_vm15 = vnez %v6026_v57  ;;  %v3174_v57 = vld [vmem:[#allocation5 + $0x38] sm:$0xff] }
 0x705   :  { %4410 = vmatmul.mubr.f32.gmra.mrb[52].mxu1 %v2664_v7  ;;  %v4955_v7 = vpack.c.bf16 %v3166_v1, %v3165_v52 }
 0x706   :  { %4412 = vmatprep.mubr.f32.mxu1 %v2665_v51  ;;  %v3151_v51 = vld [vmem:[#allocation3 + $0xb50] sm:$0xff] }
 0x707   :  { %2834 = vmatmul.mubr.f32.gmra.mrb[102].mxu0 %v2654_v11  ;;  %v3152_v11 = vld [vmem:[#allocation3 + $0xb58] sm:$0xff] }
 0x708   :  { %3451 = vmatprep.mubr.msk.f32.mxu0 %vm5397_vm0, %v2631_v12  ;;  %v3161_v12 = vld [vmem:[#allocation3 + $0xba0] sm:$0xff]  ;;  %vm6078_vm0 = vnez %v6028_v0 }
 0x709   :  { %4413 = vmatmul.mubr.msk.f32.gmra.mrb[54].mxu1 %vm2674_vm6, %v2666_v44  ;;  %v4927_v44 = vpack.c.bf16 %v3152_v11, %v3151_v51 }
 0x70b   :  { %2839 = vmatmul.mubr.f32.gmra.mrb[104].mxu0 %v2655_v31  ;;  %v3135_v31 = vld [vmem:[#allocation3 + $0xad0] sm:$0xff] }
 0x70c   :  { %3452 = vmatprep.mubr.msk.f32.mxu0 %vm6070_vm2, %v2632_v5  ;;  %v4917_v5 = vpack.c.bf16 %v3130_v13, %v3129_v45  ;;  %v5870_v13 = vrot.slane %v5866_v42, %v5167_v50 }
 0x70e   :  { %4918 = vmatpush3.bf16.msra.mxu0 %v4917_v5 }
 0x70f   :  { %2844 = vmatmul.mubr.f32.gmra.mrb[106].mxu0 %v2656_v25  ;;  %4920 = vmatprep.subr.bf16.mxu0 %v4919_v29  ;;  %v3136_v25 = vld [vmem:[#allocation3 + $0xad8] sm:$0xff] }
 0x710   :  { %3453 = vmatprep.mubr.msk.f32.mxu0 %vm6071_vm3, %v2633_v62  ;;  %v3162_v62 = vld [vmem:[#allocation3 + $0xba8] sm:$0xff] }
 0x712   :  { %4922 = vmatpush3.bf16.msra.mxu0 %v4921_v28 }
 0x713   :  { %2849 = vmatmul.mubr.f32.gmra.mrb[108].mxu0 %v2657_v14  ;;  %4924 = vmatprep.subr.bf16.mxu0 %v4923_v10  ;;  %v3167_v14 = vld [vmem:[#allocation3 + $0xbd0] sm:$0xff] }
 0x714   :  { %3454 = vmatprep.mubr.msk.f32.mxu0 %vm6072_vm4, %v2634_v15  ;;  %v4947_v15 = vpack.c.bf16 %v3162_v62, %v3161_v12  ;;  %v4959_v23 = vpack.c.bf16 %v3168_v54, %v3167_v14 }
 0x716   :  { %4948 = vmatprep.subr.bf16.mxu1 %v4947_v15  ;;  %4926 = vmatpush3.bf16.msra.mxu0 %v4925_v49 }
 0x717   :  { %2854 = vmatmul.mubr.f32.gmra.mrb[110].mxu0 %v2658_v37  ;;  %4950 = vmatpush3.bf16.msra.mxu1 %v4947_v15  ;;  %v4929_v37 = vpack.c.bf16 %v3136_v25, %v3135_v31 }
 0x718   :  { %4952 = vmatprep.subr.bf16.mxu1 %v4951_v6  ;;  %4928 = vmatprep.subr.bf16.mxu0 %v4927_v44 }
 0x71a   :  { %4930 = vmatpush3.bf16.msra.mxu0 %v4929_v37 }
 0x71b   :  { %4954 = vmatpush3.bf16.msra.mxu1 %v4951_v6  ;;  %4932 = vmatprep.subr.bf16.mxu0 %v4931_v34 }
 0x71c   :  { %4956 = vmatprep.subr.bf16.mxu1 %v4955_v7 }
 0x71e   :  { %4934 = vmatpush3.bf16.msra.mxu0 %v4933_v41 }
 0x71f   :  { %4958 = vmatpush3.bf16.msra.mxu1 %v4955_v7  ;;  %4936 = vmatprep.subr.bf16.mxu0 %v4935_v16 }
 0x720   :  { %4960 = vmatprep.subr.bf16.mxu1 %v4959_v23 }
 0x722   :  { %4938 = vmatpush3.bf16.msra.mxu0 %v4937_v38 }
 0x723   :  { %4962 = vmatpush3.bf16.msra.mxu1 %v4959_v23 }
 0x724   :  { %4964 = vmatprep.subr.bf16.mxu1 %v4963_v63 }
 0x727   :  { %4966 = vmatpush3.bf16.msra.mxu1 %v4963_v63 }
 0x728   :  { %4968 = vmatprep.subr.bf16.mxu1 %v4967_v43 }
 0x72b   :  { %4970 = vmatpush3.bf16.msra.mxu1 %v4967_v43 }
 0x7ce   :  { %v3979_v45 = vpop.f32.mrb[96].mxu0 }
 0x7cf   :  { %v3980_v12 = vpop.f32.mrb[97].mxu0 }
 0x7d0   :  { %v4405_v5 = vpop.f32.mrb[48].mxu1  ;;  %v3981_v62 = vadd.f32 %v3980_v12, %v3979_v45 }
 0x7d1   :  { %v2925_v15 = vpop.f32.mrb[49].mxu1 }
 0x7d2   :  { %v2821_v18 = vadd.f32 %v3981_v62, %v5870_v13  ;;  %v3982_v8 = vpop.f32.mrb[98].mxu0 }
 0x7d3   :  { %v3983_v29 = vpop.f32.mrb[99].mxu0 }
 0x7d4   :  { %v4408_v61 = vpop.f32.mrb[50].mxu1  ;;  %v2926_v60 = vadd.f32 %v2925_v15, %v2821_v18  ;;  %v3984_v22 = vadd.f32 %v3983_v29, %v3982_v8 }
 0x7d5   :  { %v2935_v28 = vpop.f32.mrb[51].mxu1 }
 0x7d6   :  { %v2826_v58 = vadd.f32 %v3984_v22, %v5870_v13  ;;  %v3985_v6 = vpop.f32.mrb[100].mxu0  ;;  %v5876_v10 = vsel %vm6073_vm7, %v2926_v60, 0.0 }
 0x7d7   :  { %v3986_v20 = vpop.f32.mrb[101].mxu0  ;;  %v2986_v51 = vmul.f32 %v5876_v10, %v5876_v10 }
 0x7d8   :  { %v4411_v47 = vpop.f32.mrb[52].mxu1  ;;  %v2931_v40 = vadd.f32 %v4405_v5, %v2826_v58  ;;  %v3987_v59 = vadd.f32 %v3986_v20, %v3985_v6 }
 0x7d9   :  { %v2945_v52 = vpop.f32.mrb[53].mxu1 }
 0x7da   :  { %v5880_v49 = vsel %vm6074_vm12, %v2931_v40, 0.0  ;;  %v2831_v1 = vadd.f32 %v3987_v59, %v5870_v13  ;;  %v3988_v7 = vpop.f32.mrb[102].mxu0 }
 0x7db   :  { %v2972_v11 = vadd.f32 %v5880_v49, %v5876_v10  ;;  %v2987_v44 = vmul.f32 %v5880_v49, %v5880_v49  ;;  %v3989_v31 = vpop.f32.mrb[103].mxu0 }
 0x7dc   :  { %v4414_v25 = vpop.f32.mrb[54].mxu1  ;;  %v2936_v14 = vadd.f32 %v2935_v28, %v2831_v1  ;;  %v3990_v37 = vadd.f32 %v3989_v31, %v3988_v7  ;;  %v6080_v31 = vld [vmem:[#allocation9_spill] sm:$0xff] }
 0x7dd   :  { %v2955_v54 = vpop.f32.mrb[55].mxu1  ;;  %v2994_v23 = vadd.f32 %v2987_v44, %v2986_v51  ;;  %vm6081_vm9 = vnez %v6080_v31 }
 0x7de   :  { %v5891_v35 = vsel %vm6075_vm13, %v2936_v14, 0.0  ;;  %v2836_v46 = vadd.f32 %v3990_v37, %v5870_v13  ;;  %v3991_v48 = vpop.f32.mrb[104].mxu0 }
 0x7df   :  { %v2973_v34 = vadd.f32 %v2972_v11, %v5891_v35  ;;  %v2988_v17 = vmul.f32 %v5891_v35, %v5891_v35  ;;  %v3992_v53 = vpop.f32.mrb[105].mxu0 }
 0x7e0   :  { %v2941_v26 = vadd.f32 %v4408_v61, %v2836_v46  ;;  %v3993_v41 = vadd.f32 %v3992_v53, %v3991_v48 }
 0x7e1   :  { %v2995_v63 = vadd.f32 %v2994_v23, %v2988_v17 }
 0x7e2   :  { %v5899_v2 = vsel %vm6076_vm14, %v2941_v26, 0.0  ;;  %v2841_v55 = vadd.f32 %v3993_v41, %v5870_v13  ;;  %v3994_v56 = vpop.f32.mrb[106].mxu0 }
 0x7e3   :  { %v2974_v16 = vadd.f32 %v2973_v34, %v5899_v2  ;;  %v2989_v32 = vmul.f32 %v5899_v2, %v5899_v2  ;;  %v3995_v19 = vpop.f32.mrb[107].mxu0 }
 0x7e4   :  { %v2946_v36 = vadd.f32 %v2945_v52, %v2841_v55  ;;  %v3996_v38 = vadd.f32 %v3995_v19, %v3994_v56 }
 0x7e5   :  { %v2996_v43 = vadd.f32 %v2995_v63, %v2989_v32 }
 0x7e6   :  { %v2968_v45 = vsel %vm6077_vm15, %v2946_v36, 0.0  ;;  %v2846_v12 = vadd.f32 %v3996_v38, %v5870_v13  ;;  %v3997_v5 = vpop.f32.mrb[108].mxu0 }
 0x7e7   :  { %v2975_v62 = vadd.f32 %v2974_v16, %v2968_v45  ;;  %v2990_v15 = vmul.f32 %v2968_v45, %v2968_v45  ;;  %v3998_v18 = vpop.f32.mrb[109].mxu0 }
 0x7e8   :  { %v2951_v8 = vadd.f32 %v4411_v47, %v2846_v12  ;;  %v3999_v29 = vadd.f32 %v3998_v18, %v3997_v5 }
 0x7e9   :  { %v2997_v61 = vadd.f32 %v2996_v43, %v2990_v15 }
 0x7ea   :  { %v2969_v60 = vsel %vm6078_vm0, %v2951_v8, 0.0  ;;  %v2851_v22 = vadd.f32 %v3999_v29, %v5870_v13  ;;  %v4000_v28 = vpop.f32.mrb[110].mxu0 }
 0x7eb   :  { %v2976_v58 = vadd.f32 %v2975_v62, %v2969_v60  ;;  %v2991_v6 = vmul.f32 %v2969_v60, %v2969_v60  ;;  %v4001_v20 = vpop.f32.mrb[111].mxu0 }
 0x7ec   :  { %v2956_v40 = vadd.f32 %v2955_v54, %v2851_v22  ;;  %v4002_v59 = vadd.f32 %v4001_v20, %v4000_v28 }
 0x7ed   :  { %v2998_v52 = vadd.f32 %v2997_v61, %v2991_v6  ;;  %v3031_v61 = vrot.slane %v5866_v42, %v5288_v30 }
 0x7ee   :  { %v2970_v1 = vsel %vm6079_vm10, %v2956_v40, 0.0  ;;  %v2856_v7 = vadd.f32 %v4002_v59, %v5870_v13 }
 0x7ef   :  { %v2977_v47 = vadd.f32 %v2976_v58, %v2970_v1  ;;  %v2992_v51 = vmul.f32 %v2970_v1, %v2970_v1 }
 0x7f0   :  { %v2961_v11 = vadd.f32 %v4414_v25, %v2856_v7 }
 0x7f1   :  { %v2999_v44 = vadd.f32 %v2998_v52, %v2992_v51 }
 0x7f2   :  { %v2971_v14 = vsel %vm6081_vm9, %v2961_v11, 0.0 }
 0x7f3   :  { %v2978_v37 = vadd.f32 %v2977_v47, %v2971_v14  ;;  %v2993_v23 = vmul.f32 %v2971_v14, %v2971_v14 }
 0x7f5   :  { %v2979_v46 = vrot.slane %v2978_v37, 4  ;;  %v3000_v48 = vadd.f32 %v2999_v44, %v2993_v23 }
 0x7f7   :  { %v2980_v34 = vadd.f32 %v2979_v46, %v2978_v37  ;;  %v3001_v54 = vrot.slane %v3000_v48, 4 }
 0x7f9   :  { %v2981_v17 = vrot.slane %v2980_v34, 2  ;;  %v3002_v53 = vadd.f32 %v3001_v54, %v3000_v48 }
 0x7fb   :  { %v2982_v26 = vadd.f32 %v2981_v17, %v2980_v34  ;;  %v3003_v41 = vrot.slane %v3002_v53, 2 }
 0x7fd   :  { %v2983_v63 = vrot.slane %v2982_v26, 1  ;;  %v3004_v55 = vadd.f32 %v3003_v41, %v3002_v53 }
 0x7ff   :  { %v2984_v13 = vadd.f32 %v2983_v63, %v2982_v26  ;;  %v3005_v56 = vrot.slane %v3004_v55, 1 }
 0x801   :  { %v2985_v16 = vmul.f32 0.03125, %v2984_v13  ;;  %v3006_v25 = vadd.f32 %v3005_v56, %v3004_v55 }
 0x803   :  { %v3007_v32 = vmul.f32 0.03125, %v3006_v25  ;;  %v3008_v19 = vmul.f32 %v2985_v16, %v2985_v16  ;;  %v3011_v36 = vsub.f32 %v5880_v49, %v2985_v16  ;;  %v3012_v38 = vsub.f32 %v5891_v35, %v2985_v16 }
 0x804   :  { %v3013_v43 = vsub.f32 %v5899_v2, %v2985_v16  ;;  %v3014_v12 = vsub.f32 %v2968_v45, %v2985_v16  ;;  %v3015_v5 = vsub.f32 %v2969_v60, %v2985_v16  ;;  %v3016_v62 = vsub.f32 %v2970_v1, %v2985_v16 }
 0x805   :  { %v3009_v15 = vsub.f32 %v3007_v32, %v3008_v19  ;;  %v3017_v18 = vsub.f32 %v2971_v14, %v2985_v16  ;;  %v3010_v8 = vsub.f32 %v5876_v10, %v2985_v16  ;;  %v3043_v49 = vrot.slane %v5866_v42, %v5291_v33 }
 0x807   :  { %v3018_v29 = vadd.f32 1e-05, %v3009_v15 }
 0x809   :  { %4986 = vrsqrt.f32 %v3018_v29 }
 0x813   :  { %v4987_v22 = vpop.eup %4986 }
 0x814   :  { %v3021_v28 = vmul.f32 %v4987_v22, %v3011_v36  ;;  %v3022_v35 = vmul.f32 %v4987_v22, %v3012_v38  ;;  %v3023_v58 = vmul.f32 %v4987_v22, %v3013_v43  ;;  %v3024_v2 = vmul.f32 %v4987_v22, %v3014_v12 }
 0x815   :  { %v3025_v45 = vmul.f32 %v4987_v22, %v3015_v5  ;;  %v3026_v60 = vmul.f32 %v4987_v22, %v3016_v62  ;;  %v3027_v6 = vmul.f32 %v4987_v22, %v3017_v18  ;;  %v3020_v20 = vmul.f32 %v4987_v22, %v3010_v8 }
 0x816   :  { %v3033_v40 = vmul.f32 %v3031_v61, %v3021_v28  ;;  %v3034_v59 = vmul.f32 %v3031_v61, %v3022_v35  ;;  %v3035_v10 = vmul.f32 %v3031_v61, %v3023_v58  ;;  %v3036_v52 = vmul.f32 %v3031_v61, %v3024_v2 }
 0x817   :  { %v3037_v1 = vmul.f32 %v3031_v61, %v3025_v45  ;;  %v3038_v7 = vmul.f32 %v3031_v61, %v3026_v60  ;;  %v3039_v47 = vmul.f32 %v3031_v61, %v3027_v6  ;;  %v3032_v30 = vmul.f32 %v3031_v61, %v3020_v20 }
 0x818   :  { %v3045_v51 = vadd.f32 %v3043_v49, %v3033_v40  ;;  %v3046_v11 = vadd.f32 %v3043_v49, %v3034_v59  ;;  %v3047_v44 = vadd.f32 %v3043_v49, %v3035_v10  ;;  %v3048_v33 = vadd.f32 %v3043_v49, %v3036_v52 }
 0x819   :  { %v3049_v42 = vadd.f32 %v3043_v49, %v3037_v1  ;;  %v5924_v14 = vadd.f32 %v3043_v49, %v3038_v7  ;;  %v5926_v37 = vadd.f32 %v3043_v49, %v3039_v47  ;;  %v3044_v23 = vadd.f32 %v3043_v49, %v3032_v30 }
 0x81a   :  { %v3053_v46 = vmax.f32 %v3045_v51, 0.0  ;;  %v3054_v48 = vmax.f32 %v3046_v11, 0.0  ;;  %v3055_v34 = vmax.f32 %v3047_v44, 0.0  ;;  %v3056_v54 = vmax.f32 %v3048_v33, 0.0 }
 0x81b   :  { %v3057_v17 = vmax.f32 %v3049_v42, 0.0  ;;  %v3058_v53 = vmax.f32 %v5924_v14, 0.0  ;;  %v3059_v26 = vmax.f32 %v5926_v37, 0.0  ;;  %v3052_v41 = vmax.f32 %v3044_v23, 0.0 }
 0x81c   :  { %v3061_v63 = vsel %vm6074_vm12, %v3053_v46, 0.0  ;;  %v3062_v55 = vsel %vm6075_vm13, %v3054_v48, 0.0  ;;  %v3063_v13 = vsel %vm6076_vm14, %v3055_v34, 0.0  ;;  %v3064_v56 = vsel %vm6077_vm15, %v3056_v54, 0.0 }
 0x81d   :  { %v3065_v16 = vsel %vm6078_vm0, %v3057_v17, 0.0  ;;  %v3066_v25 = vsel %vm6079_vm10, %v3058_v53, 0.0  ;;  %v3067_v32 = vsel %vm6081_vm9, %v3059_v26, 0.0  ;;  %3069 = vst [vmem:[#allocation2 + $0x10] sm:$0xff] %v3061_v63  ;;  %3070 = vst [vmem:[#allocation2 + $0x18] sm:$0xff] %v3062_v55  ;;  %v3060_v19 = vsel %vm6073_vm7, %v3052_v41, 0.0  ;;  %3457 = vmatprep.mubr.msk.f32.mxu0 %vm6073_vm7, %v3052_v41 }
 0x81e   :  { %3071 = vst [vmem:[#allocation2 + $0x20] sm:$0xff] %v3063_v13  ;;  %3072 = vst [vmem:[#allocation2 + $0x28] sm:$0xff] %v3064_v56  ;;  %v3178_v22 = vrot.slane %v3174_v57, %v5167_v50 }
 0x81f   :  { %3073 = vst [vmem:[#allocation2 + $0x30] sm:$0xff] %v3065_v16  ;;  %3074 = vst [vmem:[#allocation2 + $0x38] sm:$0xff] %v3066_v25 }
 0x820   :  { %3075 = vst [vmem:[#allocation2 + $0x40] sm:$0xff] %v3067_v32  ;;  %3068 = vst [vmem:[#allocation2 + $0x8] sm:$0xff] %v3060_v19 }
 0x824   :  { %v3085_v36 = vld [vmem:[#allocation2 + $0x11] sm:$0xff] }
 0x825   :  { %v3086_v12 = vld [vmem:[#allocation2 + $0x19] sm:$0xff]  ;;  %v3087_v4 = vld [vmem:[#allocation2 + $0x21] sm:$0xff] }
 0x826   :  { %v3088_v62 = vld [vmem:[#allocation2 + $0x29] sm:$0xff]  ;;  %v3078_v15 = vld [vmem:[#allocation2 + $0x17] sm:$0xff]  ;;  %v3079_v24 = vld [vmem:[#allocation2 + $0x1f] sm:$0xff] }
 0x827   :  { %v3076_v38 = vld [vmem:[#allocation2 + $0x7] sm:$0xff]  ;;  %v3077_v5 = vld [vmem:[#allocation2 + $0xf] sm:$0xff]  ;;  %v3090_v9 = vld [vmem:[#allocation2 + $0x39] sm:$0xff] }
 0x828   :  { %v3084_v43 = vld [vmem:[#allocation2 + $0x9] sm:$0xff]  ;;  %3244 = vmatmul.mubr.f32.vlgmr.msra.gmra.mrb[112].mxu0 %v3076_v38  ;;  %v3089_v18 = vld [vmem:[#allocation2 + $0x31] sm:$0xff]  ;;  %v3091_v8 = vld [vmem:[#allocation2 + $0x41] sm:$0xff] }
 0x829   :  { %4447 = vmatprep.mubr.f32.mxu1 %v3084_v43  ;;  %3458 = vmatprep.mubr.msk.f32.mxu0 %vm6074_vm12, %v3053_v46  ;;  %v3080_v21 = vld [vmem:[#allocation2 + $0x27] sm:$0xff]  ;;  %v3081_v29 = vld [vmem:[#allocation2 + $0x2f] sm:$0xff]  ;;  %v3082_v39 = vld [vmem:[#allocation2 + $0x37] sm:$0xff] }
 0x82a   :  { %4448 = vmatmul.mubr.f32.vlgmr.msra.gmra.mrb[56].mxu1 %v3085_v36  ;;  %v3083_v3 = vld [vmem:[#allocation2 + $0x3f] sm:$0xff] }
 0x82b   :  { %4450 = vmatprep.mubr.f32.mxu1 %v3086_v12 }
 0x82c   :  { %3249 = vmatmul.mubr.f32.gmra.mrb[114].mxu0 %v3077_v5 }
 0x82d   :  { %3459 = vmatprep.mubr.msk.f32.mxu0 %vm6075_vm13, %v3054_v48 }
 0x82e   :  { %4451 = vmatmul.mubr.msk.f32.gmra.mrb[58].mxu1 %vm3095_vm11, %v3087_v4 }
 0x82f   :  { %4453 = vmatprep.mubr.f32.mxu1 %v3088_v62 }
 0x830   :  { %3254 = vmatmul.mubr.f32.gmra.mrb[116].mxu0 %v3078_v15 }
 0x831   :  { %3460 = vmatprep.mubr.msk.f32.mxu0 %vm6076_vm14, %v3055_v34 }
 0x832   :  { %4454 = vmatmul.mubr.f32.gmra.mrb[60].mxu1 %v3089_v18 }
 0x833   :  { %4456 = vmatprep.mubr.f32.mxu1 %v3090_v9 }
 0x834   :  { %3259 = vmatmul.mubr.f32.gmra.mrb[118].mxu0 %v3079_v24 }
 0x835   :  { %3461 = vmatprep.mubr.msk.f32.mxu0 %vm6077_vm15, %v3056_v54 }
 0x836   :  { %4457 = vmatmul.mubr.msk.f32.gmra.mrb[62].mxu1 %vm3099_vm1, %v3091_v8 }
 0x838   :  { %3264 = vmatmul.mubr.f32.gmra.mrb[120].mxu0 %v3080_v21 }
 0x839   :  { %3462 = vmatprep.mubr.msk.f32.mxu0 %vm6078_vm0, %v3057_v17 }
 0x83c   :  { %3269 = vmatmul.mubr.f32.gmra.mrb[122].mxu0 %v3081_v29 }
 0x83d   :  { %3463 = vmatprep.mubr.msk.f32.mxu0 %vm6079_vm10, %v3058_v53 }
 0x840   :  { %3274 = vmatmul.mubr.f32.gmra.mrb[124].mxu0 %v3082_v39 }
 0x841   :  { %3464 = vmatprep.mubr.msk.f32.mxu0 %vm6081_vm9, %v3059_v26 }
 0x844   :  { %3279 = vmatmul.mubr.f32.gmra.mrb[126].mxu0 %v3083_v3 }
 0x8fb   :  { %v4059_v61 = vpop.f32.mrb[112].mxu0 }
 0x8fc   :  { %v4060_v49 = vpop.f32.mrb[113].mxu0 }
 0x8fd   :  { %v4449_v28 = vpop.f32.mrb[56].mxu1  ;;  %v4061_v0 = vadd.f32 %v4060_v49, %v4059_v61 }
 0x8fe   :  { %v3350_v35 = vpop.f32.mrb[57].mxu1 }
 0x8ff   :  { %v3246_v58 = vadd.f32 %v4061_v0, %v3178_v22  ;;  %v4062_v2 = vpop.f32.mrb[114].mxu0 }
 0x900   :  { %v4063_v45 = vpop.f32.mrb[115].mxu0 }
 0x901   :  { %v4452_v27 = vpop.f32.mrb[58].mxu1  ;;  %v3351_v60 = vadd.f32 %v3350_v35, %v3246_v58  ;;  %v4064_v6 = vadd.f32 %v4063_v45, %v4062_v2 }
 0x902   :  { %v3360_v20 = vpop.f32.mrb[59].mxu1 }
 0x903   :  { %3389 = vst [vmem:[%s5992_s3] sm:$0xff] %v3351_v60  ;;  %v3251_v31 = vadd.f32 %v4064_v6, %v3178_v22  ;;  %v4065_v40 = vpop.f32.mrb[116].mxu0 }
 0x904   :  { %v4066_v59 = vpop.f32.mrb[117].mxu0 }
 0x905   :  { %v4455_v10 = vpop.f32.mrb[60].mxu1  ;;  %v3356_v50 = vadd.f32 %v4449_v28, %v3251_v31  ;;  %v4067_v52 = vadd.f32 %v4066_v59, %v4065_v40 }
 0x906   :  { %v3370_v1 = vpop.f32.mrb[61].mxu1 }
 0x907   :  { %3390 = vst [vmem:[%s5992_s3 + $0x8] sm:$0xff] %v3356_v50  ;;  %v3256_v7 = vadd.f32 %v4067_v52, %v3178_v22  ;;  %v4068_v47 = vpop.f32.mrb[118].mxu0 }
 0x908   :  { %v4069_v30 = vpop.f32.mrb[119].mxu0 }
 0x909   :  { %v4458_v51 = vpop.f32.mrb[62].mxu1  ;;  %v3361_v11 = vadd.f32 %v3360_v20, %v3256_v7  ;;  %v4070_v44 = vadd.f32 %v4069_v30, %v4068_v47 }
 0x90a   :  { %v3380_v33 = vpop.f32.mrb[63].mxu1 }
 0x90b   :  { %3391 = vst [vmem:[%s5992_s3 + $0x10] sm:$0xff] %v3361_v11  ;;  %v3261_v42 = vadd.f32 %v4070_v44, %v3178_v22  ;;  %v4071_v14 = vpop.f32.mrb[120].mxu0 }
 0x90c   :  { %v4072_v37 = vpop.f32.mrb[121].mxu0 }
 0x90d   :  { %v3366_v23 = vadd.f32 %v4452_v27, %v3261_v42  ;;  %v4073_v46 = vadd.f32 %v4072_v37, %v4071_v14 }
 0x90f   :  { %3392 = vst [vmem:[%s5992_s3 + $0x18] sm:$0xff] %v3366_v23  ;;  %v3266_v48 = vadd.f32 %v4073_v46, %v3178_v22  ;;  %v4074_v34 = vpop.f32.mrb[122].mxu0 }
 0x910   :  { %v4075_v54 = vpop.f32.mrb[123].mxu0 }
 0x911   :  { %v3371_v17 = vadd.f32 %v3370_v1, %v3266_v48  ;;  %v4076_v53 = vadd.f32 %v4075_v54, %v4074_v34 }
 0x913   :  { %3393 = vst [vmem:[%s5992_s3 + $0x20] sm:$0xff] %v3371_v17  ;;  %v3271_v26 = vadd.f32 %v4076_v53, %v3178_v22  ;;  %v4077_v41 = vpop.f32.mrb[124].mxu0 }
 0x914   :  { %v4078_v63 = vpop.f32.mrb[125].mxu0 }
 0x915   :  { %v3376_v55 = vadd.f32 %v4455_v10, %v3271_v26  ;;  %v4079_v13 = vadd.f32 %v4078_v63, %v4077_v41 }
 0x917   :  { %3394 = vst [vmem:[%s5992_s3 + $0x28] sm:$0xff] %v3376_v55  ;;  %v3276_v56 = vadd.f32 %v4079_v13, %v3178_v22  ;;  %v4080_v16 = vpop.f32.mrb[126].mxu0 }
 0x918   :  { %v4081_v25 = vpop.f32.mrb[127].mxu0 }
 0x919   :  { %v3381_v32 = vadd.f32 %v3380_v33, %v3276_v56  ;;  %v4082_v19 = vadd.f32 %v4081_v25, %v4080_v16 }
 0x91b   :  { %3395 = vst [vmem:[%s5992_s3 + $0x30] sm:$0xff] %v3381_v32  ;;  %v3281_v36 = vadd.f32 %v4082_v19, %v3178_v22 }
 0x91d   :  { %v3386_v38 = vadd.f32 %v4458_v51, %v3281_v36 }
 0x91f   :  { %3396 = vst [vmem:[%s5992_s3 + $0x38] sm:$0xff] %v3386_v38 }
 0x920   :  { %3401 = vsyncpa [#allocation4], 1 }
 0x921   :  { %3402 = vsyncpa [#allocation6], 1 }

</bundles_post_ra>
